<compile_context>
chip_gen: v7x
topology: tpu7x:2x2x1
jax: 0.10.0
libtpu: 0.0.40
codegen_flags: <defaults>
</compile_context>

<pallas_src>
import functools

import jax
import jax.numpy as jnp
from jax.experimental import pallas as pl
from jax.experimental.pallas import tpu as pltpu

_BN_EPS = 1e-5


# ------------------ fused Block kernel (prev BN+ReLU -> 3x3 conv -> BN partial stats) ------------------

def _block_kernel(x_ref, s_ref, b_ref, w_ref, cb_ref,
                  y_ref, sum_ref, ssq_ref, *, apply_input_act):
    # x_ref  : (1, H, W, Cin)   raw conv output of the previous Block (or the network input)
    # s_ref  : (1, Cin)         previous Block's folded BN scale (unused if not apply_input_act)
    # b_ref  : (1, Cin)         previous Block's folded BN bias  (unused if not apply_input_act)
    # w_ref  : (3, 3*Cin, Cout) bf16 weights, dx-major per dy  (small-cin fused path), OR
    #          (3, 3, Cin, Cout) bf16 HWIO weights             (large-cin 9-tap path)
    # cb_ref : (1, Cout)        conv bias (f32)
    # y_ref  : (1, H, W, Cout)  raw conv output (unpadded), single aligned full-tile store
    # sum_ref: (1, 1, Cout)     per-image sum of conv output
    # ssq_ref: (1, 1, Cout)     per-image centered sum of squares
    _, h, w, cin = x_ref.shape
    cout = y_ref.shape[-1]

    a = x_ref[0].astype(jnp.float32)                       # (H, W, Cin)
    if apply_input_act:
        # Previous Block's BatchNorm (folded) + ReLU, fused into this conv's input processing.
        # Applied only to the real H*W pixels; the halo below is rebuilt as exact zeros.
        a = jnp.maximum(a * s_ref[0, :] + b_ref[0, :], 0.0)

    # Rebuild the zero-padded activation in registers (two concats; no iota/select, no HBM halo).
    zcol = jnp.zeros((h, 1, cin), jnp.float32)
    a = jnp.concatenate([zcol, a, zcol], axis=1)           # (H, W+2, Cin)
    zrow = jnp.zeros((1, w + 2, cin), jnp.float32)
    a = jnp.concatenate([zrow, a, zrow], axis=0)           # (H+2, W+2, Cin)

    # Conv bias initializes the f32 accumulator.
    acc = jnp.broadcast_to(cb_ref[0, :].astype(jnp.float32), (h * w, cout))

    if w_ref.ndim == 3:
        # Small-cin path: fuse the 3 dx taps into one K=3*Cin matmul per dy.
        cat = jnp.concatenate([a[:, dx:dx + w, :] for dx in range(3)],
                              axis=-1).astype(jnp.bfloat16)          # (H+2, W, 3*Cin) bf16
        for dy in range(3):
            lhs = cat[dy:dy + h].reshape(h * w, 3 * cin)              # bf16 MXU operand
            acc = acc + jnp.dot(lhs, w_ref[dy],
                                preferred_element_type=jnp.float32)
    else:
        # Large-cin path: 9 MXU matmuls, 3 column-shifted views reused by the 3 dy taps.
        views = [a[:, dx:dx + w, :].astype(jnp.bfloat16) for dx in range(3)]
        for dy in range(3):
            for dx in range(3):
                lhs = views[dx][dy:dy + h].reshape(h * w, cin)        # bf16 MXU operand
                acc = acc + jnp.dot(lhs, w_ref[dy, dx],
                                    preferred_element_type=jnp.float32)

    # Single aligned full-tile store of the raw conv output (unpadded layout).
    y_ref[...] = acc.reshape(1, h, w, cout).astype(y_ref.dtype)

    # Fused per-image BatchNorm statistics (f32); centered SSQ as a fused reduction (no temp).
    npix = float(h * w)
    psum = jnp.sum(acc, axis=0, keepdims=True)                        # (1, Cout)
    sum_ref[...] = psum.reshape(1, 1, cout)
    ssq_ref[...] = jnp.sum(jnp.square(acc - psum * (1.0 / npix)),
                           axis=0, keepdims=True).reshape(1, 1, cout)


def _block_conv(x, prev_scale, prev_bias, w_hwio, conv_bias, *,
                apply_input_act, act_dtype):
    n, h, w, cin = x.shape
    cout = w_hwio.shape[-1]

    # Pre-cast weights to bf16 in the wrapper (halves weight DMA); pick the tap-fusion layout.
    if cin < 128:
        w_k = w_hwio.reshape(3, 3 * cin, cout).astype(jnp.bfloat16)   # dx-major rows per dy
        w_spec = pl.BlockSpec((3, 3 * cin, cout), lambda i: (0, 0, 0))
    else:
        w_k = w_hwio.astype(jnp.bfloat16)
        w_spec = pl.BlockSpec((3, 3, cin, cout), lambda i: (0, 0, 0, 0))

    kernel = functools.partial(_block_kernel, apply_input_act=apply_input_act)
    return pl.pallas_call(
        kernel,
        out_shape=(
            jax.ShapeDtypeStruct((n, h, w, cout), act_dtype),         # raw conv output (unpadded)
            jax.ShapeDtypeStruct((n, 1, cout), jnp.float32),          # per-image sums
            jax.ShapeDtypeStruct((n, 1, cout), jnp.float32),          # per-image centered SSQ
        ),
        grid=(n,),
        in_specs=[
            pl.BlockSpec((1, h, w, cin), lambda i: (i, 0, 0, 0)),
            pl.BlockSpec((1, cin), lambda i: (0, 0)),
            pl.BlockSpec((1, cin), lambda i: (0, 0)),
            w_spec,
            pl.BlockSpec((1, cout), lambda i: (0, 0)),
        ],
        out_specs=(
            pl.BlockSpec((1, h, w, cout), lambda i: (i, 0, 0, 0)),
            pl.BlockSpec((1, 1, cout), lambda i: (i, 0, 0)),
            pl.BlockSpec((1, 1, cout), lambda i: (i, 0, 0)),
        ),
        compiler_params=pltpu.CompilerParams(
            dimension_semantics=("parallel",),
            vmem_limit_bytes=32 * 1024 * 1024),
    )(x, prev_scale.reshape(1, cin), prev_bias.reshape(1, cin), w_k,
      conv_bias.astype(jnp.float32).reshape(1, cout))


# --------------------------- final Block's BN + ReLU (standalone elementwise) ---------------------------

def _bn_relu_kernel(y_ref, s_ref, b_ref, o_ref):
    _, h, w, c = y_ref.shape
    y = y_ref[0].astype(jnp.float32)
    z = jnp.maximum(y * s_ref[0, :] + b_ref[0, :], 0.0)
    o_ref[...] = z.reshape(1, h, w, c).astype(o_ref.dtype)


def _bn_relu_last(y, scale, bias):
    n, h, w, c = y.shape
    return pl.pallas_call(
        _bn_relu_kernel,
        out_shape=jax.ShapeDtypeStruct((n, h, w, c), jnp.float32),
        grid=(n,),
        in_specs=[
            pl.BlockSpec((1, h, w, c), lambda i: (i, 0, 0, 0)),
            pl.BlockSpec((1, c), lambda i: (0, 0)),
            pl.BlockSpec((1, c), lambda i: (0, 0)),
        ],
        out_specs=pl.BlockSpec((1, h, w, c), lambda i: (i, 0, 0, 0)),
        compiler_params=pltpu.CompilerParams(
            dimension_semantics=("parallel",),
            vmem_limit_bytes=32 * 1024 * 1024),
    )(y, scale.reshape(1, c), bias.reshape(1, c))


# ------------------------------------------ Layer forward ------------------------------------------

def _fold_bn(sum_i, ssq_i, n_imgs, npix, gamma, beta):
    """Combine per-image (sum, centered SSQ) into folded BatchNorm scale/bias (training stats)."""
    cnt = n_imgs * npix
    total = jnp.sum(sum_i, axis=0)                          # (C,)
    mean = total / cnt
    mean_i = sum_i / npix                                   # (N, C)
    ssq = jnp.sum(ssq_i, axis=0) + npix * jnp.sum(jnp.square(mean_i - mean), axis=0)
    var = jnp.maximum(ssq / cnt, 0.0)                       # biased variance, like PyTorch BN
    scale = gamma * jax.lax.rsqrt(var + _BN_EPS)
    bias = beta - mean * scale
    return scale, bias


def layer_forward(x_nchw, block_params, act_dtype=jnp.float32):
    """Equivalent of Layer.forward (sequential Blocks). Input/output are NCHW.

    act_dtype: HBM storage dtype of inter-Block activations (jnp.bfloat16 halves HBM traffic;
    default float32). MXU operands are bf16 either way; accumulation/statistics are float32.
    """
    x = jnp.transpose(x_nchw, (0, 2, 3, 1))                 # NCHW -> NHWC
    n, h, w, cin0 = x.shape
    cur = x.astype(act_dtype)
    scale = jnp.ones((cin0,), jnp.float32)                  # unused by the first Block's kernel
    bias = jnp.zeros((cin0,), jnp.float32)
    apply_act = False
    npix = float(h * w)
    for p in block_params:
        y, sum_i, ssq_i = _block_conv(
            cur, scale, bias, p["w"], p["b"],
            apply_input_act=apply_act, act_dtype=act_dtype)
        scale, bias = _fold_bn(sum_i[:, 0, :], ssq_i[:, 0, :], n, npix,
                               p["gamma"], p["beta"])
        cur = y
        apply_act = True
    out = _bn_relu_last(cur, scale, bias)                   # last Block's BN + ReLU
    return jnp.transpose(out, (0, 3, 1, 2))                 # NHWC -> NCHW


# ------------------------------------------ parameter init ------------------------------------------

def init_layer_params(key, in_channels, layer_list):
    params = []
    cin = in_channels
    for cout in layer_list:
        key, kw, kb = jax.random.split(key, 3)
        fan_in = cin * 3 * 3
        bound = 1.0 / jnp.sqrt(float(fan_in))
        w = jax.random.uniform(kw, (3, 3, cin, cout), jnp.float32, -bound, bound)
        b = jax.random.uniform(kb, (cout,), jnp.float32, -bound, bound)
        params.append({
            "w": w,                                         # HWIO conv weight
            "b": b,                                         # conv bias
            "gamma": jnp.ones((cout,), jnp.float32),        # BN weight
            "beta": jnp.zeros((cout,), jnp.float32),        # BN bias
        })
        cin = cout
    return params


# -------------------------------------- reference (pure JAX, f32) --------------------------------------

def _reference_forward(x_nchw, block_params):
    """Pure-JAX reference: conv -> training-mode BatchNorm (batch stats) -> ReLU per Block."""
    x = x_nchw
    for p in block_params:
        w_oihw = jnp.transpose(p["w"], (3, 2, 0, 1))        # HWIO -> OIHW
        y = jax.lax.conv_general_dilated(
            x, w_oihw, window_strides=(1, 1), padding=((1, 1), (1, 1)),
            dimension_numbers=("NCHW", "OIHW", "NCHW"))
        y = y + p["b"][None, :, None, None]
        mean = jnp.mean(y, axis=(0, 2, 3), keepdims=True)
        var = jnp.var(y, axis=(0, 2, 3), keepdims=True)
        y = (y - mean) * jax.lax.rsqrt(var + _BN_EPS)
        y = y * p["gamma"][None, :, None, None] + p["beta"][None, :, None, None]
        x = jnp.maximum(y, 0.0)
    return x


# -------------------------------------------------- main --------------------------------------------------

if __name__ == "__main__":
    key = jax.random.PRNGKey(0)
    batch, in_channels, height, width = 2, 4, 16, 16
    layer_list = [8, 8]                                     # two Blocks, like a VGG stage

    kx, kp = jax.random.split(key)
    x = jax.random.normal(kx, (batch, in_channels, height, width), jnp.float32)  # NCHW
    params = init_layer_params(kp, in_channels, layer_list)

    out = jax.jit(layer_forward)(x, params)
    out = jax.block_until_ready(out)

    assert out.shape == (batch, layer_list[-1], height, width), out.shape
    assert bool(jnp.all(out >= 0.0))                        # ReLU output is non-negative

    # Tolerance accounts for bf16 MXU operands (f32 accumulation) vs the pure-f32 reference.
    ref = _reference_forward(x, params)
    max_err = float(jnp.max(jnp.abs(out - ref)))
    assert max_err < 1e-1, f"max abs error vs reference: {max_err}"

    print("KERNEL_OK")
</pallas_src>

<mosaic_0001>
module attributes {stable_mosaic.version = 11 : i64} {
  func.func @_block_kernel(%arg0: i32, %arg1: memref<1x16x16x4xf32, #tpu.memory_space<vmem>>, %arg2: memref<1x4xf32, #tpu.memory_space<vmem>>, %arg3: memref<1x4xf32, #tpu.memory_space<vmem>>, %arg4: memref<3x12x8xbf16, #tpu.memory_space<vmem>>, %arg5: memref<1x8xf32, #tpu.memory_space<vmem>>, %arg6: memref<1x16x16x8xf32, #tpu.memory_space<vmem>>, %arg7: memref<1x1x8xf32, #tpu.memory_space<vmem>>, %arg8: memref<1x1x8xf32, #tpu.memory_space<vmem>>) attributes {dimension_semantics = [#tpu.dimension_semantics<parallel>], iteration_bounds = array<i64: 2>, scalar_prefetch = 0 : i64, scratch_operands = 0 : i64, tpu.core_type = #tpu.core_type<tc>, window_params = [{transform_indices = @transform_0, window_bounds = array<i64: 1, 16, 16, 4>}, {pipeline_mode = #tpu.pipeline_mode<synchronous>, transform_indices = @transform_1, window_bounds = array<i64: 1, 4>}, {pipeline_mode = #tpu.pipeline_mode<synchronous>, transform_indices = @transform_2, window_bounds = array<i64: 1, 4>}, {pipeline_mode = #tpu.pipeline_mode<synchronous>, transform_indices = @transform_3, window_bounds = array<i64: 3, 12, 8>}, {pipeline_mode = #tpu.pipeline_mode<synchronous>, transform_indices = @transform_4, window_bounds = array<i64: 1, 8>}, {transform_indices = @transform_5, window_bounds = array<i64: 1, 16, 16, 8>}, {transform_indices = @transform_6, window_bounds = array<i64: 1, 1, 8>}, {transform_indices = @transform_7, window_bounds = array<i64: 1, 1, 8>}]} {
    %c0 = arith.constant 0 : index
    %c0_0 = arith.constant 0 : index
    %c0_1 = arith.constant 0 : index
    %c0_2 = arith.constant 0 : index
    %0 = vector.load %arg1[%c0, %c0_0, %c0_1, %c0_2] : memref<1x16x16x4xf32, #tpu.memory_space<vmem>>, vector<1x16x16x4xf32>
    %1 = vector.shape_cast %0 : vector<1x16x16x4xf32> to vector<16x16x4xf32>
    %cst = arith.constant 0.000000e+00 : f32
    %2 = vector.broadcast %cst : f32 to vector<16x1x4xf32>
    %3 = tpu.concatenate %2, %1, %2 in 1 : vector<16x1x4xf32>, vector<16x16x4xf32>, vector<16x1x4xf32> -> vector<16x18x4xf32>
    %cst_3 = arith.constant 0.000000e+00 : f32
    %4 = vector.broadcast %cst_3 : f32 to vector<1x18x4xf32>
    %5 = tpu.concatenate %4, %3, %4 in 0 : vector<1x18x4xf32>, vector<16x18x4xf32>, vector<1x18x4xf32> -> vector<18x18x4xf32>
    %c0_4 = arith.constant 0 : index
    %c0_5 = arith.constant 0 : index
    %6 = vector.load %arg5[%c0_4, %c0_5] : memref<1x8xf32, #tpu.memory_space<vmem>>, vector<1x8xf32>
    %7 = vector.shape_cast %6 : vector<1x8xf32> to vector<8xf32>
    %8 = vector.shape_cast %7 : vector<8xf32> to vector<1x8xf32>
    %9 = vector.broadcast %8 : vector<1x8xf32> to vector<256x8xf32>
    %10 = vector.extract_strided_slice %5 {offsets = [0, 0, 0], sizes = [18, 16, 4], strides = [1, 1, 1]} : vector<18x18x4xf32> to vector<18x16x4xf32>
    %11 = vector.extract_strided_slice %5 {offsets = [0, 1, 0], sizes = [18, 16, 4], strides = [1, 1, 1]} : vector<18x18x4xf32> to vector<18x16x4xf32>
    %12 = vector.extract_strided_slice %5 {offsets = [0, 2, 0], sizes = [18, 16, 4], strides = [1, 1, 1]} : vector<18x18x4xf32> to vector<18x16x4xf32>
    %13 = tpu.concatenate %10, %11, %12 in 2 : vector<18x16x4xf32>, vector<18x16x4xf32>, vector<18x16x4xf32> -> vector<18x16x12xf32>
    %14 = arith.truncf %13 : vector<18x16x12xf32> to vector<18x16x12xbf16>
    %15 = vector.extract_strided_slice %14 {offsets = [0, 0, 0], sizes = [16, 16, 12], strides = [1, 1, 1]} : vector<18x16x12xbf16> to vector<16x16x12xbf16>
    %16 = vector.shape_cast %15 : vector<16x16x12xbf16> to vector<256x12xbf16>
    %c0_6 = arith.constant 0 : index
    %c0_7 = arith.constant 0 : index
    %c0_8 = arith.constant 0 : index
    %17 = vector.load %arg4[%c0_6, %c0_7, %c0_8] : memref<3x12x8xbf16, #tpu.memory_space<vmem>>, vector<1x12x8xbf16>
    %18 = vector.shape_cast %17 : vector<1x12x8xbf16> to vector<12x8xbf16>
    %cst_9 = arith.constant dense<0.000000e+00> : vector<256x8xf32>
    %19 = tpu.matmul %16, %18, %cst_9 {dimension_numbers = #tpu.dot_dimension_numbers<[1], [0], [0], [1], [0, 0, 1, 1], [], []>} : vector<256x12xbf16>, vector<12x8xbf16>, vector<256x8xf32> -> vector<256x8xf32>
    %20 = arith.addf %9, %19 : vector<256x8xf32>
    %21 = vector.extract_strided_slice %14 {offsets = [1, 0, 0], sizes = [16, 16, 12], strides = [1, 1, 1]} : vector<18x16x12xbf16> to vector<16x16x12xbf16>
    %22 = vector.shape_cast %21 : vector<16x16x12xbf16> to vector<256x12xbf16>
    %c1 = arith.constant 1 : index
    %c0_10 = arith.constant 0 : index
    %c0_11 = arith.constant 0 : index
    %23 = vector.load %arg4[%c1, %c0_10, %c0_11] : memref<3x12x8xbf16, #tpu.memory_space<vmem>>, vector<1x12x8xbf16>
    %24 = vector.shape_cast %23 : vector<1x12x8xbf16> to vector<12x8xbf16>
    %cst_12 = arith.constant dense<0.000000e+00> : vector<256x8xf32>
    %25 = tpu.matmul %22, %24, %cst_12 {dimension_numbers = #tpu.dot_dimension_numbers<[1], [0], [0], [1], [0, 0, 1, 1], [], []>} : vector<256x12xbf16>, vector<12x8xbf16>, vector<256x8xf32> -> vector<256x8xf32>
    %26 = arith.addf %20, %25 : vector<256x8xf32>
    %27 = vector.extract_strided_slice %14 {offsets = [2, 0, 0], sizes = [16, 16, 12], strides = [1, 1, 1]} : vector<18x16x12xbf16> to vector<16x16x12xbf16>
    %28 = vector.shape_cast %27 : vector<16x16x12xbf16> to vector<256x12xbf16>
    %c2 = arith.constant 2 : index
    %c0_13 = arith.constant 0 : index
    %c0_14 = arith.constant 0 : index
    %29 = vector.load %arg4[%c2, %c0_13, %c0_14] : memref<3x12x8xbf16, #tpu.memory_space<vmem>>, vector<1x12x8xbf16>
    %30 = vector.shape_cast %29 : vector<1x12x8xbf16> to vector<12x8xbf16>
    %cst_15 = arith.constant dense<0.000000e+00> : vector<256x8xf32>
    %31 = tpu.matmul %28, %30, %cst_15 {dimension_numbers = #tpu.dot_dimension_numbers<[1], [0], [0], [1], [0, 0, 1, 1], [], []>} : vector<256x12xbf16>, vector<12x8xbf16>, vector<256x8xf32> -> vector<256x8xf32>
    %32 = arith.addf %26, %31 : vector<256x8xf32>
    %33 = vector.shape_cast %32 : vector<256x8xf32> to vector<1x16x16x8xf32>
    %c0_16 = arith.constant 0 : index
    %c0_17 = arith.constant 0 : index
    %c0_18 = arith.constant 0 : index
    %c0_19 = arith.constant 0 : index
    %34 = vector.load %arg6[%c0_16, %c0_17, %c0_18, %c0_19] : memref<1x16x16x8xf32, #tpu.memory_space<vmem>>, vector<1x16x16x8xf32>
    tpu.vector_store %arg6[%c0_16, %c0_17, %c0_18, %c0_19], %33 {strides = array<i32>} : memref<1x16x16x8xf32, #tpu.memory_space<vmem>>, vector<1x16x16x8xf32>,
    %cst_20 = arith.constant dense<0.000000e+00> : vector<8xf32>
    %35 = vector.multi_reduction <add>, %32, %cst_20 [0] : vector<256x8xf32> to vector<8xf32>
    %36 = vector.shape_cast %35 : vector<8xf32> to vector<1x8xf32>
    %37 = vector.shape_cast %36 : vector<1x8xf32> to vector<1x1x8xf32>
    %c0_21 = arith.constant 0 : index
    %c0_22 = arith.constant 0 : index
    %c0_23 = arith.constant 0 : index
    %38 = vector.load %arg7[%c0_21, %c0_22, %c0_23] : memref<1x1x8xf32, #tpu.memory_space<vmem>>, vector<1x1x8xf32>
    tpu.vector_store %arg7[%c0_21, %c0_22, %c0_23], %37 {strides = array<i32>} : memref<1x1x8xf32, #tpu.memory_space<vmem>>, vector<1x1x8xf32>,
    %cst_24 = arith.constant 3.906250e-03 : f32
    %39 = vector.broadcast %cst_24 : f32 to vector<1x8xf32>
    %40 = arith.mulf %36, %39 : vector<1x8xf32>
    %41 = vector.broadcast %40 : vector<1x8xf32> to vector<256x8xf32>
    %42 = arith.subf %32, %41 : vector<256x8xf32>
    %43 = arith.mulf %42, %42 : vector<256x8xf32>
    %cst_25 = arith.constant dense<0.000000e+00> : vector<8xf32>
    %44 = vector.multi_reduction <add>, %43, %cst_25 [0] : vector<256x8xf32> to vector<8xf32>
    %45 = vector.shape_cast %44 : vector<8xf32> to vector<1x8xf32>
    %46 = vector.shape_cast %45 : vector<1x8xf32> to vector<1x1x8xf32>
    %c0_26 = arith.constant 0 : index
    %c0_27 = arith.constant 0 : index
    %c0_28 = arith.constant 0 : index
    %47 = vector.load %arg8[%c0_26, %c0_27, %c0_28] : memref<1x1x8xf32, #tpu.memory_space<vmem>>, vector<1x1x8xf32>
    tpu.vector_store %arg8[%c0_26, %c0_27, %c0_28], %46 {strides = array<i32>} : memref<1x1x8xf32, #tpu.memory_space<vmem>>, vector<1x1x8xf32>,
    return
  }
  func.func @transform_0(%arg0: i32) -> (i32, i32, i32, i32) {
    %c0_i32 = arith.constant 0 : i32
    %c0_i32_0 = arith.constant 0 : i32
    %c0_i32_1 = arith.constant 0 : i32
    %c0_i32_2 = arith.constant 0 : i32
    return %arg0, %c0_i32, %c0_i32_0, %c0_i32_1 : i32, i32, i32, i32
  }
  func.func @transform_1(%arg0: i32) -> (i32, i32) {
    %c0_i32 = arith.constant 0 : i32
    %c0_i32_0 = arith.constant 0 : i32
    %c0_i32_1 = arith.constant 0 : i32
    return %c0_i32, %c0_i32_0 : i32, i32
  }
  func.func @transform_2(%arg0: i32) -> (i32, i32) {
    %c0_i32 = arith.constant 0 : i32
    %c0_i32_0 = arith.constant 0 : i32
    %c0_i32_1 = arith.constant 0 : i32
    return %c0_i32, %c0_i32_0 : i32, i32
  }
  func.func @transform_3(%arg0: i32) -> (i32, i32, i32) {
    %c0_i32 = arith.constant 0 : i32
    %c0_i32_0 = arith.constant 0 : i32
    %c0_i32_1 = arith.constant 0 : i32
    %c0_i32_2 = arith.constant 0 : i32
    return %c0_i32, %c0_i32_0, %c0_i32_1 : i32, i32, i32
  }
  func.func @transform_4(%arg0: i32) -> (i32, i32) {
    %c0_i32 = arith.constant 0 : i32
    %c0_i32_0 = arith.constant 0 : i32
    %c0_i32_1 = arith.constant 0 : i32
    return %c0_i32, %c0_i32_0 : i32, i32
  }
  func.func @transform_5(%arg0: i32) -> (i32, i32, i32, i32) {
    %c0_i32 = arith.constant 0 : i32
    %c0_i32_0 = arith.constant 0 : i32
    %c0_i32_1 = arith.constant 0 : i32
    %c0_i32_2 = arith.constant 0 : i32
    return %arg0, %c0_i32, %c0_i32_0, %c0_i32_1 : i32, i32, i32, i32
  }
  func.func @transform_6(%arg0: i32) -> (i32, i32, i32) {
    %c0_i32 = arith.constant 0 : i32
    %c0_i32_0 = arith.constant 0 : i32
    %c0_i32_1 = arith.constant 0 : i32
    return %arg0, %c0_i32, %c0_i32_0 : i32, i32, i32
  }
  func.func @transform_7(%arg0: i32) -> (i32, i32, i32) {
    %c0_i32 = arith.constant 0 : i32
    %c0_i32_0 = arith.constant 0 : i32
    %c0_i32_1 = arith.constant 0 : i32
    return %arg0, %c0_i32, %c0_i32_0 : i32, i32, i32
  }
}

module attributes {stable_mosaic.version = 11 : i64} {
  func.func @_bn_relu_kernel(%arg0: i32, %arg1: memref<1x16x16x8xf32, #tpu.memory_space<vmem>>, %arg2: memref<1x8xf32, #tpu.memory_space<vmem>>, %arg3: memref<1x8xf32, #tpu.memory_space<vmem>>, %arg4: memref<1x16x16x8xf32, #tpu.memory_space<vmem>>) attributes {dimension_semantics = [#tpu.dimension_semantics<parallel>], iteration_bounds = array<i64: 2>, scalar_prefetch = 0 : i64, scratch_operands = 0 : i64, tpu.core_type = #tpu.core_type<tc>, window_params = [{transform_indices = @transform_0, window_bounds = array<i64: 1, 16, 16, 8>}, {pipeline_mode = #tpu.pipeline_mode<synchronous>, transform_indices = @transform_1, window_bounds = array<i64: 1, 8>}, {pipeline_mode = #tpu.pipeline_mode<synchronous>, transform_indices = @transform_2, window_bounds = array<i64: 1, 8>}, {transform_indices = @transform_3, window_bounds = array<i64: 1, 16, 16, 8>}]} {
    %c0 = arith.constant 0 : index
    %c0_0 = arith.constant 0 : index
    %c0_1 = arith.constant 0 : index
    %c0_2 = arith.constant 0 : index
    %0 = vector.load %arg1[%c0, %c0_0, %c0_1, %c0_2] : memref<1x16x16x8xf32, #tpu.memory_space<vmem>>, vector<1x16x16x8xf32>
    %1 = vector.shape_cast %0 : vector<1x16x16x8xf32> to vector<16x16x8xf32>
    %c0_3 = arith.constant 0 : index
    %c0_4 = arith.constant 0 : index
    %2 = vector.load %arg2[%c0_3, %c0_4] : memref<1x8xf32, #tpu.memory_space<vmem>>, vector<1x8xf32>
    %3 = vector.shape_cast %2 : vector<1x8xf32> to vector<8xf32>
    %4 = vector.shape_cast %3 : vector<8xf32> to vector<1x1x8xf32>
    %5 = vector.broadcast %4 : vector<1x1x8xf32> to vector<16x16x8xf32>
    %6 = arith.mulf %1, %5 : vector<16x16x8xf32>
    %c0_5 = arith.constant 0 : index
    %c0_6 = arith.constant 0 : index
    %7 = vector.load %arg3[%c0_5, %c0_6] : memref<1x8xf32, #tpu.memory_space<vmem>>, vector<1x8xf32>
    %8 = vector.shape_cast %7 : vector<1x8xf32> to vector<8xf32>
    %9 = vector.shape_cast %8 : vector<8xf32> to vector<1x1x8xf32>
    %10 = vector.broadcast %9 : vector<1x1x8xf32> to vector<16x16x8xf32>
    %11 = arith.addf %6, %10 : vector<16x16x8xf32>
    %cst = arith.constant 0.000000e+00 : f32
    %12 = vector.broadcast %cst : f32 to vector<16x16x8xf32>
    %13 = arith.maximumf %11, %12 : vector<16x16x8xf32>
    %14 = vector.shape_cast %13 : vector<16x16x8xf32> to vector<1x16x16x8xf32>
    %c0_7 = arith.constant 0 : index
    %c0_8 = arith.constant 0 : index
    %c0_9 = arith.constant 0 : index
    %c0_10 = arith.constant 0 : index
    %15 = vector.load %arg4[%c0_7, %c0_8, %c0_9, %c0_10] : memref<1x16x16x8xf32, #tpu.memory_space<vmem>>, vector<1x16x16x8xf32>
    tpu.vector_store %arg4[%c0_7, %c0_8, %c0_9, %c0_10], %14 {strides = array<i32>} : memref<1x16x16x8xf32, #tpu.memory_space<vmem>>, vector<1x16x16x8xf32>,
    return
  }
  func.func @transform_0(%arg0: i32) -> (i32, i32, i32, i32) {
    %c0_i32 = arith.constant 0 : i32
    %c0_i32_0 = arith.constant 0 : i32
    %c0_i32_1 = arith.constant 0 : i32
    %c0_i32_2 = arith.constant 0 : i32
    return %arg0, %c0_i32, %c0_i32_0, %c0_i32_1 : i32, i32, i32, i32
  }
  func.func @transform_1(%arg0: i32) -> (i32, i32) {
    %c0_i32 = arith.constant 0 : i32
    %c0_i32_0 = arith.constant 0 : i32
    %c0_i32_1 = arith.constant 0 : i32
    return %c0_i32, %c0_i32_0 : i32, i32
  }
  func.func @transform_2(%arg0: i32) -> (i32, i32) {
    %c0_i32 = arith.constant 0 : i32
    %c0_i32_0 = arith.constant 0 : i32
    %c0_i32_1 = arith.constant 0 : i32
    return %c0_i32, %c0_i32_0 : i32, i32
  }
  func.func @transform_3(%arg0: i32) -> (i32, i32, i32, i32) {
    %c0_i32 = arith.constant 0 : i32
    %c0_i32_0 = arith.constant 0 : i32
    %c0_i32_1 = arith.constant 0 : i32
    %c0_i32_2 = arith.constant 0 : i32
    return %arg0, %c0_i32, %c0_i32_0, %c0_i32_1 : i32, i32, i32, i32
  }
}

module attributes {stable_mosaic.version = 11 : i64} {
  func.func @_block_kernel(%arg0: i32, %arg1: memref<1x16x16x8xf32, #tpu.memory_space<vmem>>, %arg2: memref<1x8xf32, #tpu.memory_space<vmem>>, %arg3: memref<1x8xf32, #tpu.memory_space<vmem>>, %arg4: memref<3x24x8xbf16, #tpu.memory_space<vmem>>, %arg5: memref<1x8xf32, #tpu.memory_space<vmem>>, %arg6: memref<1x16x16x8xf32, #tpu.memory_space<vmem>>, %arg7: memref<1x1x8xf32, #tpu.memory_space<vmem>>, %arg8: memref<1x1x8xf32, #tpu.memory_space<vmem>>) attributes {dimension_semantics = [#tpu.dimension_semantics<parallel>], iteration_bounds = array<i64: 2>, scalar_prefetch = 0 : i64, scratch_operands = 0 : i64, tpu.core_type = #tpu.core_type<tc>, window_params = [{transform_indices = @transform_0, window_bounds = array<i64: 1, 16, 16, 8>}, {pipeline_mode = #tpu.pipeline_mode<synchronous>, transform_indices = @transform_1, window_bounds = array<i64: 1, 8>}, {pipeline_mode = #tpu.pipeline_mode<synchronous>, transform_indices = @transform_2, window_bounds = array<i64: 1, 8>}, {pipeline_mode = #tpu.pipeline_mode<synchronous>, transform_indices = @transform_3, window_bounds = array<i64: 3, 24, 8>}, {pipeline_mode = #tpu.pipeline_mode<synchronous>, transform_indices = @transform_4, window_bounds = array<i64: 1, 8>}, {transform_indices = @transform_5, window_bounds = array<i64: 1, 16, 16, 8>}, {transform_indices = @transform_6, window_bounds = array<i64: 1, 1, 8>}, {transform_indices = @transform_7, window_bounds = array<i64: 1, 1, 8>}]} {
    %c0 = arith.constant 0 : index
    %c0_0 = arith.constant 0 : index
    %c0_1 = arith.constant 0 : index
    %c0_2 = arith.constant 0 : index
    %0 = vector.load %arg1[%c0, %c0_0, %c0_1, %c0_2] : memref<1x16x16x8xf32, #tpu.memory_space<vmem>>, vector<1x16x16x8xf32>
    %1 = vector.shape_cast %0 : vector<1x16x16x8xf32> to vector<16x16x8xf32>
    %c0_3 = arith.constant 0 : index
    %c0_4 = arith.constant 0 : index
    %2 = vector.load %arg2[%c0_3, %c0_4] : memref<1x8xf32, #tpu.memory_space<vmem>>, vector<1x8xf32>
    %3 = vector.shape_cast %2 : vector<1x8xf32> to vector<8xf32>
    %4 = vector.shape_cast %3 : vector<8xf32> to vector<1x1x8xf32>
    %5 = vector.broadcast %4 : vector<1x1x8xf32> to vector<16x16x8xf32>
    %6 = arith.mulf %1, %5 : vector<16x16x8xf32>
    %c0_5 = arith.constant 0 : index
    %c0_6 = arith.constant 0 : index
    %7 = vector.load %arg3[%c0_5, %c0_6] : memref<1x8xf32, #tpu.memory_space<vmem>>, vector<1x8xf32>
    %8 = vector.shape_cast %7 : vector<1x8xf32> to vector<8xf32>
    %9 = vector.shape_cast %8 : vector<8xf32> to vector<1x1x8xf32>
    %10 = vector.broadcast %9 : vector<1x1x8xf32> to vector<16x16x8xf32>
    %11 = arith.addf %6, %10 : vector<16x16x8xf32>
    %cst = arith.constant 0.000000e+00 : f32
    %12 = vector.broadcast %cst : f32 to vector<16x16x8xf32>
    %13 = arith.maximumf %11, %12 : vector<16x16x8xf32>
    %cst_7 = arith.constant 0.000000e+00 : f32
    %14 = vector.broadcast %cst_7 : f32 to vector<16x1x8xf32>
    %15 = tpu.concatenate %14, %13, %14 in 1 : vector<16x1x8xf32>, vector<16x16x8xf32>, vector<16x1x8xf32> -> vector<16x18x8xf32>
    %cst_8 = arith.constant 0.000000e+00 : f32
    %16 = vector.broadcast %cst_8 : f32 to vector<1x18x8xf32>
    %17 = tpu.concatenate %16, %15, %16 in 0 : vector<1x18x8xf32>, vector<16x18x8xf32>, vector<1x18x8xf32> -> vector<18x18x8xf32>
    %c0_9 = arith.constant 0 : index
    %c0_10 = arith.constant 0 : index
    %18 = vector.load %arg5[%c0_9, %c0_10] : memref<1x8xf32, #tpu.memory_space<vmem>>, vector<1x8xf32>
    %19 = vector.shape_cast %18 : vector<1x8xf32> to vector<8xf32>
    %20 = vector.shape_cast %19 : vector<8xf32> to vector<1x8xf32>
    %21 = vector.broadcast %20 : vector<1x8xf32> to vector<256x8xf32>
    %22 = vector.extract_strided_slice %17 {offsets = [0, 0, 0], sizes = [18, 16, 8], strides = [1, 1, 1]} : vector<18x18x8xf32> to vector<18x16x8xf32>
    %23 = vector.extract_strided_slice %17 {offsets = [0, 1, 0], sizes = [18, 16, 8], strides = [1, 1, 1]} : vector<18x18x8xf32> to vector<18x16x8xf32>
    %24 = vector.extract_strided_slice %17 {offsets = [0, 2, 0], sizes = [18, 16, 8], strides = [1, 1, 1]} : vector<18x18x8xf32> to vector<18x16x8xf32>
    %25 = tpu.concatenate %22, %23, %24 in 2 : vector<18x16x8xf32>, vector<18x16x8xf32>, vector<18x16x8xf32> -> vector<18x16x24xf32>
    %26 = arith.truncf %25 : vector<18x16x24xf32> to vector<18x16x24xbf16>
    %27 = vector.extract_strided_slice %26 {offsets = [0, 0, 0], sizes = [16, 16, 24], strides = [1, 1, 1]} : vector<18x16x24xbf16> to vector<16x16x24xbf16>
    %28 = vector.shape_cast %27 : vector<16x16x24xbf16> to vector<256x24xbf16>
    %c0_11 = arith.constant 0 : index
    %c0_12 = arith.constant 0 : index
    %c0_13 = arith.constant 0 : index
    %29 = vector.load %arg4[%c0_11, %c0_12, %c0_13] : memref<3x24x8xbf16, #tpu.memory_space<vmem>>, vector<1x24x8xbf16>
    %30 = vector.shape_cast %29 : vector<1x24x8xbf16> to vector<24x8xbf16>
    %cst_14 = arith.constant dense<0.000000e+00> : vector<256x8xf32>
    %31 = tpu.matmul %28, %30, %cst_14 {dimension_numbers = #tpu.dot_dimension_numbers<[1], [0], [0], [1], [0, 0, 1, 1], [], []>} : vector<256x24xbf16>, vector<24x8xbf16>, vector<256x8xf32> -> vector<256x8xf32>
    %32 = arith.addf %21, %31 : vector<256x8xf32>
    %33 = vector.extract_strided_slice %26 {offsets = [1, 0, 0], sizes = [16, 16, 24], strides = [1, 1, 1]} : vector<18x16x24xbf16> to vector<16x16x24xbf16>
    %34 = vector.shape_cast %33 : vector<16x16x24xbf16> to vector<256x24xbf16>
    %c1 = arith.constant 1 : index
    %c0_15 = arith.constant 0 : index
    %c0_16 = arith.constant 0 : index
    %35 = vector.load %arg4[%c1, %c0_15, %c0_16] : memref<3x24x8xbf16, #tpu.memory_space<vmem>>, vector<1x24x8xbf16>
    %36 = vector.shape_cast %35 : vector<1x24x8xbf16> to vector<24x8xbf16>
    %cst_17 = arith.constant dense<0.000000e+00> : vector<256x8xf32>
    %37 = tpu.matmul %34, %36, %cst_17 {dimension_numbers = #tpu.dot_dimension_numbers<[1], [0], [0], [1], [0, 0, 1, 1], [], []>} : vector<256x24xbf16>, vector<24x8xbf16>, vector<256x8xf32> -> vector<256x8xf32>
    %38 = arith.addf %32, %37 : vector<256x8xf32>
    %39 = vector.extract_strided_slice %26 {offsets = [2, 0, 0], sizes = [16, 16, 24], strides = [1, 1, 1]} : vector<18x16x24xbf16> to vector<16x16x24xbf16>
    %40 = vector.shape_cast %39 : vector<16x16x24xbf16> to vector<256x24xbf16>
    %c2 = arith.constant 2 : index
    %c0_18 = arith.constant 0 : index
    %c0_19 = arith.constant 0 : index
    %41 = vector.load %arg4[%c2, %c0_18, %c0_19] : memref<3x24x8xbf16, #tpu.memory_space<vmem>>, vector<1x24x8xbf16>
    %42 = vector.shape_cast %41 : vector<1x24x8xbf16> to vector<24x8xbf16>
    %cst_20 = arith.constant dense<0.000000e+00> : vector<256x8xf32>
    %43 = tpu.matmul %40, %42, %cst_20 {dimension_numbers = #tpu.dot_dimension_numbers<[1], [0], [0], [1], [0, 0, 1, 1], [], []>} : vector<256x24xbf16>, vector<24x8xbf16>, vector<256x8xf32> -> vector<256x8xf32>
    %44 = arith.addf %38, %43 : vector<256x8xf32>
    %45 = vector.shape_cast %44 : vector<256x8xf32> to vector<1x16x16x8xf32>
    %c0_21 = arith.constant 0 : index
    %c0_22 = arith.constant 0 : index
    %c0_23 = arith.constant 0 : index
    %c0_24 = arith.constant 0 : index
    %46 = vector.load %arg6[%c0_21, %c0_22, %c0_23, %c0_24] : memref<1x16x16x8xf32, #tpu.memory_space<vmem>>, vector<1x16x16x8xf32>
    tpu.vector_store %arg6[%c0_21, %c0_22, %c0_23, %c0_24], %45 {strides = array<i32>} : memref<1x16x16x8xf32, #tpu.memory_space<vmem>>, vector<1x16x16x8xf32>,
    %cst_25 = arith.constant dense<0.000000e+00> : vector<8xf32>
    %47 = vector.multi_reduction <add>, %44, %cst_25 [0] : vector<256x8xf32> to vector<8xf32>
    %48 = vector.shape_cast %47 : vector<8xf32> to vector<1x8xf32>
    %49 = vector.shape_cast %48 : vector<1x8xf32> to vector<1x1x8xf32>
    %c0_26 = arith.constant 0 : index
    %c0_27 = arith.constant 0 : index
    %c0_28 = arith.constant 0 : index
    %50 = vector.load %arg7[%c0_26, %c0_27, %c0_28] : memref<1x1x8xf32, #tpu.memory_space<vmem>>, vector<1x1x8xf32>
    tpu.vector_store %arg7[%c0_26, %c0_27, %c0_28], %49 {strides = array<i32>} : memref<1x1x8xf32, #tpu.memory_space<vmem>>, vector<1x1x8xf32>,
    %cst_29 = arith.constant 3.906250e-03 : f32
    %51 = vector.broadcast %cst_29 : f32 to vector<1x8xf32>
    %52 = arith.mulf %48, %51 : vector<1x8xf32>
    %53 = vector.broadcast %52 : vector<1x8xf32> to vector<256x8xf32>
    %54 = arith.subf %44, %53 : vector<256x8xf32>
    %55 = arith.mulf %54, %54 : vector<256x8xf32>
    %cst_30 = arith.constant dense<0.000000e+00> : vector<8xf32>
    %56 = vector.multi_reduction <add>, %55, %cst_30 [0] : vector<256x8xf32> to vector<8xf32>
    %57 = vector.shape_cast %56 : vector<8xf32> to vector<1x8xf32>
    %58 = vector.shape_cast %57 : vector<1x8xf32> to vector<1x1x8xf32>
    %c0_31 = arith.constant 0 : index
    %c0_32 = arith.constant 0 : index
    %c0_33 = arith.constant 0 : index
    %59 = vector.load %arg8[%c0_31, %c0_32, %c0_33] : memref<1x1x8xf32, #tpu.memory_space<vmem>>, vector<1x1x8xf32>
    tpu.vector_store %arg8[%c0_31, %c0_32, %c0_33], %58 {strides = array<i32>} : memref<1x1x8xf32, #tpu.memory_space<vmem>>, vector<1x1x8xf32>,
    return
  }
  func.func @transform_0(%arg0: i32) -> (i32, i32, i32, i32) {
    %c0_i32 = arith.constant 0 : i32
    %c0_i32_0 = arith.constant 0 : i32
    %c0_i32_1 = arith.constant 0 : i32
    %c0_i32_2 = arith.constant 0 : i32
    return %arg0, %c0_i32, %c0_i32_0, %c0_i32_1 : i32, i32, i32, i32
  }
  func.func @transform_1(%arg0: i32) -> (i32, i32) {
    %c0_i32 = arith.constant 0 : i32
    %c0_i32_0 = arith.constant 0 : i32
    %c0_i32_1 = arith.constant 0 : i32
    return %c0_i32, %c0_i32_0 : i32, i32
  }
  func.func @transform_2(%arg0: i32) -> (i32, i32) {
    %c0_i32 = arith.constant 0 : i32
    %c0_i32_0 = arith.constant 0 : i32
    %c0_i32_1 = arith.constant 0 : i32
    return %c0_i32, %c0_i32_0 : i32, i32
  }
  func.func @transform_3(%arg0: i32) -> (i32, i32, i32) {
    %c0_i32 = arith.constant 0 : i32
    %c0_i32_0 = arith.constant 0 : i32
    %c0_i32_1 = arith.constant 0 : i32
    %c0_i32_2 = arith.constant 0 : i32
    return %c0_i32, %c0_i32_0, %c0_i32_1 : i32, i32, i32
  }
  func.func @transform_4(%arg0: i32) -> (i32, i32) {
    %c0_i32 = arith.constant 0 : i32
    %c0_i32_0 = arith.constant 0 : i32
    %c0_i32_1 = arith.constant 0 : i32
    return %c0_i32, %c0_i32_0 : i32, i32
  }
  func.func @transform_5(%arg0: i32) -> (i32, i32, i32, i32) {
    %c0_i32 = arith.constant 0 : i32
    %c0_i32_0 = arith.constant 0 : i32
    %c0_i32_1 = arith.constant 0 : i32
    %c0_i32_2 = arith.constant 0 : i32
    return %arg0, %c0_i32, %c0_i32_0, %c0_i32_1 : i32, i32, i32, i32
  }
  func.func @transform_6(%arg0: i32) -> (i32, i32, i32) {
    %c0_i32 = arith.constant 0 : i32
    %c0_i32_0 = arith.constant 0 : i32
    %c0_i32_1 = arith.constant 0 : i32
    return %arg0, %c0_i32, %c0_i32_0 : i32, i32, i32
  }
  func.func @transform_7(%arg0: i32) -> (i32, i32, i32) {
    %c0_i32 = arith.constant 0 : i32
    %c0_i32_0 = arith.constant 0 : i32
    %c0_i32_1 = arith.constant 0 : i32
    return %arg0, %c0_i32, %c0_i32_0 : i32, i32, i32
  }
}

</mosaic_0001>

<bundles_post_ra>
// kernel: layer_forward.5
= control target key start
LH: loop header
LB: loop body
LE: loop exit
PB: predicated region body
PF: predicated region fallthrough
CT: control target
= control target key end

     0   :  { %s452_s12 = smov 0   ;;  %s643_s0 = inlined_call_operand.vmem [shape: f32[2,16,16,8], index: 0, kind: input, shape index: {}]   ;;  %s644_s1 = inlined_call_operand.vmem [shape: f32[1,8], index: 1, kind: input, shape index: {}]   ;;  %s645_s2 = inlined_call_operand.vmem [shape: f32[1,8], index: 2, kind: input, shape index: {}]   ;;  %s646_s3 = inlined_call_operand.vmem [shape: f32[2,16,16,8], index: 3, kind: output, shape index: {}]  }
   0x1 LB: > { %s401_s13 = sadd.s32 4294967295, %s430_s12   ;;  %p405_p0 = scmp.ge.s32.totalorder %s430_s12, 1  ;;  %s430_s12 = sphi %s452_s12, %s13_s12  }
   0x2   : > { %p137_p1 = scmp.lt.s32.totalorder %s430_s12, 3 }
   0x4   : > { %p138_p2 = pnand %p405_p0, %p137_p1 }
   0x5   : > { %p161_p3 = scmp.lt.s32.totalorder (!%p138_p2), %s401_s13, 1  ;;  %v463_v0 = vld [vmem:[%s644_s1] ss:$0 sm:$0xff] (!%p138_p2)  ;;  %vm313_vm0 = vcmask (!%p138_p2), 64512  }
   0x6   : > { %141 = sbr.rel (%p138_p2) target bundleno = 46 (0x2e), region = 32  ;;  %v473_v1 = vld [vmem:[%s645_s2] ss:$0 sm:$0xff] (!%p138_p2) }
   0xd   : > { %s648_s13 = smov (!%p161_p3, %s401_s13), 1 }
   0xe   : > { %s414_s14 = sshll.u32 %s648_s13, 8 }
   0xf   : > { %s468_s19 = scalar_lea.vmem %s643_s0, %s414_s14  ;;  %s496_s24 = scalar_lea.vmem %s646_s3, %s414_s14 }
  0x10   : > { %v171_v2 = vld [vmem:[%s468_s19] sm:$0xff]  ;;  %v172_v3 = vld [vmem:[%s468_s19 + $0x8] sm:$0xff]  ;;  %v173_v4 = vld [vmem:[%s468_s19 + $0x10] sm:$0xff] }
  0x11   : > { %v210_v5 = vmul.f32 %v463_v0, %v171_v2  ;;  %v211_v6 = vmul.f32 %v463_v0, %v172_v3  ;;  %v212_v7 = vmul.f32 %v463_v0, %v173_v4  ;;  %v174_v8 = vld [vmem:[%s468_s19 + $0x18] sm:$0xff]  ;;  %v175_v9 = vld [vmem:[%s468_s19 + $0x20] sm:$0xff]  ;;  %v176_v10 = vld [vmem:[%s468_s19 + $0x28] sm:$0xff] }
  0x12   : > { %v213_v11 = vmul.f32 %v463_v0, %v174_v8  ;;  %v214_v12 = vmul.f32 %v463_v0, %v175_v9  ;;  %v215_v13 = vmul.f32 %v463_v0, %v176_v10  ;;  %v177_v14 = vld [vmem:[%s468_s19 + $0x30] sm:$0xff]  ;;  %v178_v15 = vld [vmem:[%s468_s19 + $0x38] sm:$0xff]  ;;  %v179_v24 = vld [vmem:[%s468_s19 + $0x40] sm:$0xff] }
  0x13   : > { %v249_v16 = vadd.f32 %v473_v1, %v210_v5  ;;  %v250_v17 = vadd.f32 %v473_v1, %v211_v6  ;;  %v251_v18 = vadd.f32 %v473_v1, %v212_v7  ;;  %v216_v19 = vmul.f32 %v463_v0, %v177_v14  ;;  %v180_v25 = vld [vmem:[%s468_s19 + $0x48] sm:$0xff]  ;;  %v181_v26 = vld [vmem:[%s468_s19 + $0x50] sm:$0xff]  ;;  %v182_v31 = vld [vmem:[%s468_s19 + $0x58] sm:$0xff] }
  0x14   : > { %v252_v20 = vadd.f32 %v473_v1, %v213_v11  ;;  %v253_v21 = vadd.f32 %v473_v1, %v214_v12  ;;  %v254_v22 = vadd.f32 %v473_v1, %v215_v13  ;;  %v217_v23 = vmul.f32 %v463_v0, %v178_v15  ;;  %v183_v32 = vld [vmem:[%s468_s19 + $0x60] sm:$0xff]  ;;  %v184_v33 = vld [vmem:[%s468_s19 + $0x68] sm:$0xff]  ;;  %v185_v38 = vld [vmem:[%s468_s19 + $0x70] sm:$0xff] }
  0x15   : > { %v281_v27 = vmax.f32 %v249_v16, 0.0  ;;  %v282_v28 = vmax.f32 %v250_v17, 0.0  ;;  %v283_v29 = vmax.f32 %v251_v18, 0.0  ;;  %v255_v30 = vadd.f32 %v473_v1, %v216_v19  ;;  %v186_v43 = vld [vmem:[%s468_s19 + $0x78] sm:$0xff]  ;;  %v187_v56 = vld [vmem:[%s468_s19 + $0x80] sm:$0xff]  ;;  %v188_v57 = vld [vmem:[%s468_s19 + $0x88] sm:$0xff] }
  0x16   : > { %v284_v34 = vmax.f32 %v252_v20, 0.0  ;;  %v285_v35 = vmax.f32 %v253_v21, 0.0  ;;  %v286_v36 = vmax.f32 %v254_v22, 0.0  ;;  %v256_v37 = vadd.f32 %v473_v1, %v217_v23  ;;  %v189_v58 = vld [vmem:[%s468_s19 + $0x90] sm:$0xff]  ;;  %v190_v63 = vld [vmem:[%s468_s19 + $0x98] sm:$0xff]  ;;  %v191_v2 = vld [vmem:[%s468_s19 + $0xa0] sm:$0xff] }
  0x17   : > { %314 = vst.msk [vmem:[%s496_s24] sm:$0xff] %vm313_vm0, %v281_v27  ;;  %315 = vst.msk [vmem:[%s496_s24 + $0x8] sm:$0xff] %vm313_vm0, %v282_v28  ;;  %v287_v39 = vmax.f32 %v255_v30, 0.0  ;;  %v218_v40 = vmul.f32 %v463_v0, %v179_v24  ;;  %v219_v41 = vmul.f32 %v463_v0, %v180_v25  ;;  %v220_v42 = vmul.f32 %v463_v0, %v181_v26  ;;  %v192_v3 = vld [vmem:[%s468_s19 + $0xa8] sm:$0xff]  ;;  %v193_v8 = vld [vmem:[%s468_s19 + $0xb0] sm:$0xff] }
  0x18   : > { %316 = vst.msk [vmem:[%s496_s24 + $0x10] sm:$0xff] %vm313_vm0, %v283_v29  ;;  %317 = vst.msk [vmem:[%s496_s24 + $0x18] sm:$0xff] %vm313_vm0, %v284_v34  ;;  %v288_v44 = vmax.f32 %v256_v37, 0.0  ;;  %v221_v45 = vmul.f32 %v463_v0, %v182_v31  ;;  %v222_v46 = vmul.f32 %v463_v0, %v183_v32  ;;  %v223_v47 = vmul.f32 %v463_v0, %v184_v33  ;;  %v194_v13 = vld [vmem:[%s468_s19 + $0xb8] sm:$0xff]  ;;  %v195_v26 = vld [vmem:[%s468_s19 + $0xc0] sm:$0xff] }
  0x19   : > { %318 = vst.msk [vmem:[%s496_s24 + $0x20] sm:$0xff] %vm313_vm0, %v285_v35  ;;  %319 = vst.msk [vmem:[%s496_s24 + $0x28] sm:$0xff] %vm313_vm0, %v286_v36  ;;  %v257_v48 = vadd.f32 %v473_v1, %v218_v40  ;;  %v258_v49 = vadd.f32 %v473_v1, %v219_v41  ;;  %v259_v50 = vadd.f32 %v473_v1, %v220_v42  ;;  %v196_v27 = vld [vmem:[%s468_s19 + $0xc8] sm:$0xff]  ;;  %v197_v28 = vld [vmem:[%s468_s19 + $0xd0] sm:$0xff] }
  0x1a   : > { %320 = vst.msk [vmem:[%s496_s24 + $0x30] sm:$0xff] %vm313_vm0, %v287_v39  ;;  %v224_v51 = vmul.f32 %v463_v0, %v185_v38  ;;  %321 = vst.msk [vmem:[%s496_s24 + $0x38] sm:$0xff] %vm313_vm0, %v288_v44  ;;  %v260_v52 = vadd.f32 %v473_v1, %v221_v45  ;;  %v261_v53 = vadd.f32 %v473_v1, %v222_v46  ;;  %v198_v33 = vld [vmem:[%s468_s19 + $0xd8] sm:$0xff]  ;;  %v199_v34 = vld [vmem:[%s468_s19 + $0xe0] sm:$0xff] }
  0x1b   : > { %v262_v54 = vadd.f32 %v473_v1, %v223_v47  ;;  %v225_v55 = vmul.f32 %v463_v0, %v186_v43  ;;  %v289_v59 = vmax.f32 %v257_v48, 0.0  ;;  %v290_v60 = vmax.f32 %v258_v49, 0.0  ;;  %v200_v35 = vld [vmem:[%s468_s19 + $0xe8] sm:$0xff]  ;;  %v201_v40 = vld [vmem:[%s468_s19 + $0xf0] sm:$0xff]  ;;  %v202_v45 = vld [vmem:[%s468_s19 + $0xf8] sm:$0xff] }
  0x1c   : > { %v291_v61 = vmax.f32 %v259_v50, 0.0  ;;  %v263_v62 = vadd.f32 %v473_v1, %v224_v51  ;;  %v292_v4 = vmax.f32 %v260_v52, 0.0  ;;  %v293_v5 = vmax.f32 %v261_v53, 0.0 }
  0x1d   : > { %v294_v6 = vmax.f32 %v262_v54, 0.0  ;;  %v264_v7 = vadd.f32 %v473_v1, %v225_v55  ;;  %322 = vst.msk [vmem:[%s496_s24 + $0x40] sm:$0xff] %vm313_vm0, %v289_v59  ;;  %323 = vst.msk [vmem:[%s496_s24 + $0x48] sm:$0xff] %vm313_vm0, %v290_v60  ;;  %v226_v10 = vmul.f32 %v463_v0, %v187_v56  ;;  %v227_v11 = vmul.f32 %v463_v0, %v188_v57 }
  0x1e   : > { %324 = vst.msk [vmem:[%s496_s24 + $0x50] sm:$0xff] %vm313_vm0, %v291_v61  ;;  %v295_v9 = vmax.f32 %v263_v62, 0.0  ;;  %v228_v12 = vmul.f32 %v463_v0, %v189_v58  ;;  %325 = vst.msk [vmem:[%s496_s24 + $0x58] sm:$0xff] %vm313_vm0, %v292_v4  ;;  %v229_v15 = vmul.f32 %v463_v0, %v190_v63  ;;  %v230_v16 = vmul.f32 %v463_v0, %v191_v2 }
  0x1f   : > { %326 = vst.msk [vmem:[%s496_s24 + $0x60] sm:$0xff] %vm313_vm0, %v293_v5  ;;  %327 = vst.msk [vmem:[%s496_s24 + $0x68] sm:$0xff] %vm313_vm0, %v294_v6  ;;  %v296_v14 = vmax.f32 %v264_v7, 0.0  ;;  %v231_v17 = vmul.f32 %v463_v0, %v192_v3  ;;  %v265_v18 = vadd.f32 %v473_v1, %v226_v10  ;;  %v266_v19 = vadd.f32 %v473_v1, %v227_v11 }
  0x20   : > { %328 = vst.msk [vmem:[%s496_s24 + $0x70] sm:$0xff] %vm313_vm0, %v295_v9  ;;  %v267_v20 = vadd.f32 %v473_v1, %v228_v12  ;;  %v232_v21 = vmul.f32 %v463_v0, %v193_v8  ;;  %v268_v22 = vadd.f32 %v473_v1, %v229_v15  ;;  %v269_v23 = vadd.f32 %v473_v1, %v230_v16 }
  0x21   : > { %329 = vst.msk [vmem:[%s496_s24 + $0x78] sm:$0xff] %vm313_vm0, %v296_v14  ;;  %v270_v24 = vadd.f32 %v473_v1, %v231_v17  ;;  %v233_v25 = vmul.f32 %v463_v0, %v194_v13  ;;  %v297_v29 = vmax.f32 %v265_v18, 0.0  ;;  %v298_v30 = vmax.f32 %v266_v19, 0.0 }
  0x22   : > { %v299_v31 = vmax.f32 %v267_v20, 0.0  ;;  %v271_v32 = vadd.f32 %v473_v1, %v232_v21  ;;  %v300_v36 = vmax.f32 %v268_v22, 0.0  ;;  %v301_v37 = vmax.f32 %v269_v23, 0.0 }
  0x23   : > { %v302_v38 = vmax.f32 %v270_v24, 0.0  ;;  %v272_v39 = vadd.f32 %v473_v1, %v233_v25  ;;  %330 = vst.msk [vmem:[%s496_s24 + $0x80] sm:$0xff] %vm313_vm0, %v297_v29  ;;  %331 = vst.msk [vmem:[%s496_s24 + $0x88] sm:$0xff] %vm313_vm0, %v298_v30  ;;  %v234_v42 = vmul.f32 %v463_v0, %v195_v26  ;;  %v235_v43 = vmul.f32 %v463_v0, %v196_v27 }
  0x24   : > { %332 = vst.msk [vmem:[%s496_s24 + $0x90] sm:$0xff] %vm313_vm0, %v299_v31  ;;  %v303_v41 = vmax.f32 %v271_v32, 0.0  ;;  %v236_v44 = vmul.f32 %v463_v0, %v197_v28  ;;  %333 = vst.msk [vmem:[%s496_s24 + $0x98] sm:$0xff] %vm313_vm0, %v300_v36  ;;  %v237_v47 = vmul.f32 %v463_v0, %v198_v33  ;;  %v238_v48 = vmul.f32 %v463_v0, %v199_v34 }
  0x25   : > { %334 = vst.msk [vmem:[%s496_s24 + $0xa0] sm:$0xff] %vm313_vm0, %v301_v37  ;;  %335 = vst.msk [vmem:[%s496_s24 + $0xa8] sm:$0xff] %vm313_vm0, %v302_v38  ;;  %v304_v46 = vmax.f32 %v272_v39, 0.0  ;;  %v239_v49 = vmul.f32 %v463_v0, %v200_v35  ;;  %v273_v50 = vadd.f32 %v473_v1, %v234_v42  ;;  %v274_v51 = vadd.f32 %v473_v1, %v235_v43 }
  0x26   : > { %336 = vst.msk [vmem:[%s496_s24 + $0xb0] sm:$0xff] %vm313_vm0, %v303_v41  ;;  %v275_v52 = vadd.f32 %v473_v1, %v236_v44  ;;  %v240_v53 = vmul.f32 %v463_v0, %v201_v40  ;;  %v276_v54 = vadd.f32 %v473_v1, %v237_v47  ;;  %v277_v55 = vadd.f32 %v473_v1, %v238_v48 }
  0x27   : > { %337 = vst.msk [vmem:[%s496_s24 + $0xb8] sm:$0xff] %vm313_vm0, %v304_v46  ;;  %v278_v56 = vadd.f32 %v473_v1, %v239_v49  ;;  %v241_v57 = vmul.f32 %v463_v0, %v202_v45  ;;  %v305_v58 = vmax.f32 %v273_v50, 0.0  ;;  %v306_v59 = vmax.f32 %v274_v51, 0.0 }
  0x28   : > { %v307_v60 = vmax.f32 %v275_v52, 0.0  ;;  %v279_v61 = vadd.f32 %v473_v1, %v240_v53  ;;  %v308_v62 = vmax.f32 %v276_v54, 0.0  ;;  %v309_v63 = vmax.f32 %v277_v55, 0.0 }
  0x29   : > { %v310_v2 = vmax.f32 %v278_v56, 0.0  ;;  %v280_v3 = vadd.f32 %v473_v1, %v241_v57  ;;  %338 = vst.msk [vmem:[%s496_s24 + $0xc0] sm:$0xff] %vm313_vm0, %v305_v58  ;;  %339 = vst.msk [vmem:[%s496_s24 + $0xc8] sm:$0xff] %vm313_vm0, %v306_v59 }
  0x2a   : > { %340 = vst.msk [vmem:[%s496_s24 + $0xd0] sm:$0xff] %vm313_vm0, %v307_v60  ;;  %v311_v4 = vmax.f32 %v279_v61, 0.0  ;;  %341 = vst.msk [vmem:[%s496_s24 + $0xd8] sm:$0xff] %vm313_vm0, %v308_v62 }
  0x2b   : > { %342 = vst.msk [vmem:[%s496_s24 + $0xe0] sm:$0xff] %vm313_vm0, %v309_v63  ;;  %343 = vst.msk [vmem:[%s496_s24 + $0xe8] sm:$0xff] %vm313_vm0, %v310_v2  ;;  %v312_v0 = vmax.f32 %v280_v3, 0.0 }
  0x2c   : > { %344 = vst.msk [vmem:[%s496_s24 + $0xf0] sm:$0xff] %vm313_vm0, %v311_v4 }
  0x2d   : > { %345 = vst.msk [vmem:[%s496_s24 + $0xf8] sm:$0xff] %vm313_vm0, %v312_v0 }
  0x2e PF: > { %s13_s12 = sadd.s32 1, %s430_s12  }
  0x2f   : > { %p10_p4 = scmp.ge.s32.totalorder %s13_s12, 4  }
  0x31   :  { %12 = sbr.rel (!%p10_p4) target bundleno = 1 (0x1), region = 62 }

// kernel: layer_forward.3
= control target key start
LH: loop header
LB: loop body
LE: loop exit
PB: predicated region body
PF: predicated region fallthrough
CT: control target
= control target key end

     0   :  { %s2534_s24 = smov 0   ;;  %s3493_s0 = inlined_call_operand.vmem [shape: f32[2,16,16,4], index: 0, kind: input, shape index: {}]   ;;  %s3494_s1 = inlined_call_operand.vmem [shape: f32[1,4], index: 1, kind: input, shape index: {}]   ;;  %s3495_s2 = inlined_call_operand.vmem [shape: f32[1,4], index: 2, kind: input, shape index: {}]   ;;  %s3496_s3 = inlined_call_operand.vmem [shape: bf16[3,12,8], index: 3, kind: input, shape index: {}]   ;;  %s3497_s4 = inlined_call_operand.vmem [shape: f32[1,8], index: 4, kind: input, shape index: {}]   ;;  %s3498_s5 = inlined_call_operand.vmem [shape: f32[2,16,16,8], index: 5, kind: output, shape index: {0}]   ;;  %s3499_s6 = inlined_call_operand.vmem [shape: f32[2,1,8], index: 6, kind: output, shape index: {1}]   ;;  %s3500_s7 = inlined_call_operand.vmem [shape: f32[2,1,8], index: 7, kind: output, shape index: {2}]  }
   0x1 LB: > { %s1985_s1 = sadd.s32 4294967295, %s2489_s24   ;;  %p1989_p0 = scmp.ge.s32.totalorder %s2489_s24, 1  ;;  %s2489_s24 = sphi %s2534_s24, %s18_s24  }
   0x2   : > { %p242_p1 = scmp.lt.s32.totalorder %s2489_s24, 3 }
   0x4   : > { %p243_p2 = pnand %p1989_p0, %p242_p1 }
   0x5   : > { %p280_p3 = scmp.lt.s32.totalorder (!%p243_p2), %s1985_s1, 1  ;;  %vm361_vm0 = vcmask (!%p243_p2), 1040384   ;;  %vm712_vm1 = vcmask (!%p243_p2), 1045504   ;;  %v2491_v2 = vmov (!%p243_p2), 0.0   ;;  %vm530_vm2 = vcmask (!%p243_p2), 1046528   ;;  %s2492_s28 = smov (!%p243_p2), 8  }
   0x6   : > { %246 = sbr.rel (%p243_p2) target bundleno = 566 (0x236), region = 40  ;;  %v713_v3 = vrot.slane (!%p243_p2), %v2491_v2, 2  ;;  %v531_v11 = vrot.slane (!%p243_p2), %v2491_v2, 1  ;;  %s2493_s29 = smov (!%p243_p2), 4   ;;  %v2604_v53 = vld [vmem:[%s3496_s3] sm:$0x3f] (!%p243_p2)  }
   0x7   : > { %v2612_v58 = vld [vmem:[%s3496_s3 + $0x8] sm:$0x3f] (!%p243_p2)   ;;  %2305 = vmatprep.subr.msk.bf16.mxu1 (!%p243_p2), %vm712_vm1, %v2604_v53  ;;  %vm894_vm3 = vcmask (!%p243_p2), 31744   ;;  %vm928_vm4 = vcmask (!%p243_p2), 64512   ;;  %vm986_vm5 = vcmask (!%p243_p2), 97280   ;;  %vm1743_vm6 = vcmask (!%p243_p2), 57344  }
   0x8   : > { %2306 = vmatprep.subr.msk.bf16.mxu0 (!%p243_p2), %vm712_vm1, %v2612_v58 }
   0xd   : > { %s3502_s1 = smov (!%p280_p3, %s1985_s1), 1 }
   0xe   : > { %s2052_s2 = sshll.u32 %s3502_s1, 8  ;;  %s292_s20 = scalar_lea.vmem %s3499_s6, %s3502_s1 }
   0xf   : > { %s2550_s27 = scalar_lea.vmem %s3493_s0, %s2052_s2  ;;  %s3100_s17 = scalar_lea.vmem %s3498_s5, %s2052_s2 }
  0x10   : > { %v297_v0 = vld [vmem:[%s2550_s27] sm:$0xff]  ;;  %v298_v1 = vld [vmem:[%s2550_s27 + $0x8] sm:$0xff]  ;;  %v299_v4 = vld [vmem:[%s2550_s27 + $0x10] sm:$0xff]  ;;  %s295_s23 = scalar_lea.vmem %s3500_s7, %s3502_s1 }
  0x11   : > { %v362_v5 = vrot.slane %v297_v0, 7  ;;  %v363_v6 = vrot.slane %v298_v1, 7  ;;  %v300_v7 = vld [vmem:[%s2550_s27 + $0x18] sm:$0xff]  ;;  %v365_v8 = vrot.slane %v299_v4, 7  ;;  %v301_v9 = vld [vmem:[%s2550_s27 + $0x20] sm:$0xff]  ;;  %v302_v10 = vld [vmem:[%s2550_s27 + $0x28] sm:$0xff] }
  0x12   : > { %v366_v12 = vrot.slane %v300_v7, 7  ;;  %v368_v13 = vrot.slane %v301_v9, 7  ;;  %v369_v14 = vrot.slane %v302_v10, 7  ;;  %v303_v39 = vld [vmem:[%s2550_s27 + $0x30] sm:$0xff]  ;;  %v304_v44 = vld [vmem:[%s2550_s27 + $0x38] sm:$0xff]  ;;  %v305_v63 = vld [vmem:[%s2550_s27 + $0x40] sm:$0xff] }
  0x13   : > { %v2559_v15 = vsel %vm361_vm0, %v362_v5, %v363_v6  ;;  %v2562_v16 = vsel %vm361_vm0, 0.0, %v362_v5  ;;  %v2565_v17 = vsel %vm361_vm0, 0.0, %v365_v8  ;;  %v474_v18 = vsel %vm361_vm0, %v363_v6, 0.0  ;;  %v306_v0 = vld [vmem:[%s2550_s27 + $0x48] sm:$0xff] }
  0x14   : > { %v715_v19 = vrot.slane %v2562_v16, 2  ;;  %v716_v20 = vrot.slane %v2559_v15, 2  ;;  %v533_v21 = vrot.slane %v2562_v16, 1  ;;  %v534_v22 = vrot.slane %v2559_v15, 1 }
  0x15   : > { %v2573_v23 = vsel %vm361_vm0, %v365_v8, %v366_v12  ;;  %v718_v24 = vrot.slane %v474_v18, 2  ;;  %v720_v25 = vrot.slane %v2565_v17, 2  ;;  %v536_v26 = vrot.slane %v474_v18, 1 }
  0x16   : > { %v717_v27 = vsel %vm712_vm1, %v715_v19, %v716_v20  ;;  %v535_v28 = vsel %vm530_vm2, %v533_v21, %v534_v22  ;;  %v721_v29 = vrot.slane %v2573_v23, 2  ;;  %v538_v30 = vrot.slane %v2565_v17, 1  ;;  %v308_v21 = vld [vmem:[%s2550_s27 + $0x58] sm:$0xff] }
  0x17   : > { %v2330_v31 = vpack.i.bf16 %v717_v27, %v713_v3  ;;  %v2320_v32 = vpack.i.bf16 %v535_v28, %v531_v11  ;;  %v719_v33 = vsel %vm712_vm1, %v716_v20, %v718_v24  ;;  %v537_v34 = vsel %vm530_vm2, %v534_v22, %v536_v26  ;;  %v307_v20 = vld [vmem:[%s2550_s27 + $0x50] sm:$0xff]  ;;  %v309_v27 = vld [vmem:[%s2550_s27 + $0x60] sm:$0xff]  ;;  %v310_v28 = vld [vmem:[%s2550_s27 + $0x68] sm:$0xff] }
  0x18   : > { %v722_v35 = vsel %vm712_vm1, %v720_v25, %v721_v29  ;;  %v539_v36 = vrot.slane %v2573_v23, 1  ;;  %v2585_v37 = vsel %vm361_vm0, %v368_v13, %v369_v14  ;;  %v2588_v38 = vsel %vm361_vm0, 0.0, %v368_v13 }
  0x19   : > { %2331 = vrot.lane.b32.xlu1 %v2330_v31, %s2492_s28  ;;  %2321 = vrot.lane.b32.xlu0 %v2320_v32, %s2493_s29  ;;  %v2335_v40 = vpack.i.bf16 %v722_v35, %v719_v33  ;;  %v475_v41 = vsel %vm361_vm0, %v366_v12, 0.0  ;;  %v725_v42 = vrot.slane %v2588_v38, 2  ;;  %v726_v43 = vrot.slane %v2585_v37, 2 }
  0x1a   : > { %v540_v45 = vsel %vm530_vm2, %v538_v30, %v539_v36  ;;  %v723_v46 = vrot.slane %v475_v41, 2  ;;  %v541_v47 = vrot.slane %v475_v41, 1  ;;  %v543_v48 = vrot.slane %v2588_v38, 1 }
  0x1b   : > { %v2325_v49 = vpack.i.bf16 %v540_v45, %v537_v34  ;;  %v727_v50 = vsel %vm712_vm1, %v725_v42, %v726_v43  ;;  %v544_v51 = vrot.slane %v2585_v37, 1  ;;  %v371_v52 = vrot.slane %v303_v39, 7 }
  0x1c   : > { %v724_v54 = vsel %vm712_vm1, %v721_v29, %v723_v46  ;;  %v542_v55 = vsel %vm530_vm2, %v539_v36, %v541_v47  ;;  %v372_v56 = vrot.slane %v304_v44, 7  ;;  %v476_v57 = vsel %vm361_vm0, %v369_v14, 0.0 }
  0x1d   : > { %2336 = vrot.lane.b32.xlu1 %v2335_v40, %s2492_s28  ;;  %2326 = vrot.lane.b32.xlu0 %v2325_v49, %s2493_s29  ;;  %v2345_v59 = vpack.i.bf16 %v727_v50, %v724_v54  ;;  %v545_v60 = vsel %vm530_vm2, %v543_v48, %v544_v51  ;;  %v2618_v61 = vsel %vm361_vm0, 0.0, %v371_v52  ;;  %v728_v62 = vrot.slane %v476_v57, 2 }
  0x1e   : > { %v2340_v1 = vpack.i.bf16 %v545_v60, %v542_v55  ;;  %v2623_v2 = vsel %vm361_vm0, %v371_v52, %v372_v56  ;;  %v730_v3 = vrot.slane %v2618_v61, 2  ;;  %v546_v4 = vrot.slane %v476_v57, 1 }
  0x1f   : > { %v729_v5 = vsel %vm712_vm1, %v726_v43, %v728_v62  ;;  %v731_v6 = vrot.slane %v2623_v2, 2  ;;  %v548_v7 = vrot.slane %v2618_v61, 1  ;;  %v549_v8 = vrot.slane %v2623_v2, 1  ;;  %v311_v62 = vld [vmem:[%s2550_s27 + $0x70] sm:$0xff] }
  0x20   : > { %v547_v9 = vsel %vm530_vm2, %v544_v51, %v546_v4  ;;  %v374_v10 = vrot.slane %v305_v63, 7  ;;  %v375_v11 = vrot.slane %v306_v0, 7  ;;  %v477_v12 = vsel %vm361_vm0, %v372_v56, 0.0  ;;  %v312_v4 = vld [vmem:[%s2550_s27 + $0x78] sm:$0xff] }
  0x21   : > { %2346 = vrot.lane.b32.xlu1 %v2345_v59, %s2492_s28  ;;  %2341 = vrot.lane.b32.xlu0 %v2340_v1, %s2493_s29  ;;  %v732_v13 = vsel %vm712_vm1, %v730_v3, %v731_v6  ;;  %v550_v14 = vsel %vm530_vm2, %v548_v7, %v549_v8  ;;  %v733_v18 = vrot.slane %v477_v12, 2  ;;  %v551_v19 = vrot.slane %v477_v12, 1 }
  0x22   : > { %v2355_v22 = vpack.i.bf16 %v732_v13, %v729_v5  ;;  %v2350_v24 = vpack.i.bf16 %v550_v14, %v547_v9  ;;  %v2643_v25 = vsel %vm361_vm0, %v374_v10, %v375_v11  ;;  %v2646_v26 = vsel %vm361_vm0, 0.0, %v374_v10 }
  0x23   : > { %v734_v29 = vsel %vm712_vm1, %v731_v6, %v733_v18  ;;  %v735_v30 = vrot.slane %v2646_v26, 2  ;;  %v736_v31 = vrot.slane %v2643_v25, 2  ;;  %v552_v32 = vsel %vm530_vm2, %v549_v8, %v551_v19 }
  0x24   : > { %v553_v33 = vrot.slane %v2646_v26, 1  ;;  %v554_v34 = vrot.slane %v2643_v25, 1  ;;  %v377_v35 = vrot.slane %v307_v20, 7  ;;  %v378_v36 = vrot.slane %v308_v21, 7 }
  0x25   : > { %2356 = vrot.lane.b32.xlu1 %v2355_v22, %s2492_s28  ;;  %2351 = vrot.lane.b32.xlu0 %v2350_v24, %s2493_s29  ;;  %v737_v39 = vsel %vm712_vm1, %v735_v30, %v736_v31  ;;  %v478_v40 = vsel %vm361_vm0, %v375_v11, 0.0  ;;  %v380_v41 = vrot.slane %v309_v27, 7  ;;  %v381_v42 = vrot.slane %v310_v28, 7  ;;  %v313_v27 = vld [vmem:[%s2550_s27 + $0x80] sm:$0xff]  ;;  %v314_v28 = vld [vmem:[%s2550_s27 + $0x88] sm:$0xff] }
  0x26   : > { %v2365_v43 = vpack.i.bf16 %v737_v39, %v734_v29  ;;  %v555_v44 = vsel %vm530_vm2, %v553_v33, %v554_v34  ;;  %v2662_v45 = vsel %vm361_vm0, %v377_v35, %v378_v36  ;;  %v2665_v46 = vsel %vm361_vm0, 0.0, %v377_v35 }
  0x27   : > { %v2360_v47 = vpack.i.bf16 %v555_v44, %v552_v32  ;;  %v738_v48 = vrot.slane %v478_v40, 2  ;;  %v740_v49 = vrot.slane %v2665_v46, 2  ;;  %v741_v50 = vrot.slane %v2662_v45, 2 }
  0x28   : > { %v556_v51 = vrot.slane %v478_v40, 1  ;;  %v558_v52 = vrot.slane %v2665_v46, 1  ;;  %v559_v54 = vrot.slane %v2662_v45, 1  ;;  %v2672_v55 = vsel %vm361_vm0, %v380_v41, %v381_v42 }
  0x29   : > { %2366 = vrot.lane.b32.xlu1 %v2365_v43, %s2492_s28  ;;  %2361 = vrot.lane.b32.xlu0 %v2360_v47, %s2493_s29  ;;  %v739_v56 = vsel %vm712_vm1, %v736_v31, %v738_v48  ;;  %v742_v57 = vsel %vm712_vm1, %v740_v49, %v741_v50  ;;  %v2679_v59 = vsel %vm361_vm0, 0.0, %v380_v41  ;;  %v479_v60 = vsel %vm361_vm0, %v378_v36, 0.0  ;;  %v315_v49 = vld [vmem:[%s2550_s27 + $0x90] sm:$0xff] }
  0x2a   : > { %v2375_v63 = vpack.i.bf16 %v742_v57, %v739_v56  ;;  %v557_v0 = vsel %vm530_vm2, %v554_v34, %v556_v51  ;;  %v560_v1 = vsel %vm530_vm2, %v558_v52, %v559_v54  ;;  %v743_v3 = vrot.slane %v479_v60, 2  ;;  %v317_v57 = vld [vmem:[%s2550_s27 + $0xa0] sm:$0xff] }
  0x2b   : > { %v2370_v5 = vpack.i.bf16 %v560_v1, %v557_v0  ;;  %v745_v6 = vrot.slane %v2679_v59, 2  ;;  %v746_v7 = vrot.slane %v2672_v55, 2  ;;  %v561_v8 = vrot.slane %v479_v60, 1  ;;  %v318_v60 = vld [vmem:[%s2550_s27 + $0xa8] sm:$0xff] }
  0x2c   : > { %v744_v9 = vsel %vm712_vm1, %v741_v50, %v743_v3  ;;  %v563_v10 = vrot.slane %v2679_v59, 1  ;;  %v564_v11 = vrot.slane %v2672_v55, 1  ;;  %v383_v12 = vrot.slane %v311_v62, 7  ;;  %v316_v50 = vld [vmem:[%s2550_s27 + $0x98] sm:$0xff] }
  0x2d   : > { %2376 = vrot.lane.b32.xlu1 %v2375_v63, %s2492_s28  ;;  %2371 = vrot.lane.b32.xlu0 %v2370_v5, %s2493_s29  ;;  %v747_v13 = vsel %vm712_vm1, %v745_v6, %v746_v7  ;;  %v562_v14 = vsel %vm530_vm2, %v559_v54, %v561_v8  ;;  %v384_v18 = vrot.slane %v312_v4, 7  ;;  %v480_v19 = vsel %vm361_vm0, %v381_v42, 0.0 }
  0x2e   : > { %v2385_v20 = vpack.i.bf16 %v747_v13, %v744_v9  ;;  %v565_v21 = vsel %vm530_vm2, %v563_v10, %v564_v11  ;;  %v2698_v22 = vsel %vm361_vm0, 0.0, %v383_v12  ;;  %v748_v24 = vrot.slane %v480_v19, 2 }
  0x2f   : > { %v2380_v29 = vpack.i.bf16 %v565_v21, %v562_v14  ;;  %v2703_v30 = vsel %vm361_vm0, %v383_v12, %v384_v18  ;;  %v750_v31 = vrot.slane %v2698_v22, 2  ;;  %v566_v32 = vrot.slane %v480_v19, 1  ;;  %v2745_v19 = vld [vmem:[%s2550_s27 + $0xb8] sm:$0xff] }
  0x30   : > { %v749_v33 = vsel %vm712_vm1, %v746_v7, %v748_v24  ;;  %v751_v34 = vrot.slane %v2703_v30, 2  ;;  %v568_v35 = vrot.slane %v2698_v22, 1  ;;  %v569_v36 = vrot.slane %v2703_v30, 1 }
  0x31   : > { %2386 = vrot.lane.b32.xlu1 %v2385_v20, %s2492_s28  ;;  %2381 = vrot.lane.b32.xlu0 %v2380_v29, %s2493_s29  ;;  %v567_v39 = vsel %vm530_vm2, %v564_v11, %v566_v32  ;;  %v386_v40 = vrot.slane %v313_v27, 7  ;;  %v387_v41 = vrot.slane %v314_v28, 7  ;;  %v481_v42 = vsel %vm361_vm0, %v384_v18, 0.0  ;;  %v319_v18 = vld [vmem:[%s2550_s27 + $0xb0] sm:$0xff] }
  0x32   : > { %v752_v43 = vsel %vm712_vm1, %v750_v31, %v751_v34  ;;  %v570_v44 = vsel %vm530_vm2, %v568_v35, %v569_v36  ;;  %v753_v47 = vrot.slane %v481_v42, 2  ;;  %v571_v48 = vrot.slane %v481_v42, 1 }
  0x33   : > { %v2395_v51 = vpack.i.bf16 %v752_v43, %v749_v33  ;;  %v2390_v52 = vpack.i.bf16 %v570_v44, %v567_v39  ;;  %v2719_v54 = vsel %vm361_vm0, %v386_v40, %v387_v41  ;;  %v2722_v56 = vsel %vm361_vm0, 0.0, %v386_v40 }
  0x34   : > { %v754_v62 = vsel %vm712_vm1, %v751_v34, %v753_v47  ;;  %v755_v63 = vrot.slane %v2722_v56, 2  ;;  %v756_v0 = vrot.slane %v2719_v54, 2  ;;  %v572_v1 = vsel %vm530_vm2, %v569_v36, %v571_v48 }
  0x35   : > { %2396 = vrot.lane.b32.xlu1 %v2395_v51, %s2492_s28  ;;  %2391 = vrot.lane.b32.xlu0 %v2390_v52, %s2493_s29  ;;  %v573_v3 = vrot.slane %v2722_v56, 1  ;;  %v574_v4 = vrot.slane %v2719_v54, 1  ;;  %v389_v5 = vrot.slane %v315_v49, 7  ;;  %v390_v6 = vrot.slane %v316_v50, 7 }
  0x36   : > { %v757_v7 = vsel %vm712_vm1, %v755_v63, %v756_v0  ;;  %v482_v8 = vsel %vm361_vm0, %v387_v41, 0.0  ;;  %v392_v9 = vrot.slane %v317_v57, 7  ;;  %v393_v10 = vrot.slane %v318_v60, 7 }
  0x37   : > { %v2405_v11 = vpack.i.bf16 %v757_v7, %v754_v62  ;;  %v575_v12 = vsel %vm530_vm2, %v573_v3, %v574_v4  ;;  %v2738_v13 = vsel %vm361_vm0, %v389_v5, %v390_v6  ;;  %v2741_v14 = vsel %vm361_vm0, 0.0, %v389_v5  ;;  %v322_v7 = vld [vmem:[%s2550_s27 + $0xc8] sm:$0xff] }
  0x38   : > { %v2400_v20 = vpack.i.bf16 %v575_v12, %v572_v1  ;;  %v758_v21 = vrot.slane %v482_v8, 2  ;;  %v760_v24 = vrot.slane %v2741_v14, 2  ;;  %v761_v27 = vrot.slane %v2738_v13, 2  ;;  %v324_v12 = vld [vmem:[%s2550_s27 + $0xd8] sm:$0xff] }
  0x39   : > { %2406 = vrot.lane.b32.xlu1 %v2405_v11, %s2492_s28  ;;  %v576_v28 = vrot.slane %v482_v8, 1  ;;  %v578_v29 = vrot.slane %v2741_v14, 1  ;;  %v579_v31 = vrot.slane %v2738_v13, 1  ;;  %v2753_v32 = vsel %vm361_vm0, %v392_v9, %v393_v10  ;;  %v323_v8 = vld [vmem:[%s2550_s27 + $0xd0] sm:$0xff] }
  0x3a   : > { %2401 = vrot.lane.b32.xlu0 %v2400_v20, %s2493_s29  ;;  %v759_v33 = vsel %vm712_vm1, %v756_v0, %v758_v21  ;;  %v762_v34 = vsel %vm712_vm1, %v760_v24, %v761_v27  ;;  %v395_v35 = vrot.slane %v319_v18, 7  ;;  %v396_v36 = vrot.slane %v2745_v19, 7  ;;  %v321_v0 = vld [vmem:[%s2550_s27 + $0xc0] sm:$0xff] }
  0x3b   : > { %v2415_v39 = vpack.i.bf16 %v762_v34, %v759_v33  ;;  %v577_v40 = vsel %vm530_vm2, %v574_v4, %v576_v28  ;;  %v580_v41 = vsel %vm530_vm2, %v578_v29, %v579_v31  ;;  %v484_v42 = vsel %vm361_vm0, %v393_v10, 0.0 }
  0x3c   : > { %v2410_v43 = vpack.i.bf16 %v580_v41, %v577_v40  ;;  %v2763_v44 = vsel %vm361_vm0, %v395_v35, %v396_v36  ;;  %v2766_v47 = vsel %vm361_vm0, 0.0, %v395_v35  ;;  %v584_v48 = vrot.slane %v2753_v32, 1 }
  0x3d   : > { %2416 = vrot.lane.b32.xlu1 %v2415_v39, %s2492_s28  ;;  %v586_v49 = vrot.slane %v484_v42, 1  ;;  %v588_v50 = vrot.slane %v2766_v47, 1  ;;  %v589_v51 = vrot.slane %v2763_v44, 1  ;;  %v2773_v52 = vsel %vm361_vm0, 0.0, %v392_v9 }
  0x3e   : > { %2411 = vrot.lane.b32.xlu0 %v2410_v43, %s2493_s29  ;;  %v483_v57 = vsel %vm361_vm0, %v390_v6, 0.0  ;;  %v583_v60 = vrot.slane %v2773_v52, 1  ;;  %v766_v62 = vrot.slane %v2753_v32, 2  ;;  %v768_v63 = vrot.slane %v484_v42, 2 }
  0x3f   : > { %v587_v1 = vsel %vm530_vm2, %v584_v48, %v586_v49  ;;  %v590_v3 = vsel %vm530_vm2, %v588_v50, %v589_v51  ;;  %v581_v4 = vrot.slane %v483_v57, 1  ;;  %v770_v5 = vrot.slane %v2766_v47, 2 }
  0x40   : > { %v2425_v9 = vpack.i.bf16 %v590_v3, %v587_v1  ;;  %v585_v10 = vsel %vm530_vm2, %v583_v60, %v584_v48  ;;  %v769_v6 = vsel %vm712_vm1, %v766_v62, %v768_v63  ;;  %v771_v11 = vrot.slane %v2763_v44, 2 }
  0x41   : > { %v582_v18 = vsel %vm530_vm2, %v579_v31, %v581_v4  ;;  %v763_v19 = vrot.slane %v483_v57, 2  ;;  %v765_v20 = vrot.slane %v2773_v52, 2  ;;  %v398_v21 = vrot.slane %v321_v0, 7  ;;  %v325_v57 = vld [vmem:[%s2550_s27 + $0xe0] sm:$0xff] }
  0x42   : > { %2426 = vrot.lane.b32.xlu1 %v2425_v9, %s2493_s29  ;;  %v2420_v24 = vpack.i.bf16 %v585_v10, %v582_v18  ;;  %v772_v28 = vsel %vm712_vm1, %v770_v5, %v771_v11  ;;  %v399_v29 = vrot.slane %v322_v7, 7  ;;  %v401_v33 = vrot.slane %v323_v8, 7  ;;  %v326_v7 = vld [vmem:[%s2550_s27 + $0xe8] sm:$0xff] }
  0x43   : > { %v2435_v34 = vpack.i.bf16 %v772_v28, %v769_v6  ;;  %v764_v35 = vsel %vm712_vm1, %v761_v27, %v763_v19  ;;  %v767_v39 = vsel %vm712_vm1, %v765_v20, %v766_v62  ;;  %v402_v40 = vrot.slane %v324_v12, 7 }
  0x44   : > { %2421 = vrot.lane.b32.xlu0 %v2420_v24, %s2493_s29  ;;  %v2430_v31 = vpack.i.bf16 %v767_v39, %v764_v35  ;;  %v2797_v41 = vsel %vm361_vm0, %v398_v21, %v399_v29  ;;  %v2800_v42 = vsel %vm361_vm0, 0.0, %v401_v33  ;;  %v486_v43 = vsel %vm361_vm0, %v399_v29, 0.0 }
  0x45   : > { %v2804_v48 = vsel %vm361_vm0, %v401_v33, %v402_v40  ;;  %v594_v27 = vrot.slane %v2797_v41, 1  ;;  %v596_v49 = vrot.slane %v486_v43, 1  ;;  %v598_v50 = vrot.slane %v2800_v42, 1 }
  0x46   : > { %2436 = vrot.lane.b32.xlu1 %v2435_v34, %s2492_s28  ;;  %v599_v60 = vrot.slane %v2804_v48, 1  ;;  %v2812_v62 = vsel %vm361_vm0, 0.0, %v398_v21  ;;  %v485_v63 = vsel %vm361_vm0, %v396_v36, 0.0  ;;  %v776_v0 = vrot.slane %v2797_v41, 2 }
  0x47   : > { %v597_v1 = vsel %vm530_vm2, %v594_v27, %v596_v49  ;;  %v591_v3 = vrot.slane %v485_v63, 1  ;;  %v593_v4 = vrot.slane %v2812_v62, 1  ;;  %v778_v5 = vrot.slane %v486_v43, 2  ;;  %v327_v43 = vld [vmem:[%s2550_s27 + $0xf0] sm:$0xff] }
  0x48   : > { %2431 = vrot.lane.b32.xlu0 %v2430_v31, %s2492_s28  ;;  %v600_v8 = vsel %vm530_vm2, %v598_v50, %v599_v60  ;;  %v773_v9 = vrot.slane %v485_v63, 2  ;;  %v775_v10 = vrot.slane %v2812_v62, 2  ;;  %v404_v6 = vrot.slane %v325_v57, 7 }
  0x49   : > { %v2445_v12 = vpack.i.bf16 %v600_v8, %v597_v1  ;;  %v592_v36 = vsel %vm530_vm2, %v589_v51, %v591_v3  ;;  %v595_v18 = vsel %vm530_vm2, %v593_v4, %v594_v27  ;;  %v779_v19 = vsel %vm712_vm1, %v776_v0, %v778_v5  ;;  %v328_v27 = vld [vmem:[%s2550_s27 + $0xf8] sm:$0xff] }
  0x4a   : > { %v2440_v20 = vpack.i.bf16 %v595_v18, %v592_v36  ;;  %v774_v21 = vsel %vm712_vm1, %v771_v11, %v773_v9  ;;  %v777_v24 = vsel %vm712_vm1, %v775_v10, %v776_v0  ;;  %v405_v28 = vrot.slane %v326_v7, 7 }
  0x4b   : > { %2446 = vrot.lane.b32.xlu1 %v2445_v12, %s2493_s29  ;;  %v2450_v29 = vpack.i.bf16 %v777_v24, %v774_v21  ;;  %v2829_v33 = vsel %vm361_vm0, 0.0, %v404_v6  ;;  %v487_v51 = vsel %vm361_vm0, %v402_v40, 0.0  ;;  %v780_v34 = vrot.slane %v2800_v42, 2 }
  0x4c   : > { %2441 = vrot.lane.b32.xlu0 %v2440_v20, %s2493_s29  ;;  %v2835_v35 = vsel %vm361_vm0, %v404_v6, %v405_v28  ;;  %v488_v11 = vsel %vm361_vm0, %v405_v28, 0.0  ;;  %v601_v39 = vrot.slane %v487_v51, 1  ;;  %v603_v31 = vrot.slane %v2829_v33, 1 }
  0x4d   : > { %v604_v49 = vrot.slane %v2835_v35, 1  ;;  %v606_v50 = vrot.slane %v488_v11, 1  ;;  %v788_v57 = vrot.slane %v488_v11, 2  ;;  %v785_v40 = vrot.slane %v2829_v33, 2  ;;  %v2869_v11 = vld [vmem:[%s3496_s3 + $0x10] sm:$0x3f]  }
  0x4e   : > { %v602_v63 = vsel %vm530_vm2, %v599_v60, %v601_v39  ;;  %v786_v0 = vrot.slane %v2835_v35, 2  ;;  %v781_v1 = vrot.slane %v2804_v48, 2  ;;  %v783_v3 = vrot.slane %v487_v51, 2 }
  0x4f   : > { %847 = vrot.lane.b32.xlu1 %v779_v19, %s2492_s28  ;;  %v605_v4 = vsel %vm530_vm2, %v603_v31, %v604_v49  ;;  %v407_v5 = vrot.slane %v327_v43, 7  ;;  %v408_v7 = vrot.slane %v328_v27, 7  ;;  %v607_v8 = vsel %vm530_vm2, %v604_v49, %v606_v50 }
  0x50   : > { %2451 = vrot.lane.b32.xlu0 %v2450_v29, %s2492_s28  ;;  %v2455_v9 = vpack.i.bf16 %v605_v4, %v602_v63  ;;  %v787_v10 = vsel %vm712_vm1, %v785_v40, %v786_v0  ;;  %v789_v60 = vsel %vm712_vm1, %v786_v0, %v788_v57  ;;  %v782_v6 = vsel %vm712_vm1, %v780_v34, %v781_v1 }
  0x51   : > { %v784_v12 = vsel %vm712_vm1, %v781_v1, %v783_v3  ;;  %v2855_v36 = vsel %vm361_vm0, %v407_v5, %v408_v7  ;;  %v2858_v18 = vsel %vm361_vm0, 0.0, %v407_v5  ;;  %v2465_v19 = vpack.i.bf16 %v789_v60, %v787_v10 }
  0x52   : > { %v489_v20 = vsel %vm361_vm0, %v408_v7, 0.0  ;;  %v608_v21 = vrot.slane %v2858_v18, 1  ;;  %v609_v24 = vrot.slane %v2855_v36, 1  ;;  %v790_v29 = vrot.slane %v2858_v18, 2 }
  0x53   : > { %673 = vrot.lane.b32.xlu1 %v607_v8, %s2493_s29  ;;  %v611_v28 = vrot.slane %v489_v20, 1  ;;  %v791_v51 = vrot.slane %v2855_v36, 2  ;;  %v793_v34 = vrot.slane %v489_v20, 2  ;;  %v2460_v39 = vpack.i.bf16 %v784_v12, %v782_v6 }
  0x54   : > { %2456 = vrot.lane.b32.xlu0 %v2455_v9, %s2493_s29  ;;  %v610_v31 = vsel %vm530_vm2, %v608_v21, %v609_v24  ;;  %v1036_v43 = vsel %vm712_vm1, %v2604_v53, 0  ;;  %v1243_v57 = vsel %vm712_vm1, %v2612_v58, 0 }
  0x55   : > { %v612_v27 = vsel %vm530_vm2, %v609_v24, %v611_v28  ;;  %v792_v49 = vsel %vm712_vm1, %v790_v29, %v791_v51  ;;  %v794_v50 = vsel %vm712_vm1, %v791_v51, %v793_v34  ;;  %2106 = vmatpush3.bf16.msra.mxu1 %v1036_v43  ;;  %2140 = vmatpush3.bf16.msra.mxu0 %v1243_v57 }
  0x56   : > { %v2470_v40 = vpack.i.bf16 %v612_v27, %v610_v31  ;;  %2307 = vmatprep.subr.msk.bf16.mxu1 %vm712_vm1, %v2612_v58  ;;  %v2475_v63 = vpack.i.bf16 %v794_v50, %v792_v49  ;;  %2308 = vmatprep.subr.msk.bf16.mxu0 %vm712_vm1, %v2869_v11 }
  0x57   : > { %2466 = vrot.lane.b32.xlu1 %v2465_v19, %s2492_s28 }
  0x58   : > { %2461 = vrot.lane.b32.xlu0 %v2460_v39, %s2492_s28 }
  0x5b   : > { %2476 = vrot.lane.b32.xlu1 %v2475_v63, %s2492_s28 }
  0x5c   : > { %2471 = vrot.lane.b32.xlu0 %v2470_v40, %s2493_s29 }
  0x8b   : > { %v2332_v53 = vpop.permute.xlu1 %2331  ;;  %v2322_v0 = vpop.permute.xlu0 %2321 }
  0x8c   : > { %v2333_v1 = vunpack.i.l.bf16 %v2332_v53  ;;  %v2324_v3 = vunpack.i.h.bf16 %v2322_v0  ;;  %v2323_v4 = vunpack.i.l.bf16 %v2322_v0  ;;  %v2334_v5 = vunpack.i.h.bf16 %v2332_v53 }
  0x8e   : > { %v895_v58 = vsel %vm894_vm3, 0.0, %v2323_v4  ;;  %v896_v10 = vsel %vm894_vm3, %v2562_v16, %v2324_v3 }
  0x8f   : > { %v2337_v7 = vpop.permute.xlu1 %2336  ;;  %v2327_v8 = vpop.permute.xlu0 %2326  ;;  %v929_v9 = vsel %vm928_vm4, %v895_v58, %v2333_v1  ;;  %v930_v28 = vsel %vm928_vm4, %v896_v10, %v2334_v5 }
  0x90   : > { %v2338_v60 = vunpack.i.l.bf16 %v2337_v7  ;;  %v2328_v6 = vunpack.i.l.bf16 %v2327_v8  ;;  %v2329_v12 = vunpack.i.h.bf16 %v2327_v8  ;;  %v2892_v19 = vpack.c.bf16 %v929_v9, %v929_v9 }
  0x91   : > { %v2339_v51 = vunpack.i.h.bf16 %v2337_v7 }
  0x92   : > { %v897_v20 = vsel %vm894_vm3, %v2559_v15, %v2328_v6  ;;  %2107 = vmatprep.mubr.msk.bf16.mxu1 %vm986_vm5, %v2892_v19  ;;  %v898_v31 = vsel %vm894_vm3, %v2565_v17, %v2329_v12 }
  0x93   : > { %v2347_v21 = vpop.permute.xlu1 %2346  ;;  %v2342_v24 = vpop.permute.xlu0 %2341  ;;  %v931_v29 = vsel %vm928_vm4, %v897_v20, %v2338_v60  ;;  %v932_v17 = vsel %vm928_vm4, %v898_v31, %v2339_v51 }
  0x94   : > { %v2348_v16 = vunpack.i.l.bf16 %v2347_v21  ;;  %v2344_v34 = vunpack.i.h.bf16 %v2342_v24  ;;  %v2343_v39 = vunpack.i.l.bf16 %v2342_v24  ;;  %v963_v43 = vpack.c.bf16 %v931_v29, %v930_v28 }
  0x95   : > { %v2349_v27 = vunpack.i.h.bf16 %v2347_v21 }
  0x96   : > { %v899_v15 = vsel %vm894_vm3, %v2573_v23, %v2343_v39  ;;  %2108 = vmatmul.mubr.msk.bf16.vlgmr.msra.gmra.mrb[0].mxu1 %vm986_vm5, %v963_v43  ;;  %2141 = vmatprep.mubr.msk.bf16.mxu0 %vm986_vm5, %v963_v43  ;;  %v900_v63 = vsel %vm894_vm3, %v2588_v38, %v2344_v34  ;;  %v1447_v23 = vsel %vm712_vm1, %v2869_v11, 0 }
  0x97   : > { %v2357_v49 = vpop.permute.xlu1 %2356  ;;  %v2352_v50 = vpop.permute.xlu0 %2351  ;;  %v933_v40 = vsel %vm928_vm4, %v899_v15, %v2348_v16  ;;  %2208 = vmatpush3.bf16.msra.mxu1 %v1243_v57  ;;  %v934_v57 = vsel %vm928_vm4, %v900_v63, %v2349_v27 }
  0x98   : > { %v2358_v53 = vunpack.i.l.bf16 %v2357_v49  ;;  %v2353_v0 = vunpack.i.l.bf16 %v2352_v50  ;;  %v2354_v1 = vunpack.i.h.bf16 %v2352_v50  ;;  %v2910_v3 = vpack.c.bf16 %v933_v40, %v932_v17 }
  0x99   : > { %v2359_v7 = vunpack.i.h.bf16 %v2357_v49 }
  0x9a   : > { %v901_v4 = vsel %vm894_vm3, %v2585_v37, %v2353_v0  ;;  %2111 = vmatprep.mubr.msk.bf16.mxu1 %vm986_vm5, %v2910_v3  ;;  %2142 = vmatmul.mubr.msk.bf16.vlgmr.msra.gmra.mrb[0].mxu0 %vm986_vm5, %v2910_v3  ;;  %v902_v37 = vsel %vm894_vm3, %v2618_v61, %v2354_v1 }
  0x9b   : > { %v2367_v38 = vpop.permute.xlu1 %2366  ;;  %v2362_v58 = vpop.permute.xlu0 %2361  ;;  %v935_v5 = vsel %vm928_vm4, %v901_v4, %v2358_v53  ;;  %2174 = vmatpush3.bf16.msra.mxu0 %v1447_v23  ;;  %v936_v29 = vsel %vm928_vm4, %v902_v37, %v2359_v7 }
  0x9c   : > { %v2368_v8 = vunpack.i.l.bf16 %v2367_v38  ;;  %v2364_v9 = vunpack.i.h.bf16 %v2362_v58  ;;  %v2363_v11 = vunpack.i.l.bf16 %v2362_v58  ;;  %v2924_v10 = vpack.c.bf16 %v935_v5, %v934_v57 }
  0x9d   : > { %v2369_v6 = vunpack.i.h.bf16 %v2367_v38 }
  0x9e   : > { %v903_v60 = vsel %vm894_vm3, %v2623_v2, %v2363_v11  ;;  %2112 = vmatmul.mubr.msk.bf16.gmra.mrb[4].mxu1 %vm986_vm5, %v2924_v10  ;;  %2145 = vmatprep.mubr.msk.bf16.mxu0 %vm986_vm5, %v2924_v10  ;;  %v904_v24 = vsel %vm894_vm3, %v2646_v26, %v2364_v9 }
  0x9f   : > { %v2377_v12 = vpop.permute.xlu1 %2376  ;;  %v2372_v20 = vpop.permute.xlu0 %2371  ;;  %v937_v21 = vsel %vm928_vm4, %v903_v60, %v2368_v8  ;;  %v938_v26 = vsel %vm928_vm4, %v904_v24, %v2369_v6 }
  0xa0   : > { %v2378_v61 = vunpack.i.l.bf16 %v2377_v12  ;;  %v2373_v28 = vunpack.i.l.bf16 %v2372_v20  ;;  %v2374_v51 = vunpack.i.h.bf16 %v2372_v20  ;;  %v2936_v2 = vpack.c.bf16 %v937_v21, %v936_v29 }
  0xa1   : > { %v2379_v43 = vunpack.i.h.bf16 %v2377_v12 }
  0xa2   : > { %v905_v16 = vsel %vm894_vm3, %v2643_v25, %v2373_v28  ;;  %2115 = vmatprep.mubr.msk.bf16.mxu1 %vm986_vm5, %v2936_v2  ;;  %2146 = vmatmul.mubr.msk.bf16.gmra.mrb[4].mxu0 %vm986_vm5, %v2936_v2  ;;  %v906_v50 = vsel %vm894_vm3, %v2665_v46, %v2374_v51 }
  0xa3   : > { %v2387_v34 = vpop.permute.xlu1 %2386  ;;  %v2382_v39 = vpop.permute.xlu0 %2381  ;;  %v939_v31 = vsel %vm928_vm4, %v905_v16, %v2378_v61  ;;  %v940_v4 = vsel %vm928_vm4, %v906_v50, %v2379_v43 }
  0xa4   : > { %v2388_v15 = vunpack.i.l.bf16 %v2387_v34  ;;  %v2384_v27 = vunpack.i.h.bf16 %v2382_v39  ;;  %v2383_v49 = vunpack.i.l.bf16 %v2382_v39  ;;  %v2948_v25 = vpack.c.bf16 %v939_v31, %v938_v26 }
  0xa5   : > { %v2389_v63 = vunpack.i.h.bf16 %v2387_v34 }
  0xa6   : > { %v907_v40 = vsel %vm894_vm3, %v2662_v45, %v2383_v49  ;;  %2116 = vmatmul.mubr.msk.bf16.gmra.mrb[8].mxu1 %vm986_vm5, %v2948_v25  ;;  %2149 = vmatprep.mubr.msk.bf16.mxu0 %vm986_vm5, %v2948_v25  ;;  %v908_v1 = vsel %vm894_vm3, %v2679_v59, %v2384_v27 }
  0xa7   : > { %v2397_v53 = vpop.permute.xlu1 %2396  ;;  %v2392_v0 = vpop.permute.xlu0 %2391  ;;  %v941_v17 = vsel %vm928_vm4, %v907_v40, %v2388_v15  ;;  %v942_v5 = vsel %vm928_vm4, %v908_v1, %v2389_v63 }
  0xa8   : > { %v2398_v46 = vunpack.i.l.bf16 %v2397_v53  ;;  %v2393_v23 = vunpack.i.l.bf16 %v2392_v0  ;;  %v2394_v38 = vunpack.i.h.bf16 %v2392_v0  ;;  %v2960_v45 = vpack.c.bf16 %v941_v17, %v940_v4 }
  0xa9   : > { %v2399_v7 = vunpack.i.h.bf16 %v2397_v53 }
  0xaa   : > { %v909_v58 = vsel %vm894_vm3, %v2672_v55, %v2393_v23  ;;  %2119 = vmatprep.mubr.msk.bf16.mxu1 %vm986_vm5, %v2960_v45  ;;  %2150 = vmatmul.mubr.msk.bf16.gmra.mrb[8].mxu0 %vm986_vm5, %v2960_v45  ;;  %v910_v37 = vsel %vm894_vm3, %v2698_v22, %v2394_v38 }
  0xab   : > { %v2407_v57 = vpop.permute.xlu1 %2406  ;;  %v943_v59 = vsel %vm928_vm4, %v909_v58, %v2398_v46  ;;  %v944_v61 = vsel %vm928_vm4, %v910_v37, %v2399_v7 }
  0xac   : > { %v2408_v8 = vunpack.i.l.bf16 %v2407_v57  ;;  %v2402_v9 = vpop.permute.xlu0 %2401  ;;  %v2970_v11 = vpack.c.bf16 %v943_v59, %v942_v5  ;;  %v2409_v20 = vunpack.i.h.bf16 %v2407_v57 }
  0xad   : > { %v2404_v55 = vunpack.i.h.bf16 %v2402_v9  ;;  %v2403_v60 = vunpack.i.l.bf16 %v2402_v9 }
  0xae   : > { %2153 = vmatprep.mubr.msk.bf16.mxu0 %vm986_vm5, %v2970_v11  ;;  %2120 = vmatmul.mubr.msk.bf16.gmra.mrb[12].mxu1 %vm986_vm5, %v2970_v11 }
  0xaf   : > { %v911_v6 = vsel %vm894_vm3, %v2703_v30, %v2403_v60  ;;  %v2417_v12 = vpop.permute.xlu1 %2416  ;;  %v912_v22 = vsel %vm894_vm3, %v2722_v56, %v2404_v55 }
  0xb0   : > { %v2418_v21 = vunpack.i.l.bf16 %v2417_v12  ;;  %v2412_v24 = vpop.permute.xlu0 %2411  ;;  %v945_v28 = vsel %vm928_vm4, %v911_v6, %v2408_v8  ;;  %v946_v34 = vsel %vm928_vm4, %v912_v22, %v2409_v20  ;;  %v2419_v50 = vunpack.i.h.bf16 %v2417_v12 }
  0xb1   : > { %v2413_v29 = vunpack.i.l.bf16 %v2412_v24  ;;  %v2984_v51 = vpack.c.bf16 %v945_v28, %v944_v61  ;;  %v2414_v31 = vunpack.i.h.bf16 %v2412_v24 }
  0xb3   : > { %v913_v30 = vsel %vm894_vm3, %v2719_v54, %v2413_v29  ;;  %2123 = vmatprep.mubr.msk.bf16.mxu1 %vm986_vm5, %v2984_v51  ;;  %2154 = vmatmul.mubr.msk.bf16.gmra.mrb[12].mxu0 %vm986_vm5, %v2984_v51  ;;  %v914_v40 = vsel %vm894_vm3, %v2741_v14, %v2414_v31 }
  0xb4   : > { %v2427_v16 = vpop.permute.xlu1 %2426  ;;  %2175 = vmatprep.mubr.msk.bf16.mxu0 %vm986_vm5, %v2910_v3  ;;  %v947_v56 = vsel %vm928_vm4, %v913_v30, %v2418_v21 }
  0xb5   : > { %v2428_v39 = vunpack.i.l.bf16 %v2427_v16  ;;  %v2996_v26 = vpack.c.bf16 %v947_v56, %v946_v34  ;;  %v2429_v4 = vunpack.i.h.bf16 %v2427_v16 }
  0xb6   : > { %v2422_v43 = vpop.permute.xlu0 %2421 }
  0xb7   : > { %v2424_v54 = vunpack.i.h.bf16 %v2422_v43  ;;  %v2423_v15 = vunpack.i.l.bf16 %v2422_v43  ;;  %2124 = vmatmul.mubr.msk.bf16.gmra.mrb[16].mxu1 %vm986_vm5, %v2996_v26  ;;  %v917_v27 = vsel %vm894_vm3, %v2753_v32, %v2428_v39  ;;  %v948_v32 = vsel %vm928_vm4, %v914_v40, %v2419_v50 }
  0xb8   : > { %v2437_v49 = vpop.permute.xlu1 %2436  ;;  %v918_v8 = vsel %vm894_vm3, %v2766_v47, %v2429_v4 }
  0xb9   : > { %v2438_v3 = vunpack.i.l.bf16 %v2437_v49  ;;  %v916_v63 = vsel %vm894_vm3, %v2773_v52, %v2424_v54  ;;  %v915_v53 = vsel %vm894_vm3, %v2738_v13, %v2423_v15 }
  0xba   : > { %v2432_v0 = vpop.permute.xlu0 %2431 }
  0xbb   : > { %v951_v17 = vsel %vm928_vm4, %v917_v27, %v2438_v3  ;;  %v2434_v1 = vunpack.i.h.bf16 %v2432_v0  ;;  %v2433_v46 = vunpack.i.l.bf16 %v2432_v0  ;;  %2176 = vmatmul.mubr.msk.bf16.vlgmr.msra.gmra.mrb[0].mxu0 %vm986_vm5, %v2924_v10 }
  0xbc   : > { %2179 = vmatprep.mubr.msk.bf16.mxu0 %vm986_vm5, %v2936_v2  ;;  %v2439_v2 = vunpack.i.h.bf16 %v2437_v49 }
  0xbd   : > { %v949_v14 = vsel %vm928_vm4, %v915_v53, %v2433_v46  ;;  %v950_v52 = vsel %vm928_vm4, %v916_v63, %v2434_v1  ;;  %v2447_v23 = vpop.permute.xlu1 %2446 }
  0xbe   : > { %v972_v13 = vpack.c.bf16 %v949_v14, %v948_v32  ;;  %v973_v38 = vpack.c.bf16 %v951_v17, %v950_v52  ;;  %v2448_v58 = vunpack.i.l.bf16 %v2447_v23  ;;  %v2442_v57 = vpop.permute.xlu0 %2441  ;;  %v2449_v22 = vunpack.i.h.bf16 %v2447_v23 }
  0xbf   : > { %v2444_v5 = vunpack.i.h.bf16 %v2442_v57  ;;  %v2443_v59 = vunpack.i.l.bf16 %v2442_v57 }
  0xc0   : > { %2127 = vmatprep.mubr.msk.bf16.mxu1 %vm986_vm5, %v972_v13  ;;  %v921_v10 = vsel %vm894_vm3, %v2797_v41, %v2448_v58  ;;  %v952_v41 = vsel %vm928_vm4, %v918_v8, %v2439_v2 }
  0xc1   : > { %2128 = vmatmul.mubr.msk.bf16.gmra.mrb[20].mxu1 %vm986_vm5, %v973_v38  ;;  %v848_v7 = vpop.permute.xlu1 %847  ;;  %v920_v9 = vsel %vm894_vm3, %v2812_v62, %v2444_v5  ;;  %v919_v37 = vsel %vm894_vm3, %v2763_v44, %v2443_v59  ;;  %v3091_v59 = vld [vmem:[%s3497_s4] ss:$0 sm:$0xff] }
  0xc2   : > { %v2452_v55 = vpop.permute.xlu0 %2451  ;;  %v955_v60 = vsel %vm928_vm4, %v921_v10, %v848_v7 }
  0xc3   : > { %v2454_v6 = vunpack.i.h.bf16 %v2452_v55  ;;  %v2453_v12 = vunpack.i.l.bf16 %v2452_v55  ;;  %2180 = vmatmul.mubr.msk.bf16.gmra.mrb[4].mxu0 %vm986_vm5, %v2948_v25 }
  0xc4   : > { %2183 = vmatprep.mubr.msk.bf16.mxu0 %vm986_vm5, %v2960_v45 }
  0xc5   : > { %v953_v47 = vsel %vm928_vm4, %v919_v37, %v2453_v12  ;;  %v954_v62 = vsel %vm928_vm4, %v920_v9, %v2454_v6  ;;  %v674_v20 = vpop.permute.xlu1 %673 }
  0xc6   : > { %v974_v21 = vpack.c.bf16 %v953_v47, %v952_v41  ;;  %v975_v44 = vpack.c.bf16 %v955_v60, %v954_v62  ;;  %v2457_v24 = vpop.permute.xlu0 %2456  ;;  %v925_v56 = vsel %vm894_vm3, %v2835_v35, %v674_v20 }
  0xc7   : > { %v2459_v61 = vunpack.i.h.bf16 %v2457_v24  ;;  %v2458_v28 = vunpack.i.l.bf16 %v2457_v24 }
  0xc8   : > { %2131 = vmatprep.mubr.msk.bf16.mxu1 %vm986_vm5, %v974_v21 }
  0xc9   : > { %v924_v25 = vsel %vm894_vm3, %v2829_v33, %v2459_v61  ;;  %2132 = vmatmul.mubr.msk.bf16.gmra.mrb[24].mxu1 %vm986_vm5, %v975_v44  ;;  %v2467_v45 = vpop.permute.xlu1 %2466  ;;  %v923_v29 = vsel %vm894_vm3, %v2804_v48, %v2458_v28  ;;  %v922_v33 = vsel %vm894_vm3, %v2800_v42, %v2449_v22 }
  0xca   : > { %v2469_v30 = vunpack.i.h.bf16 %v2467_v45  ;;  %v2468_v16 = vunpack.i.l.bf16 %v2467_v45  ;;  %v2462_v34 = vpop.permute.xlu0 %2461 }
  0xcb   : > { %v2464_v39 = vunpack.i.h.bf16 %v2462_v34  ;;  %v2463_v31 = vunpack.i.l.bf16 %v2462_v34  ;;  %2184 = vmatmul.mubr.msk.bf16.gmra.mrb[8].mxu0 %vm986_vm5, %v2970_v11 }
  0xcc   : > { %v959_v43 = vsel %vm928_vm4, %v925_v56, %v2469_v30  ;;  %v958_v54 = vsel %vm928_vm4, %v924_v25, %v2468_v16  ;;  %2187 = vmatprep.mubr.msk.bf16.mxu0 %vm986_vm5, %v2984_v51 }
  0xcd   : > { %v977_v48 = vpack.c.bf16 %v959_v43, %v958_v54  ;;  %v956_v15 = vsel %vm928_vm4, %v922_v33, %v2463_v31  ;;  %v957_v35 = vsel %vm928_vm4, %v923_v29, %v2464_v39  ;;  %v2477_v49 = vpop.permute.xlu1 %2476 }
  0xce   : > { %v976_v27 = vpack.c.bf16 %v957_v35, %v956_v15  ;;  %v2472_v42 = vpop.permute.xlu0 %2471  ;;  %v2478_v50 = vunpack.i.l.bf16 %v2477_v49 }
  0xcf   : > { %v2474_v11 = vunpack.i.h.bf16 %v2472_v42  ;;  %v2473_v51 = vunpack.i.l.bf16 %v2472_v42 }
  0xd0   : > { %2135 = vmatprep.mubr.msk.bf16.mxu1 %vm986_vm5, %v976_v27 }
  0xd1   : > { %2136 = vmatmul.mubr.msk.bf16.gmra.mrb[28].mxu1 %vm986_vm5, %v977_v48  ;;  %v927_v3 = vsel %vm894_vm3, %v2855_v36, %v2474_v11  ;;  %v926_v40 = vsel %vm894_vm3, %v2858_v18, %v2473_v51 }
  0xd2   : > { %2157 = vmatprep.mubr.msk.bf16.mxu1 %vm986_vm5, %v2996_v26  ;;  %v960_v63 = vsel %vm928_vm4, %v926_v40, %v2478_v50 }
  0xd3   : > { %2188 = vmatmul.mubr.msk.bf16.gmra.mrb[12].mxu0 %vm986_vm5, %v2996_v26  ;;  %v2479_v26 = vunpack.i.h.bf16 %v2477_v49 }
  0xd4   : > { %2191 = vmatprep.mubr.msk.bf16.mxu0 %vm986_vm5, %v972_v13 }
  0xd5   : > { %v961_v53 = vsel %vm928_vm4, %v927_v3, %v2479_v26 }
  0xd6   : > { %v978_v0 = vpack.c.bf16 %v961_v53, %v960_v63 }
  0xd9   : > { %2158 = vmatmul.mubr.msk.bf16.vlgmr.msra.gmra.mrb[16].mxu1 %vm986_vm5, %v972_v13 }
  0xda   : > { %2161 = vmatprep.mubr.msk.bf16.mxu1 %vm986_vm5, %v973_v38 }
  0xdb   : > { %2192 = vmatmul.mubr.msk.bf16.gmra.mrb[16].mxu0 %vm986_vm5, %v973_v38 }
  0xdc   : > { %2195 = vmatprep.mubr.msk.bf16.mxu0 %vm986_vm5, %v974_v21 }
  0xe1   : > { %2162 = vmatmul.mubr.msk.bf16.gmra.mrb[20].mxu1 %vm986_vm5, %v974_v21 }
  0xe2   : > { %2165 = vmatprep.mubr.msk.bf16.mxu1 %vm986_vm5, %v975_v44 }
  0xe3   : > { %2196 = vmatmul.mubr.msk.bf16.gmra.mrb[20].mxu0 %vm986_vm5, %v975_v44 }
  0xe4   : > { %2199 = vmatprep.mubr.msk.bf16.mxu0 %vm986_vm5, %v976_v27 }
  0xe9   : > { %2166 = vmatmul.mubr.msk.bf16.gmra.mrb[24].mxu1 %vm986_vm5, %v976_v27 }
  0xea   : > { %2169 = vmatprep.mubr.msk.bf16.mxu1 %vm986_vm5, %v977_v48 }
  0xeb   : > { %2200 = vmatmul.mubr.msk.bf16.gmra.mrb[24].mxu0 %vm986_vm5, %v977_v48 }
  0xec   : > { %2203 = vmatprep.mubr.msk.bf16.mxu0 %vm986_vm5, %v978_v0 }
  0xf1   : > { %2170 = vmatmul.mubr.msk.bf16.gmra.mrb[28].mxu1 %vm986_vm5, %v978_v0 }
  0xf3   : > { %2204 = vmatmul.mubr.msk.bf16.gmra.mrb[28].mxu0 %vm986_vm5, %v2892_v19 }
 0x169   : > { %v2109_v36 = vpop.f32.mrb[0].mxu1 }
 0x16a   : > { %v1072_v18 = vpop.f32.mrb[1].mxu1  ;;  %v1201_v10 = vadd.f32 %v2109_v36, %v3091_v59 }
 0x16b   : > { %v2110_v17 = vpop.f32.mrb[2].mxu1  ;;  %v1199_v2 = vadd.f32 %v3091_v59, %v1072_v18 }
 0x16c   : > { %v1075_v1 = vpop.f32.mrb[3].mxu1  ;;  %v1202_v8 = vadd.f32 %v2110_v17, %v3091_v59 }
 0x16d   : > { %v1200_v55 = vadd.f32 %v3091_v59, %v1075_v1 }
 0x171   : > { %v2113_v46 = vpop.f32.mrb[4].mxu1 }
 0x172   : > { %v1088_v32 = vpop.f32.mrb[5].mxu1  ;;  %v1205_v21 = vadd.f32 %v2113_v46, %v3091_v59 }
 0x173   : > { %v2114_v14 = vpop.f32.mrb[6].mxu1  ;;  %v1203_v24 = vadd.f32 %v3091_v59, %v1088_v32 }
 0x174   : > { %v1091_v52 = vpop.f32.mrb[7].mxu1  ;;  %v1206_v22 = vadd.f32 %v2114_v14, %v3091_v59 }
 0x175   : > { %v1204_v30 = vadd.f32 %v3091_v59, %v1091_v52 }
 0x179   : > { %v2117_v23 = vpop.f32.mrb[8].mxu1 }
 0x17a   : > { %v1104_v4 = vpop.f32.mrb[9].mxu1  ;;  %v1209_v35 = vadd.f32 %v2117_v23, %v3091_v59 }
 0x17b   : > { %v2118_v13 = vpop.f32.mrb[10].mxu1  ;;  %v1207_v42 = vadd.f32 %v3091_v59, %v1104_v4 }
 0x17c   : > { %v1107_v38 = vpop.f32.mrb[11].mxu1  ;;  %v1210_v49 = vadd.f32 %v2118_v13, %v3091_v59 }
 0x17d   : > { %v1208_v40 = vadd.f32 %v3091_v59, %v1107_v38 }
 0x181   : > { %v3080_v58 = vpop.f32.mrb[12].mxu1 }
 0x182   : > { %v3082_v57 = vpop.f32.mrb[13].mxu1  ;;  %v1213_v52 = vadd.f32 %v3080_v58, %v3091_v59 }
 0x183   : > { %v3084_v5 = vpop.f32.mrb[14].mxu1  ;;  %v1211_v4 = vadd.f32 %v3091_v59, %v3082_v57 }
 0x184   : > { %v3086_v19 = vpop.f32.mrb[15].mxu1 }
 0x185   : > { %v1212_v58 = vadd.f32 %v3091_v59, %v3086_v19 }
 0x18e   : > { %v2177_v7 = vpop.f32.mrb[0].mxu0 }
 0x18f   : > { %v3103_v9 = vadd.f32 %v2177_v7, %v1201_v10  ;;  %v1483_v37 = vpop.f32.mrb[1].mxu0  ;;  %v1214_v10 = vadd.f32 %v3084_v5, %v3091_v59 }
 0x190   : > { %v3106_v60 = vadd.f32 %v1483_v37, %v1199_v2  ;;  %v2178_v6 = vpop.f32.mrb[2].mxu0 }
 0x191   : > { %1644 = vst.msk [vmem:[%s3100_s17 + $0x10] sm:$0xff] %vm928_vm4, %v3103_v9  ;;  %v3111_v12 = vadd.f32 %v2178_v6, %v1202_v8  ;;  %v1486_v41 = vpop.f32.mrb[3].mxu0  ;;  %v1677_v61 = vsel %vm928_vm4, %v3103_v9, 0.0 }
 0x192   : > { %1642 = vst.msk [vmem:[%s3100_s17] sm:$0xff] %vm928_vm4, %v3106_v60  ;;  %v3116_v47 = vadd.f32 %v1486_v41, %v1200_v55  ;;  %v1674_v62 = vsel %vm928_vm4, %v3106_v60, 0.0 }
 0x193   : > { %1645 = vst.msk [vmem:[%s3100_s17 + $0x18] sm:$0xff] %vm928_vm4, %v3111_v12  ;;  %v1679_v16 = vsel %vm928_vm4, %v3111_v12, 0.0 }
 0x194   : > { %1643 = vst.msk [vmem:[%s3100_s17 + $0x8] sm:$0xff] %vm928_vm4, %v3116_v47  ;;  %v1675_v20 = vsel %vm928_vm4, %v3116_v47, 0.0 }
 0x195   : > { %v1676_v44 = vadd.f32 %v1675_v20, %v1674_v62 }
 0x196   : > { %v2181_v28 = vpop.f32.mrb[4].mxu0 }
 0x197   : > { %v1678_v25 = vadd.f32 %v1677_v61, %v1676_v44  ;;  %v3133_v45 = vadd.f32 %v2181_v28, %v1205_v21  ;;  %v1499_v29 = vpop.f32.mrb[5].mxu0 }
 0x198   : > { %v3138_v34 = vadd.f32 %v1499_v29, %v1203_v24  ;;  %v2182_v56 = vpop.f32.mrb[6].mxu0 }
 0x199   : > { %1648 = vst.msk [vmem:[%s3100_s17 + $0x30] sm:$0xff] %vm928_vm4, %v3133_v45  ;;  %v1680_v39 = vadd.f32 %v1679_v16, %v1678_v25  ;;  %v3143_v31 = vadd.f32 %v2182_v56, %v1206_v22  ;;  %v1502_v33 = vpop.f32.mrb[7].mxu0  ;;  %v1685_v11 = vsel %vm928_vm4, %v3133_v45, 0.0 }
 0x19a   : > { %1646 = vst.msk [vmem:[%s3100_s17 + $0x20] sm:$0xff] %vm928_vm4, %v3138_v34  ;;  %v1681_v43 = vsel %vm928_vm4, %v3138_v34, 0.0  ;;  %v3150_v54 = vadd.f32 %v1502_v33, %v1204_v30 }
 0x19b   : > { %v1682_v48 = vadd.f32 %v1681_v43, %v1680_v39  ;;  %1649 = vst.msk [vmem:[%s3100_s17 + $0x38] sm:$0xff] %vm928_vm4, %v3143_v31  ;;  %v1687_v63 = vsel %vm928_vm4, %v3143_v31, 0.0 }
 0x19c   : > { %1647 = vst.msk [vmem:[%s3100_s17 + $0x28] sm:$0xff] %vm928_vm4, %v3150_v54  ;;  %v1683_v15 = vsel %vm928_vm4, %v3150_v54, 0.0 }
 0x19d   : > { %v1684_v27 = vadd.f32 %v1683_v15, %v1682_v48 }
 0x19e   : > { %v2185_v51 = vpop.f32.mrb[8].mxu0 }
 0x19f   : > { %v1686_v26 = vadd.f32 %v1685_v11, %v1684_v27  ;;  %v3165_v50 = vadd.f32 %v2185_v51, %v1209_v35  ;;  %v1515_v3 = vpop.f32.mrb[9].mxu0 }
 0x1a0   : > { %v3170_v53 = vadd.f32 %v1515_v3, %v1207_v42  ;;  %v2186_v0 = vpop.f32.mrb[10].mxu0 }
 0x1a1   : > { %1652 = vst.msk [vmem:[%s3100_s17 + $0x50] sm:$0xff] %vm928_vm4, %v3165_v50  ;;  %v1688_v36 = vadd.f32 %v1687_v63, %v1686_v26  ;;  %v3175_v18 = vadd.f32 %v2186_v0, %v1210_v49  ;;  %v1518_v17 = vpop.f32.mrb[11].mxu0  ;;  %v1693_v13 = vsel %vm928_vm4, %v3165_v50, 0.0 }
 0x1a2   : > { %1650 = vst.msk [vmem:[%s3100_s17 + $0x40] sm:$0xff] %vm928_vm4, %v3170_v53  ;;  %v1689_v1 = vsel %vm928_vm4, %v3170_v53, 0.0  ;;  %v3182_v46 = vadd.f32 %v1518_v17, %v1208_v40 }
 0x1a3   : > { %v1690_v32 = vadd.f32 %v1689_v1, %v1688_v36  ;;  %1653 = vst.msk [vmem:[%s3100_s17 + $0x58] sm:$0xff] %vm928_vm4, %v3175_v18  ;;  %v1695_v37 = vsel %vm928_vm4, %v3175_v18, 0.0 }
 0x1a4   : > { %1651 = vst.msk [vmem:[%s3100_s17 + $0x48] sm:$0xff] %vm928_vm4, %v3182_v46  ;;  %v1691_v14 = vsel %vm928_vm4, %v3182_v46, 0.0 }
 0x1a5   : > { %v1692_v23 = vadd.f32 %v1691_v14, %v1690_v32 }
 0x1a6   : > { %v2189_v38 = vpop.f32.mrb[12].mxu0 }
 0x1a7   : > { %v1694_v2 = vadd.f32 %v1693_v13, %v1692_v23  ;;  %v3200_v7 = vadd.f32 %v2189_v38, %v1213_v52  ;;  %v1531_v8 = vpop.f32.mrb[13].mxu0 }
 0x1a8   : > { %v3206_v57 = vadd.f32 %v1531_v8, %v1211_v4  ;;  %v2190_v55 = vpop.f32.mrb[14].mxu0 }
 0x1a9   : > { %1656 = vst.msk [vmem:[%s3100_s17 + $0x70] sm:$0xff] %vm928_vm4, %v3200_v7  ;;  %v1696_v6 = vadd.f32 %v1695_v37, %v1694_v2  ;;  %v3211_v5 = vadd.f32 %v2190_v55, %v1214_v10  ;;  %v1534_v41 = vpop.f32.mrb[15].mxu0  ;;  %v1701_v22 = vsel %vm928_vm4, %v3200_v7, 0.0 }
 0x1aa   : > { %1654 = vst.msk [vmem:[%s3100_s17 + $0x60] sm:$0xff] %vm928_vm4, %v3206_v57  ;;  %v1697_v62 = vsel %vm928_vm4, %v3206_v57, 0.0  ;;  %v3218_v19 = vadd.f32 %v1534_v41, %v1212_v58 }
 0x1ab   : > { %v1698_v20 = vadd.f32 %v1697_v62, %v1696_v6  ;;  %1657 = vst.msk [vmem:[%s3100_s17 + $0x78] sm:$0xff] %vm928_vm4, %v3211_v5  ;;  %v1703_v48 = vsel %vm928_vm4, %v3211_v5, 0.0 }
 0x1ac   : > { %1655 = vst.msk [vmem:[%s3100_s17 + $0x68] sm:$0xff] %vm928_vm4, %v3218_v19  ;;  %v1699_v21 = vsel %vm928_vm4, %v3218_v19, 0.0  ;;  %v2159_v44 = vpop.f32.mrb[16].mxu1 }
 0x1ad   : > { %v1700_v24 = vadd.f32 %v1699_v21, %v1698_v20  ;;  %v2241_v61 = vadd.f32 %v2159_v44, %v3091_v59  ;;  %v1343_v28 = vpop.f32.mrb[17].mxu1 }
 0x1ae   : > { %v2243_v25 = vadd.f32 %v3091_v59, %v1343_v28  ;;  %v2160_v29 = vpop.f32.mrb[18].mxu1  ;;  %v2193_v30 = vpop.f32.mrb[16].mxu0 }
 0x1af   : > { %v1702_v16 = vadd.f32 %v1701_v22, %v1700_v24  ;;  %v2245_v56 = vadd.f32 %v2160_v29, %v3091_v59  ;;  %v1346_v39 = vpop.f32.mrb[19].mxu1  ;;  %v3233_v33 = vadd.f32 %v2241_v61, %v2193_v30  ;;  %v1547_v43 = vpop.f32.mrb[17].mxu0 }
 0x1b0   : > { %v2247_v15 = vadd.f32 %v3091_v59, %v1346_v39  ;;  %v3238_v35 = vadd.f32 %v2243_v25, %v1547_v43  ;;  %v2194_v27 = vpop.f32.mrb[18].mxu0 }
 0x1b1   : > { %1660 = vst.msk [vmem:[%s3100_s17 + $0x90] sm:$0xff] %vm928_vm4, %v3233_v33  ;;  %v1704_v42 = vadd.f32 %v1703_v48, %v1702_v16  ;;  %v3243_v11 = vadd.f32 %v2245_v56, %v2194_v27  ;;  %v1550_v51 = vpop.f32.mrb[19].mxu0  ;;  %v1709_v1 = vsel %vm928_vm4, %v3233_v33, 0.0 }
 0x1b2   : > { %1658 = vst.msk [vmem:[%s3100_s17 + $0x80] sm:$0xff] %vm928_vm4, %v3238_v35  ;;  %v1705_v49 = vsel %vm928_vm4, %v3238_v35, 0.0  ;;  %v3250_v26 = vadd.f32 %v2247_v15, %v1550_v51 }
 0x1b3   : > { %v1706_v3 = vadd.f32 %v1705_v49, %v1704_v42  ;;  %1661 = vst.msk [vmem:[%s3100_s17 + $0x98] sm:$0xff] %vm928_vm4, %v3243_v11  ;;  %v1711_v2 = vsel %vm928_vm4, %v3243_v11, 0.0 }
 0x1b4   : > { %1659 = vst.msk [vmem:[%s3100_s17 + $0x88] sm:$0xff] %vm928_vm4, %v3250_v26  ;;  %v1707_v40 = vsel %vm928_vm4, %v3250_v26, 0.0  ;;  %v2163_v63 = vpop.f32.mrb[20].mxu1 }
 0x1b5   : > { %v1708_v0 = vadd.f32 %v1707_v40, %v1706_v3  ;;  %v2249_v36 = vadd.f32 %v2163_v63, %v3091_v59  ;;  %v1359_v17 = vpop.f32.mrb[21].mxu1 }
 0x1b6   : > { %v2251_v32 = vadd.f32 %v3091_v59, %v1359_v17  ;;  %v2164_v14 = vpop.f32.mrb[22].mxu1  ;;  %v2197_v52 = vpop.f32.mrb[20].mxu0 }
 0x1b7   : > { %v1710_v23 = vadd.f32 %v1709_v1, %v1708_v0  ;;  %v2253_v4 = vadd.f32 %v2164_v14, %v3091_v59  ;;  %v1362_v13 = vpop.f32.mrb[23].mxu1  ;;  %v3265_v38 = vadd.f32 %v2249_v36, %v2197_v52  ;;  %v1563_v10 = vpop.f32.mrb[21].mxu0 }
 0x1b8   : > { %v2255_v8 = vadd.f32 %v3091_v59, %v1362_v13  ;;  %v3270_v58 = vadd.f32 %v2251_v32, %v1563_v10  ;;  %v2198_v37 = vpop.f32.mrb[22].mxu0 }
 0x1b9   : > { %1664 = vst.msk [vmem:[%s3100_s17 + $0xb0] sm:$0xff] %vm928_vm4, %v3265_v38  ;;  %v1712_v55 = vadd.f32 %v1711_v2, %v1710_v23  ;;  %v3275_v6 = vadd.f32 %v2253_v4, %v2198_v37  ;;  %v1566_v41 = vpop.f32.mrb[23].mxu0  ;;  %v1717_v25 = vsel %vm928_vm4, %v3265_v38, 0.0 }
 0x1ba   : > { %1662 = vst.msk [vmem:[%s3100_s17 + $0xa0] sm:$0xff] %vm928_vm4, %v3270_v58  ;;  %v1713_v62 = vsel %vm928_vm4, %v3270_v58, 0.0  ;;  %v3282_v20 = vadd.f32 %v2255_v8, %v1566_v41 }
 0x1bb   : > { %v1714_v21 = vadd.f32 %v1713_v62, %v1712_v55  ;;  %1665 = vst.msk [vmem:[%s3100_s17 + $0xb8] sm:$0xff] %vm928_vm4, %v3275_v6  ;;  %v1719_v27 = vsel %vm928_vm4, %v3275_v6, 0.0 }
 0x1bc   : > { %1663 = vst.msk [vmem:[%s3100_s17 + $0xa8] sm:$0xff] %vm928_vm4, %v3282_v20  ;;  %v1715_v44 = vsel %vm928_vm4, %v3282_v20, 0.0  ;;  %v2167_v24 = vpop.f32.mrb[24].mxu1 }
 0x1bd   : > { %v1716_v61 = vadd.f32 %v1715_v44, %v1714_v21  ;;  %v2257_v28 = vadd.f32 %v2167_v24, %v3091_v59  ;;  %v1375_v22 = vpop.f32.mrb[25].mxu1 }
 0x1be   : > { %v2259_v29 = vadd.f32 %v3091_v59, %v1375_v22  ;;  %v2168_v30 = vpop.f32.mrb[26].mxu1  ;;  %v2201_v16 = vpop.f32.mrb[24].mxu0 }
 0x1bf   : > { %v1718_v56 = vadd.f32 %v1717_v25, %v1716_v61  ;;  %v2261_v39 = vadd.f32 %v2168_v30, %v3091_v59  ;;  %v1378_v43 = vpop.f32.mrb[27].mxu1  ;;  %v3297_v48 = vadd.f32 %v2257_v28, %v2201_v16  ;;  %v1579_v15 = vpop.f32.mrb[25].mxu0 }
 0x1c0   : > { %v2263_v42 = vadd.f32 %v3091_v59, %v1378_v43  ;;  %v3302_v51 = vadd.f32 %v2259_v29, %v1579_v15  ;;  %v2202_v49 = vpop.f32.mrb[26].mxu0 }
 0x1c1   : > { %1668 = vst.msk [vmem:[%s3100_s17 + $0xd0] sm:$0xff] %vm928_vm4, %v3297_v48  ;;  %v1720_v3 = vadd.f32 %v1719_v27, %v1718_v56  ;;  %v3307_v40 = vadd.f32 %v2261_v39, %v2202_v49  ;;  %v1582_v63 = vpop.f32.mrb[27].mxu0  ;;  %v1725_v4 = vsel %vm928_vm4, %v3297_v48, 0.0 }
 0x1c2   : > { %1666 = vst.msk [vmem:[%s3100_s17 + $0xc0] sm:$0xff] %vm928_vm4, %v3302_v51  ;;  %v1721_v0 = vsel %vm928_vm4, %v3302_v51, 0.0  ;;  %v3314_v36 = vadd.f32 %v2263_v42, %v1582_v63 }
 0x1c3   : > { %v1722_v17 = vadd.f32 %v1721_v0, %v1720_v3  ;;  %1669 = vst.msk [vmem:[%s3100_s17 + $0xd8] sm:$0xff] %vm928_vm4, %v3307_v40  ;;  %v1727_v21 = vsel %vm928_vm4, %v3307_v40, 0.0 }
 0x1c4   : > { %1667 = vst.msk [vmem:[%s3100_s17 + $0xc8] sm:$0xff] %vm928_vm4, %v3314_v36  ;;  %v1723_v1 = vsel %vm928_vm4, %v3314_v36, 0.0  ;;  %v2171_v32 = vpop.f32.mrb[28].mxu1 }
 0x1c5   : > { %v1724_v14 = vadd.f32 %v1723_v1, %v1722_v17  ;;  %v2265_v52 = vadd.f32 %v2171_v32, %v3091_v59  ;;  %v1391_v23 = vpop.f32.mrb[29].mxu1 }
 0x1c6   : > { %v2267_v13 = vadd.f32 %v3091_v59, %v1391_v23  ;;  %v2172_v10 = vpop.f32.mrb[30].mxu1  ;;  %v2205_v2 = vpop.f32.mrb[28].mxu0 }
 0x1c7   : > { %v1726_v8 = vadd.f32 %v1725_v4, %v1724_v14  ;;  %v2269_v37 = vadd.f32 %v2172_v10, %v3091_v59  ;;  %v1394_v55 = vpop.f32.mrb[31].mxu1  ;;  %v2266_v41 = vadd.f32 %v2265_v52, %v2205_v2  ;;  %v1595_v62 = vpop.f32.mrb[29].mxu0 }
 0x1c8   : > { %v2271_v44 = vadd.f32 %v3091_v59, %v1394_v55  ;;  %v2268_v24 = vadd.f32 %v2267_v13, %v1595_v62  ;;  %v2206_v61 = vpop.f32.mrb[30].mxu0 }
 0x1c9   : > { %1672 = vst.msk [vmem:[%s3100_s17 + $0xf0] sm:$0xff] %vm928_vm4, %v2266_v41  ;;  %v1728_v28 = vadd.f32 %v1727_v21, %v1726_v8  ;;  %v2270_v22 = vadd.f32 %v2269_v37, %v2206_v61  ;;  %v1598_v25 = vpop.f32.mrb[31].mxu0  ;;  %v1733_v39 = vsel %vm928_vm4, %v2266_v41, 0.0 }
 0x1ca   : > { %1670 = vst.msk [vmem:[%s3100_s17 + $0xe0] sm:$0xff] %vm928_vm4, %v2268_v24  ;;  %v1729_v29 = vsel %vm928_vm4, %v2268_v24, 0.0  ;;  %v2272_v30 = vadd.f32 %v2271_v44, %v1598_v25 }
 0x1cb   : > { %v1730_v16 = vadd.f32 %v1729_v29, %v1728_v28  ;;  %1673 = vst.msk [vmem:[%s3100_s17 + $0xf8] sm:$0xff] %vm928_vm4, %v2270_v22  ;;  %v1735_v15 = vsel %vm928_vm4, %v2270_v22, 0.0 }
 0x1cc   : > { %1671 = vst.msk [vmem:[%s3100_s17 + $0xe8] sm:$0xff] %vm928_vm4, %v2272_v30  ;;  %v1731_v59 = vsel %vm928_vm4, %v2272_v30, 0.0 }
 0x1cd   : > { %v1732_v56 = vadd.f32 %v1731_v59, %v1730_v16 }
 0x1cf   : > { %v1734_v43 = vadd.f32 %v1733_v39, %v1732_v56 }
 0x1d1   : > { %v1736_v27 = vadd.f32 %v1735_v15, %v1734_v43 }
 0x1d3   : > { %v1737_v42 = vrot.slane %v1736_v27, 4 }
 0x1d5   : > { %v1738_v49 = vadd.f32 %v1737_v42, %v1736_v27 }
 0x1d7   : > { %v1739_v3 = vrot.slane %v1738_v49, 2 }
 0x1d9   : > { %v1740_v63 = vadd.f32 %v1739_v3, %v1738_v49 }
 0x1db   : > { %v1741_v0 = vrot.slane %v1740_v63, 1 }
 0x1dd   : > { %v1742_v17 = vadd.f32 %v1741_v0, %v1740_v63 }
 0x1df   : > { %1744 = vst.msk [vmem:[%s292_s20] sm:$0x1] %vm1743_vm6, %v1742_v17  ;;  %v1745_v1 = vmul.f32 0.00390625, %v1742_v17 }
 0x1e1   : > { %v1755_v32 = vsub.f32 %v3182_v46, %v1745_v1  ;;  %v1757_v14 = vsub.f32 %v3175_v18, %v1745_v1  ;;  %v1758_v52 = vsub.f32 %v3206_v57, %v1745_v1  ;;  %v3353_v23 = vsub.f32 %v3218_v19, %v1745_v1 }
 0x1e2   : > { %v3356_v4 = vsub.f32 %v3200_v7, %v1745_v1  ;;  %v3359_v13 = vsub.f32 %v3211_v5, %v1745_v1  ;;  %v3362_v10 = vsub.f32 %v3238_v35, %v1745_v1  ;;  %v3365_v2 = vsub.f32 %v3250_v26, %v1745_v1 }
 0x1e3   : > { %v3368_v46 = vsub.f32 %v3233_v33, %v1745_v1  ;;  %v3371_v18 = vsub.f32 %v3243_v11, %v1745_v1  ;;  %v3374_v57 = vsub.f32 %v3270_v58, %v1745_v1  ;;  %v3377_v7 = vsub.f32 %v3282_v20, %v1745_v1 }
 0x1e4   : > { %v3380_v5 = vsub.f32 %v3265_v38, %v1745_v1  ;;  %v3383_v19 = vsub.f32 %v3275_v6, %v1745_v1  ;;  %v3386_v35 = vsub.f32 %v3302_v51, %v1745_v1  ;;  %v3389_v33 = vsub.f32 %v3314_v36, %v1745_v1 }
 0x1e5   : > { %v3392_v11 = vsub.f32 %v3297_v48, %v1745_v1  ;;  %v3395_v26 = vsub.f32 %v3307_v40, %v1745_v1  ;;  %v3397_v58 = vsub.f32 %v2268_v24, %v1745_v1  ;;  %v3399_v20 = vsub.f32 %v2272_v30, %v1745_v1 }
 0x1e6   : > { %v3401_v38 = vsub.f32 %v2266_v41, %v1745_v1  ;;  %v3403_v6 = vsub.f32 %v2270_v22, %v1745_v1  ;;  %v1746_v51 = vsub.f32 %v3106_v60, %v1745_v1  ;;  %v1747_v8 = vsub.f32 %v3116_v47, %v1745_v1 }
 0x1e7   : > { %v1748_v36 = vsub.f32 %v3103_v9, %v1745_v1  ;;  %v1749_v48 = vsub.f32 %v3111_v12, %v1745_v1  ;;  %v1750_v40 = vsub.f32 %v3138_v34, %v1745_v1  ;;  %v1751_v21 = vsub.f32 %v3150_v54, %v1745_v1 }
 0x1e8   : > { %v1778_v37 = vmul.f32 %v1746_v51, %v1746_v51  ;;  %v1779_v55 = vmul.f32 %v1747_v8, %v1747_v8  ;;  %v1752_v60 = vsub.f32 %v3133_v45, %v1745_v1  ;;  %v1753_v12 = vsub.f32 %v3143_v31, %v1745_v1 }
 0x1e9   : > { %v1780_v62 = vmul.f32 %v1748_v36, %v1748_v36  ;;  %v1781_v44 = vmul.f32 %v1749_v48, %v1749_v48  ;;  %v1782_v47 = vmul.f32 %v1750_v40, %v1750_v40  ;;  %v1783_v22 = vmul.f32 %v1751_v21, %v1751_v21 }
 0x1ea   : > { %v1810_v41 = vsel %vm928_vm4, %v1778_v37, 0.0  ;;  %v1811_v24 = vsel %vm928_vm4, %v1779_v55, 0.0  ;;  %v1754_v54 = vsub.f32 %v3170_v53, %v1745_v1  ;;  %v1784_v29 = vmul.f32 %v1752_v60, %v1752_v60 }
 0x1eb   : > { %v1812_v61 = vadd.f32 %v1811_v24, %v1810_v41  ;;  %v1813_v9 = vsel %vm928_vm4, %v1780_v62, 0.0  ;;  %v1815_v34 = vsel %vm928_vm4, %v1781_v44, 0.0  ;;  %v1817_v30 = vsel %vm928_vm4, %v1782_v47, 0.0 }
 0x1ec   : > { %v1785_v59 = vmul.f32 %v1753_v12, %v1753_v12  ;;  %v1819_v56 = vsel %vm928_vm4, %v1783_v22, 0.0  ;;  %v1756_v39 = vsub.f32 %v3165_v50, %v1745_v1  ;;  %v1786_v43 = vmul.f32 %v1754_v54, %v1754_v54 }
 0x1ed   : > { %v1814_v28 = vadd.f32 %v1813_v9, %v1812_v61  ;;  %v1821_v15 = vsel %vm928_vm4, %v1784_v29, 0.0  ;;  %v1787_v27 = vmul.f32 %v1755_v32, %v1755_v32  ;;  %v1789_v0 = vmul.f32 %v1757_v14, %v1757_v14 }
 0x1ee   : > { %v1823_v42 = vsel %vm928_vm4, %v1785_v59, 0.0  ;;  %v1788_v3 = vmul.f32 %v1756_v39, %v1756_v39  ;;  %v1825_v53 = vsel %vm928_vm4, %v1786_v43, 0.0  ;;  %v1790_v8 = vmul.f32 %v1758_v52, %v1758_v52 }
 0x1ef   : > { %v1816_v25 = vadd.f32 %v1815_v34, %v1814_v28  ;;  %v1827_v17 = vsel %vm928_vm4, %v1787_v27, 0.0  ;;  %v1791_v1 = vmul.f32 %v3353_v23, %v3353_v23  ;;  %v1831_v32 = vsel %vm928_vm4, %v1789_v0, 0.0 }
 0x1f0   : > { %v1829_v36 = vsel %vm928_vm4, %v1788_v3, 0.0  ;;  %v1792_v37 = vmul.f32 %v3356_v4, %v3356_v4  ;;  %v1833_v55 = vsel %vm928_vm4, %v1790_v8, 0.0  ;;  %v1793_v14 = vmul.f32 %v3359_v13, %v3359_v13 }
 0x1f1   : > { %v1818_v16 = vadd.f32 %v1817_v30, %v1816_v25  ;;  %v1835_v52 = vsel %vm928_vm4, %v1791_v1, 0.0  ;;  %v1794_v21 = vmul.f32 %v3362_v10, %v3362_v10  ;;  %v1795_v41 = vmul.f32 %v3365_v2, %v3365_v2 }
 0x1f2   : > { %v1837_v23 = vsel %vm928_vm4, %v1792_v37, 0.0  ;;  %v1839_v4 = vsel %vm928_vm4, %v1793_v14, 0.0  ;;  %v1796_v61 = vmul.f32 %v3368_v46, %v3368_v46  ;;  %v1797_v47 = vmul.f32 %v3371_v18, %v3371_v18 }
 0x1f3   : > { %v1820_v45 = vadd.f32 %v1819_v56, %v1818_v16  ;;  %v1841_v13 = vsel %vm928_vm4, %v1794_v21, 0.0  ;;  %v1843_v10 = vsel %vm928_vm4, %v1795_v41, 0.0  ;;  %v1798_v28 = vmul.f32 %v3374_v57, %v3374_v57 }
 0x1f4   : > { %v1845_v2 = vsel %vm928_vm4, %v1796_v61, 0.0  ;;  %v1799_v22 = vmul.f32 %v3377_v7, %v3377_v7  ;;  %v1847_v46 = vsel %vm928_vm4, %v1797_v47, 0.0  ;;  %v1800_v25 = vmul.f32 %v3380_v5, %v3380_v5 }
 0x1f5   : > { %v1822_v31 = vadd.f32 %v1821_v15, %v1820_v45  ;;  %v1849_v18 = vsel %vm928_vm4, %v1798_v28, 0.0  ;;  %v1801_v29 = vmul.f32 %v3383_v19, %v3383_v19  ;;  %v1802_v16 = vmul.f32 %v3386_v35, %v3386_v35 }
 0x1f6   : > { %v1851_v57 = vsel %vm928_vm4, %v1799_v22, 0.0  ;;  %v1853_v7 = vsel %vm928_vm4, %v1800_v25, 0.0  ;;  %v1803_v56 = vmul.f32 %v3389_v33, %v3389_v33  ;;  %v1804_v39 = vmul.f32 %v3392_v11, %v3392_v11 }
 0x1f7   : > { %v1824_v49 = vadd.f32 %v1823_v42, %v1822_v31  ;;  %v1855_v5 = vsel %vm928_vm4, %v1801_v29, 0.0  ;;  %v1857_v19 = vsel %vm928_vm4, %v1802_v16, 0.0  ;;  %v1805_v15 = vmul.f32 %v3395_v26, %v3395_v26 }
 0x1f8   : > { %v1859_v35 = vsel %vm928_vm4, %v1803_v56, 0.0  ;;  %v1806_v27 = vmul.f32 %v3397_v58, %v3397_v58  ;;  %v1861_v33 = vsel %vm928_vm4, %v1804_v39, 0.0  ;;  %v1809_v0 = vmul.f32 %v3403_v6, %v3403_v6 }
 0x1f9   : > { %v1826_v63 = vadd.f32 %v1825_v53, %v1824_v49  ;;  %v1807_v49 = vmul.f32 %v3399_v20, %v3399_v20  ;;  %v1863_v11 = vsel %vm928_vm4, %v1805_v15, 0.0  ;;  %v1808_v53 = vmul.f32 %v3401_v38, %v3401_v38 }
 0x1fa   : > { %v1865_v26 = vsel %vm928_vm4, %v1806_v27, 0.0  ;;  %v1871_v20 = vsel %vm928_vm4, %v1809_v0, 0.0 }
 0x1fb   : > { %v1828_v51 = vadd.f32 %v1827_v17, %v1826_v63  ;;  %v1867_v58 = vsel %vm928_vm4, %v1807_v49, 0.0 }
 0x1fd   : > { %v1830_v50 = vadd.f32 %v1829_v36, %v1828_v51  ;;  %v1869_v51 = vsel %vm928_vm4, %v1808_v53, 0.0 }
 0x1ff   : > { %v1832_v48 = vadd.f32 %v1831_v32, %v1830_v50 }
 0x201   : > { %v1834_v40 = vadd.f32 %v1833_v55, %v1832_v48 }
 0x203   : > { %v1836_v62 = vadd.f32 %v1835_v52, %v1834_v40 }
 0x205   : > { %v1838_v44 = vadd.f32 %v1837_v23, %v1836_v62 }
 0x207   : > { %v1840_v24 = vadd.f32 %v1839_v4, %v1838_v44 }
 0x209   : > { %v1842_v60 = vadd.f32 %v1841_v13, %v1840_v24 }
 0x20b   : > { %v1844_v9 = vadd.f32 %v1843_v10, %v1842_v60 }
 0x20d   : > { %v1846_v12 = vadd.f32 %v1845_v2, %v1844_v9 }
 0x20f   : > { %v1848_v34 = vadd.f32 %v1847_v46, %v1846_v12 }
 0x211   : > { %v1850_v54 = vadd.f32 %v1849_v18, %v1848_v34 }
 0x213   : > { %v1852_v30 = vadd.f32 %v1851_v57, %v1850_v54 }
 0x215   : > { %v1854_v59 = vadd.f32 %v1853_v7, %v1852_v30 }
 0x217   : > { %v1856_v45 = vadd.f32 %v1855_v5, %v1854_v59 }
 0x219   : > { %v1858_v43 = vadd.f32 %v1857_v19, %v1856_v45 }
 0x21b   : > { %v1860_v31 = vadd.f32 %v1859_v35, %v1858_v43 }
 0x21d   : > { %v1862_v42 = vadd.f32 %v1861_v33, %v1860_v31 }
 0x21f   : > { %v1864_v3 = vadd.f32 %v1863_v11, %v1862_v42 }
 0x221   : > { %v1866_v63 = vadd.f32 %v1865_v26, %v1864_v3 }
 0x223   : > { %v1868_v17 = vadd.f32 %v1867_v58, %v1866_v63 }
 0x225   : > { %v1870_v8 = vadd.f32 %v1869_v51, %v1868_v17 }
 0x227   : > { %v1872_v36 = vadd.f32 %v1871_v20, %v1870_v8 }
 0x229   : > { %v1873_v50 = vrot.slane %v1872_v36, 4 }
 0x22b   : > { %v1874_v1 = vadd.f32 %v1873_v50, %v1872_v36 }
 0x22d   : > { %v1875_v32 = vrot.slane %v1874_v1, 2 }
 0x22f   : > { %v1876_v48 = vadd.f32 %v1875_v32, %v1874_v1 }
 0x231   : > { %v1877_v38 = vrot.slane %v1876_v48, 1 }
 0x233   : > { %v1878_v37 = vadd.f32 %v1877_v38, %v1876_v48 }
 0x235   : > { %1879 = vst.msk [vmem:[%s295_s23] sm:$0x1] %vm1743_vm6, %v1878_v37 }
 0x236 PF: > { %s18_s24 = sadd.s32 1, %s2489_s24  }
 0x237   : > { %p15_p4 = scmp.ge.s32.totalorder %s18_s24, 4  }
 0x239   :  { %17 = sbr.rel (!%p15_p4) target bundleno = 1 (0x1), region = 96 }

// kernel: layer_forward.4
= control target key start
LH: loop header
LB: loop body
LE: loop exit
PB: predicated region body
PF: predicated region fallthrough
CT: control target
= control target key end

     0   :  { %s2681_s24 = smov 0   ;;  %s3732_s0 = inlined_call_operand.vmem [shape: f32[2,16,16,8], index: 0, kind: input, shape index: {}]   ;;  %s3733_s1 = inlined_call_operand.vmem [shape: f32[1,8], index: 1, kind: input, shape index: {}]   ;;  %s3734_s2 = inlined_call_operand.vmem [shape: f32[1,8], index: 2, kind: input, shape index: {}]   ;;  %s3735_s3 = inlined_call_operand.vmem [shape: bf16[3,24,8], index: 3, kind: input, shape index: {}]   ;;  %s3736_s4 = inlined_call_operand.vmem [shape: f32[1,8], index: 4, kind: input, shape index: {}]   ;;  %s3737_s5 = inlined_call_operand.vmem [shape: f32[2,16,16,8], index: 5, kind: output, shape index: {0}]   ;;  %s3738_s6 = inlined_call_operand.vmem [shape: f32[2,1,8], index: 6, kind: output, shape index: {1}]   ;;  %s3739_s7 = inlined_call_operand.vmem [shape: f32[2,1,8], index: 7, kind: output, shape index: {2}]  }
   0x1 LB: > { %s2111_s25 = sadd.s32 4294967295, %s2636_s24   ;;  %p2115_p0 = scmp.ge.s32.totalorder %s2636_s24, 1  ;;  %s2636_s24 = sphi %s2681_s24, %s18_s24  }
   0x2   : > { %p242_p1 = scmp.lt.s32.totalorder %s2636_s24, 3 }
   0x4   : > { %p243_p2 = pnand %p2115_p0, %p242_p1 }
   0x5   : > { %p280_p3 = scmp.lt.s32.totalorder (!%p243_p2), %s2111_s25, 1  ;;  %v2694_v0 = vld [vmem:[%s3733_s1] ss:$0 sm:$0xff] (!%p243_p2)  ;;  %vm471_vm0 = vcmask (!%p243_p2), 1040384   ;;  %vm822_vm1 = vcmask (!%p243_p2), 1045504   ;;  %v2638_v7 = vmov (!%p243_p2), 0.0  }
   0x6   : > { %246 = sbr.rel (%p243_p2) target bundleno = 588 (0x24c), region = 40  ;;  %v2700_v1 = vld [vmem:[%s3734_s2] ss:$0 sm:$0xff] (!%p243_p2)  ;;  %v2714_v8 = vrot.slane (!%p243_p2), %v2638_v7, 2  ;;  %vm640_vm2 = vcmask (!%p243_p2), 1046528   ;;  %v641_v13 = vrot.slane (!%p243_p2), %v2638_v7, 1 }
   0x7   : > { %v2624_v55 = vld [vmem:[%s3735_s3] sm:$0xff] (!%p243_p2)   ;;  %v2763_v60 = vld [vmem:[%s3735_s3 + $0xc] sm:$0xff] (!%p243_p2)   ;;  %s2639_s15 = smov (!%p243_p2), 16   ;;  %s2640_s16 = smov (!%p243_p2), 8   ;;  %vm1150_vm3 = vcmask (!%p243_p2), 1043456   ;;  %vm1004_vm4 = vcmask (!%p243_p2), 64512  }
   0x8   : > { %2241 = vmatprep.subr.bf16.mxu1 (!%p243_p2), %v2624_v55  ;;  %2277 = vmatprep.subr.bf16.mxu0 (!%p243_p2), %v2763_v60  ;;  %vm1038_vm5 = vcmask (!%p243_p2), 130048   ;;  %vm1101_vm6 = vcmask (!%p243_p2), 195584   ;;  %vm1869_vm7 = vcmask (!%p243_p2), 57344  }
   0x9   : > { %2242 = vmatpush3.bf16.msra.mxu1 (!%p243_p2), %v2624_v55  ;;  %2278 = vmatpush3.bf16.msra.mxu0 (!%p243_p2), %v2763_v60 }
   0xd   : > { %s3741_s25 = smov (!%p280_p3, %s2111_s25), 1 }
   0xe   : > { %s2185_s28 = sshll.u32 %s3741_s25, 8  ;;  %s292_s11 = scalar_lea.vmem %s3738_s6, %s3741_s25 }
   0xf   : > { %s2707_s10 = scalar_lea.vmem %s3732_s0, %s2185_s28  ;;  %s3340_s9 = scalar_lea.vmem %s3737_s5, %s2185_s28 }
  0x10   : > { %v297_v2 = vld [vmem:[%s2707_s10] sm:$0xff]  ;;  %v298_v3 = vld [vmem:[%s2707_s10 + $0x8] sm:$0xff]  ;;  %v299_v4 = vld [vmem:[%s2707_s10 + $0x10] sm:$0xff]  ;;  %s295_s14 = scalar_lea.vmem %s3739_s7, %s3741_s25 }
  0x11   : > { %v336_v5 = vmul.f32 %v2694_v0, %v297_v2  ;;  %v337_v6 = vmul.f32 %v2694_v0, %v298_v3  ;;  %v300_v9 = vld [vmem:[%s2707_s10 + $0x18] sm:$0xff]  ;;  %v338_v10 = vmul.f32 %v2694_v0, %v299_v4  ;;  %v301_v11 = vld [vmem:[%s2707_s10 + $0x20] sm:$0xff]  ;;  %v302_v12 = vld [vmem:[%s2707_s10 + $0x28] sm:$0xff] }
  0x12   : > { %v339_v14 = vmul.f32 %v2694_v0, %v300_v9  ;;  %v340_v15 = vmul.f32 %v2694_v0, %v301_v11  ;;  %v341_v16 = vmul.f32 %v2694_v0, %v302_v12  ;;  %v303_v17 = vld [vmem:[%s2707_s10 + $0x30] sm:$0xff]  ;;  %v304_v18 = vld [vmem:[%s2707_s10 + $0x38] sm:$0xff] }
  0x13   : > { %v375_v19 = vadd.f32 %v2700_v1, %v336_v5  ;;  %v376_v20 = vadd.f32 %v2700_v1, %v337_v6  ;;  %v377_v21 = vadd.f32 %v2700_v1, %v338_v10  ;;  %v342_v22 = vmul.f32 %v2694_v0, %v303_v17 }
  0x14   : > { %v378_v23 = vadd.f32 %v2700_v1, %v339_v14  ;;  %v379_v24 = vadd.f32 %v2700_v1, %v340_v15  ;;  %v380_v25 = vadd.f32 %v2700_v1, %v341_v16  ;;  %v343_v26 = vmul.f32 %v2694_v0, %v304_v18 }
  0x15   : > { %v407_v27 = vmax.f32 %v375_v19, 0.0  ;;  %v408_v28 = vmax.f32 %v376_v20, 0.0  ;;  %v409_v29 = vmax.f32 %v377_v21, 0.0  ;;  %v381_v30 = vadd.f32 %v2700_v1, %v342_v22 }
  0x16   : > { %v410_v31 = vmax.f32 %v378_v23, 0.0  ;;  %v411_v32 = vmax.f32 %v379_v24, 0.0  ;;  %v412_v33 = vmax.f32 %v380_v25, 0.0  ;;  %v382_v34 = vadd.f32 %v2700_v1, %v343_v26 }
  0x17   : > { %v472_v35 = vrot.slane %v407_v27, 7  ;;  %v473_v36 = vrot.slane %v408_v28, 7  ;;  %v475_v37 = vrot.slane %v409_v29, 7  ;;  %v413_v38 = vmax.f32 %v381_v30, 0.0  ;;  %v305_v27 = vld [vmem:[%s2707_s10 + $0x40] sm:$0xff]  ;;  %v306_v28 = vld [vmem:[%s2707_s10 + $0x48] sm:$0xff] }
  0x18   : > { %v476_v39 = vrot.slane %v410_v31, 7  ;;  %v478_v40 = vrot.slane %v411_v32, 7  ;;  %v479_v41 = vrot.slane %v412_v33, 7  ;;  %v414_v42 = vmax.f32 %v382_v34, 0.0 }
  0x19   : > { %v2736_v43 = vsel %vm471_vm0, %v472_v35, %v473_v36  ;;  %v2739_v44 = vsel %vm471_vm0, 0.0, %v472_v35  ;;  %v2742_v45 = vsel %vm471_vm0, 0.0, %v475_v37  ;;  %v584_v46 = vsel %vm471_vm0, %v473_v36, 0.0 }
  0x1a   : > { %v825_v47 = vrot.slane %v2739_v44, 2  ;;  %v826_v48 = vrot.slane %v2736_v43, 2  ;;  %v643_v49 = vrot.slane %v2739_v44, 1  ;;  %v644_v50 = vrot.slane %v2736_v43, 1 }
  0x1b   : > { %v2750_v51 = vsel %vm471_vm0, %v475_v37, %v476_v39  ;;  %v828_v52 = vrot.slane %v584_v46, 2  ;;  %v830_v53 = vrot.slane %v2742_v45, 2  ;;  %v646_v54 = vrot.slane %v584_v46, 1 }
  0x1c   : > { %v827_v56 = vsel %vm822_vm1, %v825_v47, %v826_v48  ;;  %v645_v57 = vsel %vm640_vm2, %v643_v49, %v644_v50  ;;  %v831_v58 = vrot.slane %v2750_v51, 2  ;;  %v648_v59 = vrot.slane %v2742_v45, 1 }
  0x1d   : > { %v2474_v61 = vpack.i.bf16 %v827_v56, %v2714_v8  ;;  %v2464_v62 = vpack.i.bf16 %v645_v57, %v641_v13  ;;  %v829_v63 = vsel %vm822_vm1, %v826_v48, %v828_v52  ;;  %v647_v2 = vsel %vm640_vm2, %v644_v50, %v646_v54  ;;  %v309_v50 = vld [vmem:[%s2707_s10 + $0x60] sm:$0xff]  ;;  %v310_v52 = vld [vmem:[%s2707_s10 + $0x68] sm:$0xff]  ;;  %v311_v57 = vld [vmem:[%s2707_s10 + $0x70] sm:$0xff] }
  0x1e   : > { %v832_v3 = vsel %vm822_vm1, %v830_v53, %v831_v58  ;;  %v649_v4 = vrot.slane %v2750_v51, 1  ;;  %v2771_v5 = vsel %vm471_vm0, %v478_v40, %v479_v41  ;;  %v2774_v6 = vsel %vm471_vm0, 0.0, %v478_v40 }
  0x1f   : > { %2475 = vrot.lane.b32.xlu1 %v2474_v61, %s2639_s15  ;;  %2465 = vrot.lane.b32.xlu0 %v2464_v62, %s2640_s16  ;;  %v2479_v7 = vpack.i.bf16 %v832_v3, %v829_v63  ;;  %v585_v8 = vsel %vm471_vm0, %v476_v39, 0.0  ;;  %v835_v9 = vrot.slane %v2774_v6, 2  ;;  %v836_v10 = vrot.slane %v2771_v5, 2 }
  0x20   : > { %v650_v11 = vsel %vm640_vm2, %v648_v59, %v649_v4  ;;  %v833_v12 = vrot.slane %v585_v8, 2  ;;  %v651_v13 = vrot.slane %v585_v8, 1  ;;  %v653_v14 = vrot.slane %v2774_v6, 1  ;;  %v2829_v59 = vld [vmem:[%s3735_s3 + $0x14] ss:$0 sps:$4 sm:$0xff]  }
  0x21   : > { %v2469_v15 = vpack.i.bf16 %v650_v11, %v647_v2  ;;  %v837_v16 = vsel %vm822_vm1, %v835_v9, %v836_v10  ;;  %v654_v17 = vrot.slane %v2771_v5, 1  ;;  %v481_v18 = vrot.slane %v413_v38, 7  ;;  %v312_v9 = vld [vmem:[%s2707_s10 + $0x78] sm:$0xff]  ;;  %2450 = vmatprep.subr.msk.bf16.mxu0 %vm1150_vm3, %v2829_v59 }
  0x22   : > { %v834_v19 = vsel %vm822_vm1, %v831_v58, %v833_v12  ;;  %v652_v20 = vsel %vm640_vm2, %v649_v4, %v651_v13  ;;  %v482_v21 = vrot.slane %v414_v42, 7  ;;  %v586_v22 = vsel %vm471_vm0, %v479_v41, 0.0  ;;  %v307_v41 = vld [vmem:[%s2707_s10 + $0x50] sm:$0xff]  ;;  %v308_v42 = vld [vmem:[%s2707_s10 + $0x58] sm:$0xff]  ;;  %v2824_v58 = vld [vmem:[%s3735_s3 + $0x8] ss:$0 sps:$4 sm:$0xff]  }
  0x23   : > { %2480 = vrot.lane.b32.xlu1 %v2479_v7, %s2639_s15  ;;  %2470 = vrot.lane.b32.xlu0 %v2469_v15, %s2640_s16  ;;  %v2489_v23 = vpack.i.bf16 %v837_v16, %v834_v19  ;;  %v655_v24 = vsel %vm640_vm2, %v653_v14, %v654_v17  ;;  %v2794_v25 = vsel %vm471_vm0, 0.0, %v481_v18  ;;  %v838_v26 = vrot.slane %v586_v22, 2 }
  0x24   : > { %v2484_v29 = vpack.i.bf16 %v655_v24, %v652_v20  ;;  %v2799_v30 = vsel %vm471_vm0, %v481_v18, %v482_v21  ;;  %v840_v31 = vrot.slane %v2794_v25, 2  ;;  %v656_v32 = vrot.slane %v586_v22, 1  ;;  %2449 = vmatprep.subr.msk.bf16.mxu1 %vm1150_vm3, %v2824_v58 }
  0x25   : > { %v839_v33 = vsel %vm822_vm1, %v836_v10, %v838_v26  ;;  %v841_v34 = vrot.slane %v2799_v30, 2  ;;  %v658_v35 = vrot.slane %v2794_v25, 1  ;;  %v659_v36 = vrot.slane %v2799_v30, 1 }
  0x26   : > { %v657_v37 = vsel %vm640_vm2, %v654_v17, %v656_v32  ;;  %v344_v38 = vmul.f32 %v2694_v0, %v305_v27  ;;  %v345_v39 = vmul.f32 %v2694_v0, %v306_v28  ;;  %v587_v40 = vsel %vm471_vm0, %v482_v21, 0.0 }
  0x27   : > { %2490 = vrot.lane.b32.xlu1 %v2489_v23, %s2639_s15  ;;  %2485 = vrot.lane.b32.xlu0 %v2484_v29, %s2640_s16  ;;  %v842_v46 = vsel %vm822_vm1, %v840_v31, %v841_v34  ;;  %v660_v47 = vsel %vm640_vm2, %v658_v35, %v659_v36  ;;  %v843_v48 = vrot.slane %v587_v40, 2  ;;  %v661_v49 = vrot.slane %v587_v40, 1 }
  0x28   : > { %v2499_v53 = vpack.i.bf16 %v842_v46, %v839_v33  ;;  %v2494_v54 = vpack.i.bf16 %v660_v47, %v657_v37  ;;  %v383_v55 = vadd.f32 %v2700_v1, %v344_v38  ;;  %v384_v56 = vadd.f32 %v2700_v1, %v345_v39 }
  0x29   : > { %v844_v61 = vsel %vm822_vm1, %v841_v34, %v843_v48  ;;  %v662_v62 = vsel %vm640_vm2, %v659_v36, %v661_v49  ;;  %v346_v63 = vmul.f32 %v2694_v0, %v307_v41  ;;  %v347_v2 = vmul.f32 %v2694_v0, %v308_v42 }
  0x2a   : > { %v415_v3 = vmax.f32 %v383_v55, 0.0  ;;  %v416_v4 = vmax.f32 %v384_v56, 0.0  ;;  %v348_v7 = vmul.f32 %v2694_v0, %v309_v50  ;;  %v349_v8 = vmul.f32 %v2694_v0, %v310_v52 }
  0x2b   : > { %2500 = vrot.lane.b32.xlu1 %v2499_v53, %s2639_s15  ;;  %2495 = vrot.lane.b32.xlu0 %v2494_v54, %s2640_s16  ;;  %v385_v10 = vadd.f32 %v2700_v1, %v346_v63  ;;  %v386_v11 = vadd.f32 %v2700_v1, %v347_v2  ;;  %v350_v12 = vmul.f32 %v2694_v0, %v311_v57 }
  0x2c   : > { %v484_v13 = vrot.slane %v415_v3, 7  ;;  %v485_v14 = vrot.slane %v416_v4, 7  ;;  %v387_v15 = vadd.f32 %v2700_v1, %v348_v7  ;;  %v388_v16 = vadd.f32 %v2700_v1, %v349_v8 }
  0x2d   : > { %v417_v17 = vmax.f32 %v385_v10, 0.0  ;;  %v418_v18 = vmax.f32 %v386_v11, 0.0  ;;  %v351_v19 = vmul.f32 %v2694_v0, %v312_v9  ;;  %v389_v20 = vadd.f32 %v2700_v1, %v350_v12 }
  0x2e   : > { %v2852_v21 = vsel %vm471_vm0, %v484_v13, %v485_v14  ;;  %v2855_v22 = vsel %vm471_vm0, 0.0, %v484_v13  ;;  %v588_v23 = vsel %vm471_vm0, %v485_v14, 0.0  ;;  %v419_v24 = vmax.f32 %v387_v15, 0.0  ;;  %v313_v14 = vld [vmem:[%s2707_s10 + $0x80] sm:$0xff]  ;;  %v314_v15 = vld [vmem:[%s2707_s10 + $0x88] sm:$0xff] }
  0x2f   : > { %v845_v26 = vrot.slane %v2855_v22, 2  ;;  %v846_v27 = vrot.slane %v2852_v21, 2  ;;  %v663_v28 = vrot.slane %v2855_v22, 1  ;;  %v664_v29 = vrot.slane %v2852_v21, 1 }
  0x30   : > { %v487_v31 = vrot.slane %v417_v17, 7  ;;  %v488_v32 = vrot.slane %v418_v18, 7  ;;  %v848_v33 = vrot.slane %v588_v23, 2  ;;  %v666_v34 = vrot.slane %v588_v23, 1 }
  0x31   : > { %v847_v35 = vsel %vm822_vm1, %v845_v26, %v846_v27  ;;  %v665_v36 = vsel %vm640_vm2, %v663_v28, %v664_v29  ;;  %v420_v37 = vmax.f32 %v388_v16, 0.0  ;;  %v490_v38 = vrot.slane %v419_v24, 7  ;;  %v315_v24 = vld [vmem:[%s2707_s10 + $0x90] sm:$0xff]  ;;  %v316_v26 = vld [vmem:[%s2707_s10 + $0x98] sm:$0xff] }
  0x32   : > { %v2509_v39 = vpack.i.bf16 %v847_v35, %v844_v61  ;;  %v2504_v40 = vpack.i.bf16 %v665_v36, %v662_v62  ;;  %v2865_v41 = vsel %vm471_vm0, %v487_v31, %v488_v32  ;;  %v2868_v42 = vsel %vm471_vm0, 0.0, %v487_v31 }
  0x33   : > { %v849_v46 = vsel %vm822_vm1, %v846_v27, %v848_v33  ;;  %v850_v47 = vrot.slane %v2868_v42, 2  ;;  %v851_v48 = vrot.slane %v2865_v41, 2  ;;  %v667_v49 = vsel %vm640_vm2, %v664_v29, %v666_v34 }
  0x34   : > { %2510 = vrot.lane.b32.xlu1 %v2509_v39, %s2639_s15  ;;  %2505 = vrot.lane.b32.xlu0 %v2504_v40, %s2640_s16  ;;  %v668_v50 = vrot.slane %v2868_v42, 1  ;;  %v669_v52 = vrot.slane %v2865_v41, 1  ;;  %v491_v53 = vrot.slane %v420_v37, 7  ;;  %v2879_v54 = vsel %vm471_vm0, 0.0, %v490_v38 }
  0x35   : > { %v852_v55 = vsel %vm822_vm1, %v850_v47, %v851_v48  ;;  %v589_v56 = vsel %vm471_vm0, %v488_v32, 0.0  ;;  %v855_v57 = vrot.slane %v2879_v54, 2  ;;  %v673_v61 = vrot.slane %v2879_v54, 1 }
  0x36   : > { %v2519_v62 = vpack.i.bf16 %v852_v55, %v849_v46  ;;  %v670_v63 = vsel %vm640_vm2, %v668_v50, %v669_v52  ;;  %v2887_v2 = vsel %vm471_vm0, %v490_v38, %v491_v53  ;;  %v853_v3 = vrot.slane %v589_v56, 2 }
  0x37   : > { %v2514_v4 = vpack.i.bf16 %v670_v63, %v667_v49  ;;  %v856_v7 = vrot.slane %v2887_v2, 2  ;;  %v671_v8 = vrot.slane %v589_v56, 1  ;;  %v674_v9 = vrot.slane %v2887_v2, 1 }
  0x38   : > { %2520 = vrot.lane.b32.xlu1 %v2519_v62, %s2639_s15  ;;  %v854_v10 = vsel %vm822_vm1, %v851_v48, %v853_v3  ;;  %v390_v11 = vadd.f32 %v2700_v1, %v351_v19  ;;  %v421_v12 = vmax.f32 %v389_v20, 0.0  ;;  %v590_v13 = vsel %vm471_vm0, %v491_v53, 0.0  ;;  %v317_v3 = vld [vmem:[%s2707_s10 + $0xa0] sm:$0xff] }
  0x39   : > { %2515 = vrot.lane.b32.xlu0 %v2514_v4, %s2640_s16  ;;  %v857_v16 = vsel %vm822_vm1, %v855_v57, %v856_v7  ;;  %v672_v17 = vsel %vm640_vm2, %v669_v52, %v671_v8  ;;  %v675_v18 = vsel %vm640_vm2, %v673_v61, %v674_v9  ;;  %v858_v23 = vrot.slane %v590_v13, 2 }
  0x3a   : > { %v2529_v27 = vpack.i.bf16 %v857_v16, %v854_v10  ;;  %v2524_v28 = vpack.i.bf16 %v675_v18, %v672_v17  ;;  %v422_v29 = vmax.f32 %v390_v11, 0.0  ;;  %v493_v19 = vrot.slane %v421_v12, 7 }
  0x3b   : > { %v859_v20 = vsel %vm822_vm1, %v856_v7, %v858_v23  ;;  %v676_v31 = vrot.slane %v590_v13, 1  ;;  %v352_v32 = vmul.f32 %v2694_v0, %v313_v14  ;;  %v353_v33 = vmul.f32 %v2694_v0, %v314_v15 }
  0x3c   : > { %2530 = vrot.lane.b32.xlu1 %v2529_v27, %s2639_s15  ;;  %v494_v34 = vrot.slane %v422_v29, 7  ;;  %v2908_v35 = vsel %vm471_vm0, 0.0, %v493_v19  ;;  %v354_v36 = vmul.f32 %v2694_v0, %v315_v24  ;;  %v355_v37 = vmul.f32 %v2694_v0, %v316_v26  ;;  %v318_v27 = vld [vmem:[%s2707_s10 + $0xa8] sm:$0xff] }
  0x3d   : > { %2525 = vrot.lane.b32.xlu0 %v2524_v28, %s2640_s16  ;;  %v860_v38 = vrot.slane %v2908_v35, 2  ;;  %v677_v39 = vsel %vm640_vm2, %v674_v9, %v676_v31  ;;  %v678_v40 = vrot.slane %v2908_v35, 1  ;;  %v391_v46 = vadd.f32 %v2700_v1, %v352_v32 }
  0x3e   : > { %v2918_v47 = vsel %vm471_vm0, %v493_v19, %v494_v34  ;;  %v392_v48 = vadd.f32 %v2700_v1, %v353_v33  ;;  %v591_v49 = vsel %vm471_vm0, %v494_v34, 0.0  ;;  %v393_v50 = vadd.f32 %v2700_v1, %v354_v36  ;;  %v319_v36 = vld [vmem:[%s2707_s10 + $0xb0] sm:$0xff] }
  0x3f   : > { %v861_v52 = vrot.slane %v2918_v47, 2  ;;  %v679_v53 = vrot.slane %v2918_v47, 1  ;;  %v423_v55 = vmax.f32 %v391_v46, 0.0  ;;  %v863_v56 = vrot.slane %v591_v49, 2 }
  0x40   : > { %v424_v57 = vmax.f32 %v392_v48, 0.0  ;;  %v681_v61 = vrot.slane %v591_v49, 1  ;;  %v394_v62 = vadd.f32 %v2700_v1, %v355_v37  ;;  %v425_v63 = vmax.f32 %v393_v50, 0.0  ;;  %v320_v37 = vld [vmem:[%s2707_s10 + $0xb8] sm:$0xff] }
  0x41   : > { %v862_v4 = vsel %vm822_vm1, %v860_v38, %v861_v52  ;;  %v680_v7 = vsel %vm640_vm2, %v678_v40, %v679_v53  ;;  %v496_v8 = vrot.slane %v423_v55, 7  ;;  %v864_v9 = vsel %vm822_vm1, %v861_v52, %v863_v56 }
  0x42   : > { %v2539_v10 = vpack.i.bf16 %v862_v4, %v859_v20  ;;  %v2534_v11 = vpack.i.bf16 %v680_v7, %v677_v39  ;;  %v497_v12 = vrot.slane %v424_v57, 7  ;;  %v682_v13 = vsel %vm640_vm2, %v679_v53, %v681_v61  ;;  %v321_v4 = vld [vmem:[%s2707_s10 + $0xc0] sm:$0xff] }
  0x43   : > { %v2932_v14 = vsel %vm471_vm0, 0.0, %v496_v8  ;;  %v426_v15 = vmax.f32 %v394_v62, 0.0  ;;  %v499_v16 = vrot.slane %v425_v63, 7  ;;  %v356_v17 = vmul.f32 %v2694_v0, %v317_v3 }
  0x44   : > { %2540 = vrot.lane.b32.xlu1 %v2539_v10, %s2639_s15  ;;  %2535 = vrot.lane.b32.xlu0 %v2534_v11, %s2640_s16  ;;  %v2938_v18 = vsel %vm471_vm0, %v496_v8, %v497_v12  ;;  %v865_v23 = vrot.slane %v2932_v14, 2  ;;  %v683_v24 = vrot.slane %v2932_v14, 1  ;;  %v592_v26 = vsel %vm471_vm0, %v497_v12, 0.0  ;;  %v322_v11 = vld [vmem:[%s2707_s10 + $0xc8] sm:$0xff] }
  0x45   : > { %v866_v28 = vrot.slane %v2938_v18, 2  ;;  %v684_v29 = vrot.slane %v2938_v18, 1  ;;  %v500_v19 = vrot.slane %v426_v15, 7  ;;  %v2947_v20 = vsel %vm471_vm0, 0.0, %v499_v16 }
  0x46   : > { %v868_v31 = vrot.slane %v592_v26, 2  ;;  %v870_v32 = vrot.slane %v2947_v20, 2  ;;  %v686_v33 = vrot.slane %v592_v26, 1  ;;  %v688_v34 = vrot.slane %v2947_v20, 1 }
  0x47   : > { %v867_v38 = vsel %vm822_vm1, %v865_v23, %v866_v28  ;;  %v685_v39 = vsel %vm640_vm2, %v683_v24, %v684_v29  ;;  %v2956_v40 = vsel %vm471_vm0, %v499_v16, %v500_v19  ;;  %v357_v46 = vmul.f32 %v2694_v0, %v318_v27  ;;  %v323_v23 = vld [vmem:[%s2707_s10 + $0xd0] sm:$0xff]  ;;  %v324_v27 = vld [vmem:[%s2707_s10 + $0xd8] sm:$0xff] }
  0x48   : > { %v2549_v48 = vpack.i.bf16 %v867_v38, %v864_v9  ;;  %v2544_v49 = vpack.i.bf16 %v685_v39, %v682_v13  ;;  %v869_v50 = vsel %vm822_vm1, %v866_v28, %v868_v31  ;;  %v871_v52 = vrot.slane %v2956_v40, 2 }
  0x49   : > { %v687_v53 = vsel %vm640_vm2, %v684_v29, %v686_v33  ;;  %v689_v55 = vrot.slane %v2956_v40, 1  ;;  %v358_v56 = vmul.f32 %v2694_v0, %v319_v36  ;;  %v359_v57 = vmul.f32 %v2694_v0, %v320_v37 }
  0x4a   : > { %2550 = vrot.lane.b32.xlu1 %v2549_v48, %s2639_s15  ;;  %2545 = vrot.lane.b32.xlu0 %v2544_v49, %s2640_s16  ;;  %v872_v61 = vsel %vm822_vm1, %v870_v32, %v871_v52  ;;  %v395_v62 = vadd.f32 %v2700_v1, %v356_v17  ;;  %v396_v63 = vadd.f32 %v2700_v1, %v357_v46  ;;  %v593_v3 = vsel %vm471_vm0, %v500_v19, 0.0 }
  0x4b   : > { %v2559_v7 = vpack.i.bf16 %v872_v61, %v869_v50  ;;  %v690_v8 = vsel %vm640_vm2, %v688_v34, %v689_v55  ;;  %v397_v9 = vadd.f32 %v2700_v1, %v358_v56  ;;  %v398_v10 = vadd.f32 %v2700_v1, %v359_v57 }
  0x4c   : > { %v2554_v12 = vpack.i.bf16 %v690_v8, %v687_v53  ;;  %v427_v13 = vmax.f32 %v395_v62, 0.0  ;;  %v428_v15 = vmax.f32 %v396_v63, 0.0  ;;  %v691_v16 = vrot.slane %v593_v3, 1 }
  0x4d   : > { %v429_v17 = vmax.f32 %v397_v9, 0.0  ;;  %v430_v24 = vmax.f32 %v398_v10, 0.0  ;;  %v873_v26 = vrot.slane %v593_v3, 2  ;;  %v360_v28 = vmul.f32 %v2694_v0, %v321_v4 }
  0x4e   : > { %2560 = vrot.lane.b32.xlu1 %v2559_v7, %s2639_s15  ;;  %2555 = vrot.lane.b32.xlu0 %v2554_v12, %s2640_s16  ;;  %v502_v29 = vrot.slane %v427_v13, 7  ;;  %v503_v19 = vrot.slane %v428_v15, 7  ;;  %v692_v31 = vsel %vm640_vm2, %v689_v55, %v691_v16  ;;  %v361_v32 = vmul.f32 %v2694_v0, %v322_v11 }
  0x4f   : > { %v505_v33 = vrot.slane %v429_v17, 7  ;;  %v506_v34 = vrot.slane %v430_v24, 7  ;;  %v874_v36 = vsel %vm822_vm1, %v871_v52, %v873_v26  ;;  %v362_v37 = vmul.f32 %v2694_v0, %v323_v23  ;;  %v325_v26 = vld [vmem:[%s2707_s10 + $0xe0] sm:$0xff] }
  0x50   : > { %v2986_v38 = vsel %vm471_vm0, %v502_v29, %v503_v19  ;;  %v594_v39 = vsel %vm471_vm0, %v503_v19, 0.0  ;;  %v2990_v46 = vsel %vm471_vm0, 0.0, %v502_v29  ;;  %v363_v48 = vmul.f32 %v2694_v0, %v324_v27  ;;  %v326_v27 = vld [vmem:[%s2707_s10 + $0xe8] sm:$0xff] }
  0x51   : > { %v2994_v49 = vsel %vm471_vm0, %v505_v33, %v506_v34  ;;  %v2997_v50 = vsel %vm471_vm0, 0.0, %v505_v33  ;;  %v694_v52 = vrot.slane %v2986_v38, 1  ;;  %v696_v53 = vrot.slane %v594_v39, 1 }
  0x52   : > { %v698_v55 = vrot.slane %v2997_v50, 1  ;;  %v699_v56 = vrot.slane %v2994_v49, 1  ;;  %v693_v57 = vrot.slane %v2990_v46, 1  ;;  %v876_v61 = vrot.slane %v2986_v38, 2 }
  0x53   : > { %v697_v62 = vsel %vm640_vm2, %v694_v52, %v696_v53  ;;  %v878_v63 = vrot.slane %v594_v39, 2  ;;  %v880_v3 = vrot.slane %v2997_v50, 2  ;;  %v881_v4 = vrot.slane %v2994_v49, 2 }
  0x54   : > { %v700_v7 = vsel %vm640_vm2, %v698_v55, %v699_v56  ;;  %v695_v8 = vsel %vm640_vm2, %v693_v57, %v694_v52  ;;  %v875_v9 = vrot.slane %v2990_v46, 2  ;;  %v399_v10 = vadd.f32 %v2700_v1, %v360_v28 }
  0x55   : > { %v2569_v11 = vpack.i.bf16 %v700_v7, %v697_v62  ;;  %v2564_v12 = vpack.i.bf16 %v695_v8, %v692_v31  ;;  %v879_v13 = vsel %vm822_vm1, %v876_v61, %v878_v63  ;;  %v882_v15 = vsel %vm822_vm1, %v880_v3, %v881_v4 }
  0x56   : > { %v2579_v16 = vpack.i.bf16 %v882_v15, %v879_v13  ;;  %v877_v23 = vsel %vm822_vm1, %v875_v9, %v876_v61  ;;  %v400_v17 = vadd.f32 %v2700_v1, %v361_v32  ;;  %v401_v24 = vadd.f32 %v2700_v1, %v362_v37 }
  0x57   : > { %2570 = vrot.lane.b32.xlu1 %v2569_v11, %s2640_s16  ;;  %2565 = vrot.lane.b32.xlu0 %v2564_v12, %s2640_s16  ;;  %v2574_v28 = vpack.i.bf16 %v877_v23, %v874_v36  ;;  %v402_v29 = vadd.f32 %v2700_v1, %v363_v48  ;;  %v431_v19 = vmax.f32 %v399_v10, 0.0  ;;  %v595_v31 = vsel %vm471_vm0, %v506_v34, 0.0 }
  0x58   : > { %v432_v33 = vmax.f32 %v400_v17, 0.0  ;;  %v433_v39 = vmax.f32 %v401_v24, 0.0  ;;  %v701_v52 = vrot.slane %v595_v31, 1  ;;  %v883_v53 = vrot.slane %v595_v31, 2 }
  0x59   : > { %v434_v55 = vmax.f32 %v402_v29, 0.0  ;;  %v508_v32 = vrot.slane %v431_v19, 7  ;;  %v364_v37 = vmul.f32 %v2694_v0, %v325_v26  ;;  %v365_v57 = vmul.f32 %v2694_v0, %v326_v27  ;;  %v327_v29 = vld [vmem:[%s2707_s10 + $0xf0] sm:$0xff] }
  0x5a   : > { %v509_v61 = vrot.slane %v432_v33, 7  ;;  %v511_v62 = vrot.slane %v433_v39, 7  ;;  %v702_v63 = vsel %vm640_vm2, %v699_v56, %v701_v52  ;;  %v884_v36 = vsel %vm822_vm1, %v881_v4, %v883_v53 }
  0x5b   : > { %2580 = vrot.lane.b32.xlu1 %v2579_v16, %s2639_s15  ;;  %2575 = vrot.lane.b32.xlu0 %v2574_v28, %s2639_s15  ;;  %v512_v34 = vrot.slane %v434_v55, 7  ;;  %v3029_v48 = vsel %vm471_vm0, 0.0, %v508_v32  ;;  %v403_v3 = vadd.f32 %v2700_v1, %v364_v37  ;;  %v404_v7 = vadd.f32 %v2700_v1, %v365_v57 }
  0x5c   : > { %v3034_v8 = vsel %vm471_vm0, %v508_v32, %v509_v61  ;;  %v3037_v56 = vsel %vm471_vm0, 0.0, %v511_v62  ;;  %v596_v4 = vsel %vm471_vm0, %v509_v61, 0.0  ;;  %v703_v9 = vrot.slane %v3029_v48, 1 }
  0x5d   : > { %v3042_v10 = vsel %vm471_vm0, %v511_v62, %v512_v34  ;;  %v704_v11 = vrot.slane %v3034_v8, 1  ;;  %v706_v12 = vrot.slane %v596_v4, 1  ;;  %v708_v13 = vrot.slane %v3037_v56, 1 }
  0x5e   : > { %v709_v15 = vrot.slane %v3042_v10, 1  ;;  %v886_v16 = vrot.slane %v3034_v8, 2  ;;  %v888_v23 = vrot.slane %v596_v4, 2  ;;  %v885_v17 = vrot.slane %v3029_v48, 2  ;;  %v328_v4 = vld [vmem:[%s2707_s10 + $0xf8] sm:$0xff] }
  0x5f   : > { %v707_v24 = vsel %vm640_vm2, %v704_v11, %v706_v12  ;;  %v705_v26 = vsel %vm640_vm2, %v703_v9, %v704_v11  ;;  %v435_v27 = vmax.f32 %v403_v3, 0.0  ;;  %v436_v28 = vmax.f32 %v404_v7, 0.0 }
  0x60   : > { %v710_v19 = vsel %vm640_vm2, %v708_v13, %v709_v15  ;;  %v2584_v31 = vpack.i.bf16 %v705_v26, %v702_v63  ;;  %v889_v33 = vsel %vm822_vm1, %v886_v16, %v888_v23  ;;  %v887_v39 = vsel %vm822_vm1, %v885_v17, %v886_v16 }
  0x61   : > { %v2589_v52 = vpack.i.bf16 %v710_v19, %v707_v24  ;;  %v2594_v53 = vpack.i.bf16 %v887_v39, %v884_v36  ;;  %v514_v55 = vrot.slane %v435_v27, 7  ;;  %v515_v32 = vrot.slane %v436_v28, 7 }
  0x62   : > { %2585 = vrot.lane.b32.xlu0 %v2584_v31, %s2640_s16  ;;  %v597_v37 = vsel %vm471_vm0, %v512_v34, 0.0  ;;  %v890_v57 = vrot.slane %v3037_v56, 2  ;;  %v891_v61 = vrot.slane %v3042_v10, 2  ;;  %v366_v62 = vmul.f32 %v2694_v0, %v327_v29 }
  0x63   : > { %2590 = vrot.lane.b32.xlu1 %v2589_v52, %s2640_s16  ;;  %v3062_v63 = vsel %vm471_vm0, %v514_v55, %v515_v32  ;;  %v598_v3 = vsel %vm471_vm0, %v515_v32, 0.0  ;;  %v3066_v36 = vsel %vm471_vm0, 0.0, %v514_v55  ;;  %v711_v7 = vrot.slane %v597_v37, 1 }
  0x64   : > { %v714_v34 = vrot.slane %v3062_v63, 1  ;;  %v716_v9 = vrot.slane %v598_v3, 1  ;;  %v898_v11 = vrot.slane %v598_v3, 2  ;;  %v713_v12 = vrot.slane %v3066_v36, 1 }
  0x65   : > { %v712_v13 = vsel %vm640_vm2, %v709_v15, %v711_v7  ;;  %v895_v16 = vrot.slane %v3066_v36, 2  ;;  %v896_v23 = vrot.slane %v3062_v63, 2  ;;  %v893_v24 = vrot.slane %v597_v37, 2 }
  0x66   : > { %2595 = vrot.lane.b32.xlu0 %v2594_v53, %s2639_s15  ;;  %v715_v17 = vsel %vm640_vm2, %v713_v12, %v714_v34  ;;  %v367_v26 = vmul.f32 %v2694_v0, %v328_v4  ;;  %v717_v27 = vsel %vm640_vm2, %v714_v34, %v716_v9  ;;  %v892_v29 = vsel %vm822_vm1, %v890_v57, %v891_v61  ;;  %v3088_v0 = vld [vmem:[%s3735_s3 + $0x18] sm:$0xff]  }
  0x67   : > { %957 = vrot.lane.b32.xlu1 %v889_v33, %s2639_s15  ;;  %v2599_v28 = vpack.i.bf16 %v715_v17, %v712_v13  ;;  %v405_v15 = vadd.f32 %v2700_v1, %v366_v62  ;;  %v897_v19 = vsel %vm822_vm1, %v895_v16, %v896_v23  ;;  %v899_v31 = vsel %vm822_vm1, %v896_v23, %v898_v11 }
  0x68   : > { %v894_v39 = vsel %vm822_vm1, %v891_v61, %v893_v24  ;;  %v406_v52 = vadd.f32 %v2700_v1, %v367_v26  ;;  %v1152_v53 = vsel %vm1150_vm3, %v2824_v58, 0  ;;  %v3095_v37 = vsel %vm1150_vm3, %v2829_v59, 0 }
  0x69   : > { %v437_v33 = vmax.f32 %v405_v15, 0.0  ;;  %v2604_v55 = vpack.i.bf16 %v894_v39, %v892_v29  ;;  %2244 = vmatpush3.bf16.msra.mxu1 %v1152_v53  ;;  %v2609_v1 = vpack.i.bf16 %v899_v31, %v897_v19  ;;  %2280 = vmatpush3.bf16.msra.mxu0 %v3095_v37 }
  0x6a   : > { %2600 = vrot.lane.b32.xlu0 %v2599_v28, %s2640_s16  ;;  %v438_v32 = vmax.f32 %v406_v52, 0.0  ;;  %2349 = vmatprep.subr.bf16.mxu1 %v2763_v60 }
  0x6b   : > { %783 = vrot.lane.b32.xlu1 %v717_v27, %s2640_s16  ;;  %v517_v57 = vrot.slane %v437_v33, 7  ;;  %2313 = vmatprep.subr.bf16.mxu0 %v3088_v0 }
  0x6c   : > { %v518_v61 = vrot.slane %v438_v32, 7 }
  0x6d   : > { %v3102_v58 = vsel %vm471_vm0, 0.0, %v517_v57 }
  0x6e   : > { %2605 = vrot.lane.b32.xlu0 %v2604_v55, %s2639_s15  ;;  %v3106_v62 = vsel %vm471_vm0, %v517_v57, %v518_v61  ;;  %v599_v3 = vsel %vm471_vm0, %v518_v61, 0.0  ;;  %v718_v7 = vrot.slane %v3102_v58, 1  ;;  %v900_v4 = vrot.slane %v3102_v58, 2 }
  0x6f   : > { %2610 = vrot.lane.b32.xlu1 %v2609_v1, %s2639_s15  ;;  %v719_v34 = vrot.slane %v3106_v62, 1  ;;  %v721_v9 = vrot.slane %v599_v3, 1  ;;  %v901_v11 = vrot.slane %v3106_v62, 2  ;;  %v903_v12 = vrot.slane %v599_v3, 2 }
  0x71   : > { %v720_v13 = vsel %vm640_vm2, %v718_v7, %v719_v34  ;;  %v722_v16 = vsel %vm640_vm2, %v719_v34, %v721_v9  ;;  %v902_v23 = vsel %vm822_vm1, %v900_v4, %v901_v11  ;;  %v904_v17 = vsel %vm822_vm1, %v901_v11, %v903_v12 }
  0x72   : > { %v2614_v24 = vpack.i.bf16 %v722_v16, %v720_v13  ;;  %v2619_v26 = vpack.i.bf16 %v904_v17, %v902_v23 }
  0x74   : > { %2615 = vrot.lane.b32.xlu0 %v2614_v24, %s2640_s16  ;;  %2620 = vrot.lane.b32.xlu1 %v2619_v26, %s2639_s15 }
  0x91   : > { %v2476_v27 = vpop.permute.xlu1 %2475  ;;  %v2466_v28 = vpop.permute.xlu0 %2465 }
  0x92   : > { %v2477_v29 = vunpack.i.l.bf16 %v2476_v27  ;;  %v2468_v15 = vunpack.i.h.bf16 %v2466_v28  ;;  %v2467_v19 = vunpack.i.l.bf16 %v2466_v28  ;;  %v2478_v39 = vunpack.i.h.bf16 %v2476_v27 }
  0x94   : > { %v1005_v31 = vsel %vm1004_vm4, 0.0, %v2467_v19  ;;  %v1006_v55 = vsel %vm1004_vm4, %v2739_v44, %v2468_v15 }
  0x95   : > { %v2481_v52 = vpop.permute.xlu1 %2480  ;;  %v2471_v33 = vpop.permute.xlu0 %2470  ;;  %v1039_v53 = vsel %vm1038_vm5, %v1005_v31, %v2477_v29  ;;  %v1040_v34 = vsel %vm1038_vm5, %v1006_v55, %v2478_v39 }
  0x96   : > { %v2482_v32 = vunpack.i.l.bf16 %v2481_v52  ;;  %v2472_v1 = vunpack.i.l.bf16 %v2471_v33  ;;  %v2473_v57 = vunpack.i.h.bf16 %v2471_v33  ;;  %v3124_v61 = vpack.c.bf16 %v1039_v53, %v1039_v53 }
  0x97   : > { %v2483_v11 = vunpack.i.h.bf16 %v2481_v52 }
  0x98   : > { %v1007_v3 = vsel %vm1004_vm4, %v2736_v43, %v2472_v1  ;;  %2245 = vmatprep.mubr.msk.bf16.mxu1 %vm1101_vm6, %v3124_v61  ;;  %v1008_v16 = vsel %vm1004_vm4, %v2742_v45, %v2473_v57 }
  0x99   : > { %v2491_v7 = vpop.permute.xlu1 %2490  ;;  %v2486_v4 = vpop.permute.xlu0 %2485  ;;  %v1041_v9 = vsel %vm1038_vm5, %v1007_v3, %v2482_v32  ;;  %v1042_v45 = vsel %vm1038_vm5, %v1008_v16, %v2483_v11 }
  0x9a   : > { %v2492_v44 = vunpack.i.l.bf16 %v2491_v7  ;;  %v2488_v12 = vunpack.i.h.bf16 %v2486_v4  ;;  %v2487_v13 = vunpack.i.l.bf16 %v2486_v4  ;;  %v1073_v23 = vpack.c.bf16 %v1041_v9, %v1040_v34 }
  0x9b   : > { %v2493_v17 = vunpack.i.h.bf16 %v2491_v7 }
  0x9c   : > { %v1009_v43 = vsel %vm1004_vm4, %v2750_v51, %v2487_v13  ;;  %2246 = vmatmul.mubr.msk.bf16.vlgmr.msra.gmra.mrb[0].mxu1 %vm1101_vm6, %v1073_v23  ;;  %2281 = vmatprep.mubr.msk.bf16.mxu0 %vm1101_vm6, %v1073_v23  ;;  %v1010_v28 = vsel %vm1004_vm4, %v2774_v6, %v2488_v12  ;;  %v2629_v51 = vld [vmem:[%s3735_s3 + $0x20] ss:$0 sps:$4 sm:$0xff]  }
  0x9d   : > { %v2501_v24 = vpop.permute.xlu1 %2500  ;;  %v2496_v26 = vpop.permute.xlu0 %2495  ;;  %v1043_v27 = vsel %vm1038_vm5, %v1009_v43, %v2492_v44  ;;  %2351 = vmatpush3.bf16.msra.mxu1 %v2763_v60  ;;  %v1044_v60 = vsel %vm1038_vm5, %v1010_v28, %v2493_v17 }
  0x9e   : > { %v2502_v29 = vunpack.i.l.bf16 %v2501_v24  ;;  %v2497_v15 = vunpack.i.l.bf16 %v2496_v26  ;;  %v3143_v19 = vpack.c.bf16 %v1043_v27, %v1042_v45  ;;  %2451 = vmatprep.subr.msk.bf16.mxu1 %vm1150_vm3, %v2829_v59  ;;  %v2498_v59 = vunpack.i.h.bf16 %v2496_v26 }
  0x9f   : > { %v2503_v52 = vunpack.i.h.bf16 %v2501_v24 }
  0xa0   : > { %v1011_v31 = vsel %vm1004_vm4, %v2771_v5, %v2497_v15  ;;  %2249 = vmatprep.mubr.msk.bf16.mxu1 %vm1101_vm6, %v3143_v19  ;;  %2282 = vmatmul.mubr.msk.bf16.vlgmr.msra.gmra.mrb[0].mxu0 %vm1101_vm6, %v3143_v19  ;;  %v1573_v5 = vsel %vm1150_vm3, %v2629_v51, 0 }
  0xa1   : > { %v1045_v6 = vsel %vm1038_vm5, %v1011_v31, %v2502_v29  ;;  %2314 = vmatpush3.bf16.msra.mxu0 %v3088_v0  ;;  %2352 = vmatpush3.bf16.msra.mxu1 %v3095_v37  ;;  %v1012_v0 = vsel %vm1004_vm4, %v2794_v25, %v2498_v59 }
  0xa2   : > { %v3159_v39 = vpack.c.bf16 %v1045_v6, %v1044_v60  ;;  %2452 = vmatprep.subr.msk.bf16.mxu0 %vm1150_vm3, %v2629_v51  ;;  %v1046_v3 = vsel %vm1038_vm5, %v1012_v0, %v2503_v52 }
  0xa4   : > { %2285 = vmatprep.mubr.msk.bf16.mxu0 %vm1101_vm6, %v3159_v39  ;;  %2250 = vmatmul.mubr.msk.bf16.gmra.mrb[4].mxu1 %vm1101_vm6, %v3159_v39 }
  0xa5   : > { %2316 = vmatpush3.bf16.msra.mxu0 %v1573_v5 }
  0xa6   : > { %v2511_v33 = vpop.permute.xlu1 %2510  ;;  %v2506_v53 = vpop.permute.xlu0 %2505 }
  0xa7   : > { %v2512_v55 = vunpack.i.l.bf16 %v2511_v33  ;;  %v2507_v37 = vunpack.i.l.bf16 %v2506_v53  ;;  %v2508_v32 = vunpack.i.h.bf16 %v2506_v53  ;;  %v2513_v4 = vunpack.i.h.bf16 %v2511_v33 }
  0xa9   : > { %v1013_v1 = vsel %vm1004_vm4, %v2799_v30, %v2507_v37  ;;  %v1014_v44 = vsel %vm1004_vm4, %v2855_v22, %v2508_v32 }
  0xaa   : > { %v2521_v57 = vpop.permute.xlu1 %2520  ;;  %v1047_v7 = vsel %vm1038_vm5, %v1013_v1, %v2512_v55  ;;  %v1048_v17 = vsel %vm1038_vm5, %v1014_v44, %v2513_v4 }
  0xab   : > { %v2522_v34 = vunpack.i.l.bf16 %v2521_v57  ;;  %v2516_v9 = vpop.permute.xlu0 %2515  ;;  %v3174_v11 = vpack.c.bf16 %v1047_v7, %v1046_v3  ;;  %v2523_v16 = vunpack.i.h.bf16 %v2521_v57 }
  0xac   : > { %v2518_v25 = vunpack.i.h.bf16 %v2516_v9  ;;  %v2517_v12 = vunpack.i.l.bf16 %v2516_v9 }
  0xad   : > { %2253 = vmatprep.mubr.msk.bf16.mxu1 %vm1101_vm6, %v3174_v11  ;;  %2286 = vmatmul.mubr.msk.bf16.gmra.mrb[4].mxu0 %vm1101_vm6, %v3174_v11 }
  0xae   : > { %v1015_v30 = vsel %vm1004_vm4, %v2852_v21, %v2517_v12  ;;  %v2531_v13 = vpop.permute.xlu1 %2530  ;;  %v1016_v22 = vsel %vm1004_vm4, %v2868_v42, %v2518_v25 }
  0xaf   : > { %v2532_v23 = vunpack.i.l.bf16 %v2531_v13  ;;  %v2526_v43 = vpop.permute.xlu0 %2525  ;;  %v1049_v24 = vsel %vm1038_vm5, %v1015_v30, %v2522_v34  ;;  %v1050_v29 = vsel %vm1038_vm5, %v1016_v22, %v2523_v16  ;;  %v2533_v42 = vunpack.i.h.bf16 %v2531_v13 }
  0xb0   : > { %v2527_v26 = vunpack.i.l.bf16 %v2526_v43  ;;  %v3188_v27 = vpack.c.bf16 %v1049_v24, %v1048_v17  ;;  %v2528_v21 = vunpack.i.h.bf16 %v2526_v43 }
  0xb2   : > { %v1017_v28 = vsel %vm1004_vm4, %v2865_v41, %v2527_v26  ;;  %2254 = vmatmul.mubr.msk.bf16.gmra.mrb[8].mxu1 %vm1101_vm6, %v3188_v27  ;;  %2289 = vmatprep.mubr.msk.bf16.mxu0 %vm1101_vm6, %v3188_v27  ;;  %v1018_v41 = vsel %vm1004_vm4, %v2879_v54, %v2528_v21 }
  0xb3   : > { %v1051_v15 = vsel %vm1038_vm5, %v1017_v28, %v2532_v23  ;;  %v1052_v52 = vsel %vm1038_vm5, %v1018_v41, %v2533_v42 }
  0xb4   : > { %v3198_v45 = vpack.c.bf16 %v1051_v15, %v1050_v29 }
  0xb6   : > { %v2541_v51 = vpop.permute.xlu1 %2540  ;;  %v2536_v31 = vpop.permute.xlu0 %2535  ;;  %2257 = vmatprep.mubr.msk.bf16.mxu1 %vm1101_vm6, %v3198_v45  ;;  %2290 = vmatmul.mubr.msk.bf16.gmra.mrb[8].mxu0 %vm1101_vm6, %v3198_v45 }
  0xb7   : > { %v2542_v60 = vunpack.i.l.bf16 %v2541_v51  ;;  %v2537_v6 = vunpack.i.l.bf16 %v2536_v31  ;;  %v2538_v5 = vunpack.i.h.bf16 %v2536_v31  ;;  %v2543_v37 = vunpack.i.h.bf16 %v2541_v51 }
  0xb9   : > { %v1019_v59 = vsel %vm1004_vm4, %v2887_v2, %v2537_v6  ;;  %v1020_v54 = vsel %vm1004_vm4, %v2908_v35, %v2538_v5 }
  0xba   : > { %v1053_v33 = vsel %vm1038_vm5, %v1019_v59, %v2542_v60  ;;  %v1054_v12 = vsel %vm1038_vm5, %v1020_v54, %v2543_v37 }
  0xbb   : > { %v3210_v53 = vpack.c.bf16 %v1053_v33, %v1052_v52 }
  0xbc   : > { %v2551_v0 = vpop.permute.xlu1 %2550  ;;  %v2546_v55 = vpop.permute.xlu0 %2545 }
  0xbd   : > { %v2552_v32 = vunpack.i.l.bf16 %v2551_v0  ;;  %v2548_v1 = vunpack.i.h.bf16 %v2546_v55  ;;  %v2547_v57 = vunpack.i.l.bf16 %v2546_v55  ;;  %2258 = vmatmul.mubr.msk.bf16.gmra.mrb[12].mxu1 %vm1101_vm6, %v3210_v53  ;;  %2293 = vmatprep.mubr.msk.bf16.mxu0 %vm1101_vm6, %v3210_v53  ;;  %v2553_v3 = vunpack.i.h.bf16 %v2551_v0 }
  0xbf   : > { %v1021_v2 = vsel %vm1004_vm4, %v2918_v47, %v2547_v57  ;;  %v1022_v9 = vsel %vm1004_vm4, %v2932_v14, %v2548_v1 }
  0xc0   : > { %v2561_v7 = vpop.permute.xlu1 %2560  ;;  %v2556_v4 = vpop.permute.xlu0 %2555  ;;  %v1055_v34 = vsel %vm1038_vm5, %v1021_v2, %v2552_v32  ;;  %v1056_v47 = vsel %vm1038_vm5, %v1022_v9, %v2553_v3 }
  0xc1   : > { %v2562_v44 = vunpack.i.l.bf16 %v2561_v7  ;;  %v2557_v25 = vunpack.i.l.bf16 %v2556_v4  ;;  %v3224_v30 = vpack.c.bf16 %v1055_v34, %v1054_v12  ;;  %v2558_v16 = vunpack.i.h.bf16 %v2556_v4 }
  0xc2   : > { %v2563_v22 = vunpack.i.h.bf16 %v2561_v7 }
  0xc3   : > { %v1023_v35 = vsel %vm1004_vm4, %v2938_v18, %v2557_v25  ;;  %2261 = vmatprep.mubr.msk.bf16.mxu1 %vm1101_vm6, %v3224_v30  ;;  %2294 = vmatmul.mubr.msk.bf16.gmra.mrb[12].mxu0 %vm1101_vm6, %v3224_v30  ;;  %v1024_v26 = vsel %vm1004_vm4, %v2947_v20, %v2558_v16 }
  0xc4   : > { %v1057_v13 = vsel %vm1038_vm5, %v1023_v35, %v2562_v44  ;;  %2317 = vmatprep.mubr.msk.bf16.mxu0 %vm1101_vm6, %v3143_v19  ;;  %v1058_v20 = vsel %vm1038_vm5, %v1024_v26, %v2563_v22 }
  0xc5   : > { %v3236_v14 = vpack.c.bf16 %v1057_v13, %v1056_v47 }
  0xc7   : > { %2262 = vmatmul.mubr.msk.bf16.gmra.mrb[16].mxu1 %vm1101_vm6, %v3236_v14 }
  0xc9   : > { %v2571_v18 = vpop.permute.xlu1 %2570  ;;  %v2566_v23 = vpop.permute.xlu0 %2565 }
  0xca   : > { %v2572_v43 = vunpack.i.l.bf16 %v2571_v18  ;;  %v2568_v17 = vunpack.i.h.bf16 %v2566_v23  ;;  %v2567_v24 = vunpack.i.l.bf16 %v2566_v23 }
  0xcb   : > { %2318 = vmatmul.mubr.msk.bf16.vlgmr.msra.gmra.mrb[0].mxu0 %vm1101_vm6, %v3159_v39 }
  0xcc   : > { %v1027_v19 = vsel %vm1004_vm4, %v2986_v38, %v2572_v43  ;;  %v1026_v28 = vsel %vm1004_vm4, %v2990_v46, %v2568_v17  ;;  %v1025_v21 = vsel %vm1004_vm4, %v2956_v40, %v2567_v24  ;;  %2321 = vmatprep.mubr.msk.bf16.mxu0 %vm1101_vm6, %v3174_v11  ;;  %v2573_v40 = vunpack.i.h.bf16 %v2571_v18 }
  0xcd   : > { %v2581_v29 = vpop.permute.xlu1 %2580  ;;  %v2576_v15 = vpop.permute.xlu0 %2575 }
  0xce   : > { %v2582_v42 = vunpack.i.l.bf16 %v2581_v29  ;;  %v2578_v51 = vunpack.i.h.bf16 %v2576_v15  ;;  %v2577_v39 = vunpack.i.l.bf16 %v2576_v15  ;;  %v2583_v33 = vunpack.i.h.bf16 %v2581_v29 }
  0xcf   : > { %v1028_v0 = vsel %vm1004_vm4, %v2997_v50, %v2573_v40 }
  0xd0   : > { %v1061_v31 = vsel %vm1038_vm5, %v1027_v19, %v2582_v42  ;;  %v1059_v38 = vsel %vm1038_vm5, %v1025_v21, %v2577_v39  ;;  %v1060_v41 = vsel %vm1038_vm5, %v1026_v28, %v2578_v51  ;;  %v1062_v2 = vsel %vm1038_vm5, %v1028_v0, %v2583_v33 }
  0xd1   : > { %v1082_v46 = vpack.c.bf16 %v1059_v38, %v1058_v20  ;;  %v1083_v60 = vpack.c.bf16 %v1061_v31, %v1060_v41 }
  0xd3   : > { %2265 = vmatprep.mubr.msk.bf16.mxu1 %vm1101_vm6, %v1082_v46  ;;  %2322 = vmatmul.mubr.msk.bf16.gmra.mrb[4].mxu0 %vm1101_vm6, %v3188_v27 }
  0xd4   : > { %v2586_v6 = vpop.permute.xlu0 %2585  ;;  %2266 = vmatmul.mubr.msk.bf16.gmra.mrb[20].mxu1 %vm1101_vm6, %v1083_v60  ;;  %2325 = vmatprep.mubr.msk.bf16.mxu0 %vm1101_vm6, %v3198_v45 }
  0xd5   : > { %v2591_v11 = vpop.permute.xlu1 %2590  ;;  %v2588_v59 = vunpack.i.h.bf16 %v2586_v6  ;;  %v2587_v5 = vunpack.i.l.bf16 %v2586_v6 }
  0xd6   : > { %v2592_v52 = vunpack.i.l.bf16 %v2591_v11  ;;  %v2593_v9 = vunpack.i.h.bf16 %v2591_v11 }
  0xd7   : > { %v1030_v55 = vsel %vm1004_vm4, %v3029_v48, %v2588_v59  ;;  %v1029_v37 = vsel %vm1004_vm4, %v2994_v49, %v2587_v5 }
  0xd8   : > { %v1031_v27 = vsel %vm1004_vm4, %v3034_v8, %v2592_v52  ;;  %v2596_v32 = vpop.permute.xlu0 %2595  ;;  %v1032_v13 = vsel %vm1004_vm4, %v3037_v56, %v2593_v9  ;;  %v3331_v52 = vld [vmem:[%s3736_s4] ss:$0 sm:$0xff] }
  0xd9   : > { %v958_v1 = vpop.permute.xlu1 %957  ;;  %v2598_v57 = vunpack.i.h.bf16 %v2596_v32  ;;  %v2597_v54 = vunpack.i.l.bf16 %v2596_v32 }
  0xda   : > { %v1065_v45 = vsel %vm1038_vm5, %v1031_v27, %v958_v1 }
  0xdb   : > { %v1063_v3 = vsel %vm1038_vm5, %v1029_v37, %v2597_v54  ;;  %v1064_v50 = vsel %vm1038_vm5, %v1030_v55, %v2598_v57  ;;  %2326 = vmatmul.mubr.msk.bf16.gmra.mrb[8].mxu0 %vm1101_vm6, %v3210_v53 }
  0xdc   : > { %v1084_v7 = vpack.c.bf16 %v1063_v3, %v1062_v2  ;;  %v1085_v48 = vpack.c.bf16 %v1065_v45, %v1064_v50  ;;  %v2601_v4 = vpop.permute.xlu0 %2600  ;;  %2329 = vmatprep.mubr.msk.bf16.mxu0 %vm1101_vm6, %v3224_v30 }
  0xdd   : > { %v784_v49 = vpop.permute.xlu1 %783  ;;  %v2603_v8 = vunpack.i.h.bf16 %v2601_v4  ;;  %v2602_v34 = vunpack.i.l.bf16 %v2601_v4 }
  0xde   : > { %2269 = vmatprep.mubr.msk.bf16.mxu1 %vm1101_vm6, %v1084_v7  ;;  %v1035_v18 = vsel %vm1004_vm4, %v3062_v63, %v784_v49 }
  0xdf   : > { %2270 = vmatmul.mubr.msk.bf16.gmra.mrb[24].mxu1 %vm1101_vm6, %v1085_v48  ;;  %v1033_v44 = vsel %vm1004_vm4, %v3042_v10, %v2602_v34  ;;  %v1034_v12 = vsel %vm1004_vm4, %v3066_v36, %v2603_v8 }
  0xe0   : > { %v2606_v25 = vpop.permute.xlu0 %2605 }
  0xe1   : > { %v2611_v35 = vpop.permute.xlu1 %2610  ;;  %v2608_v53 = vunpack.i.h.bf16 %v2606_v25  ;;  %v2607_v47 = vunpack.i.l.bf16 %v2606_v25 }
  0xe2   : > { %v2613_v16 = vunpack.i.h.bf16 %v2611_v35  ;;  %v2612_v30 = vunpack.i.l.bf16 %v2611_v35 }
  0xe3   : > { %v1066_v23 = vsel %vm1038_vm5, %v1032_v13, %v2607_v47  ;;  %v1067_v43 = vsel %vm1038_vm5, %v1033_v44, %v2608_v53  ;;  %2330 = vmatmul.mubr.msk.bf16.gmra.mrb[12].mxu0 %vm1101_vm6, %v3236_v14 }
  0xe4   : > { %v1069_v10 = vsel %vm1038_vm5, %v1035_v18, %v2613_v16  ;;  %v1068_v17 = vsel %vm1038_vm5, %v1034_v12, %v2612_v30  ;;  %v1086_v36 = vpack.c.bf16 %v1067_v43, %v1066_v23  ;;  %2333 = vmatprep.mubr.msk.bf16.mxu0 %vm1101_vm6, %v1082_v46 }
  0xe5   : > { %v1087_v24 = vpack.c.bf16 %v1069_v10, %v1068_v17 }
  0xe6   : > { %2273 = vmatprep.mubr.msk.bf16.mxu1 %vm1101_vm6, %v1086_v36  ;;  %v2616_v56 = vpop.permute.xlu0 %2615  ;;  %v2621_v26 = vpop.permute.xlu1 %2620 }
  0xe7   : > { %2274 = vmatmul.mubr.msk.bf16.gmra.mrb[28].mxu1 %vm1101_vm6, %v1087_v24  ;;  %v2618_v63 = vunpack.i.h.bf16 %v2616_v56  ;;  %v2617_v22 = vunpack.i.l.bf16 %v2616_v56  ;;  %v2623_v19 = vunpack.i.h.bf16 %v2621_v26  ;;  %v2622_v28 = vunpack.i.l.bf16 %v2621_v26 }
  0xe8   : > { %2297 = vmatprep.mubr.msk.bf16.mxu1 %vm1101_vm6, %v3236_v14 }
  0xe9   : > { %v1037_v14 = vsel %vm1004_vm4, %v3106_v62, %v2618_v63  ;;  %v1036_v21 = vsel %vm1004_vm4, %v3102_v58, %v2617_v22 }
  0xea   : > { %v1070_v29 = vsel %vm1038_vm5, %v1036_v21, %v2622_v28  ;;  %v1071_v15 = vsel %vm1038_vm5, %v1037_v14, %v2623_v19 }
  0xeb   : > { %2334 = vmatmul.mubr.msk.bf16.gmra.mrb[16].mxu0 %vm1101_vm6, %v1083_v60  ;;  %v1088_v42 = vpack.c.bf16 %v1071_v15, %v1070_v29 }
  0xec   : > { %2337 = vmatprep.mubr.msk.bf16.mxu0 %vm1101_vm6, %v1084_v7 }
  0xef   : > { %2298 = vmatmul.mubr.msk.bf16.vlgmr.msra.gmra.mrb[16].mxu1 %vm1101_vm6, %v1082_v46 }
  0xf0   : > { %2301 = vmatprep.mubr.msk.bf16.mxu1 %vm1101_vm6, %v1083_v60 }
  0xf3   : > { %2338 = vmatmul.mubr.msk.bf16.gmra.mrb[20].mxu0 %vm1101_vm6, %v1085_v48 }
  0xf4   : > { %2341 = vmatprep.mubr.msk.bf16.mxu0 %vm1101_vm6, %v1086_v36 }
  0xf7   : > { %2302 = vmatmul.mubr.msk.bf16.gmra.mrb[20].mxu1 %vm1101_vm6, %v1084_v7 }
  0xf8   : > { %2305 = vmatprep.mubr.msk.bf16.mxu1 %vm1101_vm6, %v1085_v48 }
  0xfb   : > { %2342 = vmatmul.mubr.msk.bf16.gmra.mrb[24].mxu0 %vm1101_vm6, %v1087_v24 }
  0xfc   : > { %2345 = vmatprep.mubr.msk.bf16.mxu0 %vm1101_vm6, %v1088_v42 }
  0xff   : > { %2306 = vmatmul.mubr.msk.bf16.gmra.mrb[24].mxu1 %vm1101_vm6, %v1086_v36 }
 0x100   : > { %2309 = vmatprep.mubr.msk.bf16.mxu1 %vm1101_vm6, %v1087_v24 }
 0x103   : > { %2346 = vmatmul.mubr.msk.bf16.gmra.mrb[28].mxu0 %vm1101_vm6, %v3124_v61 }
 0x107   : > { %2310 = vmatmul.mubr.msk.bf16.gmra.mrb[28].mxu1 %vm1101_vm6, %v1088_v42 }
 0x16f   : > { %v2247_v58 = vpop.f32.mrb[0].mxu1 }
 0x170   : > { %v1188_v62 = vpop.f32.mrb[1].mxu1  ;;  %v1317_v33 = vadd.f32 %v2247_v58, %v3331_v52 }
 0x171   : > { %v2248_v51 = vpop.f32.mrb[2].mxu1  ;;  %v1315_v0 = vadd.f32 %v3331_v52, %v1188_v62 }
 0x172   : > { %v1191_v39 = vpop.f32.mrb[3].mxu1  ;;  %v1318_v37 = vadd.f32 %v2248_v51, %v3331_v52 }
 0x173   : > { %v1316_v1 = vadd.f32 %v3331_v52, %v1191_v39 }
 0x177   : > { %v2251_v31 = vpop.f32.mrb[4].mxu1 }
 0x178   : > { %v1204_v20 = vpop.f32.mrb[5].mxu1  ;;  %v1321_v48 = vadd.f32 %v2251_v31, %v3331_v52 }
 0x179   : > { %v2252_v38 = vpop.f32.mrb[6].mxu1  ;;  %v1319_v49 = vadd.f32 %v3331_v52, %v1204_v20 }
 0x17a   : > { %v1207_v41 = vpop.f32.mrb[7].mxu1  ;;  %v1322_v9 = vadd.f32 %v2252_v38, %v3331_v52 }
 0x17b   : > { %v1320_v35 = vadd.f32 %v3331_v52, %v1207_v41 }
 0x185   : > { %v2255_v46 = vpop.f32.mrb[8].mxu1 }
 0x186   : > { %v1220_v60 = vpop.f32.mrb[9].mxu1  ;;  %v1325_v36 = vadd.f32 %v2255_v46, %v3331_v52 }
 0x187   : > { %v2256_v40 = vpop.f32.mrb[10].mxu1  ;;  %v1323_v56 = vadd.f32 %v3331_v52, %v1220_v60 }
 0x188   : > { %v1223_v6 = vpop.f32.mrb[11].mxu1  ;;  %v1326_v26 = vadd.f32 %v2256_v40, %v3331_v52 }
 0x189   : > { %v1324_v21 = vadd.f32 %v3331_v52, %v1223_v6 }
 0x190   : > { %v3320_v11 = vpop.f32.mrb[12].mxu1 }
 0x191   : > { %v3322_v59 = vpop.f32.mrb[13].mxu1  ;;  %v1329_v41 = vadd.f32 %v3320_v11, %v3331_v52 }
 0x192   : > { %v3324_v61 = vpop.f32.mrb[14].mxu1  ;;  %v1327_v60 = vadd.f32 %v3331_v52, %v3322_v59 }
 0x193   : > { %v3326_v5 = vpop.f32.mrb[15].mxu1 }
 0x194   : > { %v1328_v11 = vadd.f32 %v3331_v52, %v3326_v5 }
 0x19e   : > { %v2319_v55 = vpop.f32.mrb[0].mxu0 }
 0x19f   : > { %v3343_v27 = vadd.f32 %v2319_v55, %v1317_v33  ;;  %v1609_v32 = vpop.f32.mrb[1].mxu0  ;;  %v1330_v33 = vadd.f32 %v3324_v61, %v3331_v52 }
 0x1a0   : > { %v3346_v57 = vadd.f32 %v1609_v32, %v1315_v0  ;;  %v2320_v54 = vpop.f32.mrb[2].mxu0 }
 0x1a1   : > { %1770 = vst.msk [vmem:[%s3340_s9 + $0x10] sm:$0xff] %vm1004_vm4, %v3343_v27  ;;  %v3351_v45 = vadd.f32 %v2320_v54, %v1318_v37  ;;  %v1612_v2 = vpop.f32.mrb[3].mxu0  ;;  %v1803_v8 = vsel %vm1004_vm4, %v3343_v27, 0.0 }
 0x1a2   : > { %1768 = vst.msk [vmem:[%s3340_s9] sm:$0xff] %vm1004_vm4, %v3346_v57  ;;  %v3356_v3 = vadd.f32 %v1612_v2, %v1316_v1  ;;  %v1800_v50 = vsel %vm1004_vm4, %v3346_v57, 0.0 }
 0x1a3   : > { %1771 = vst.msk [vmem:[%s3340_s9 + $0x18] sm:$0xff] %vm1004_vm4, %v3351_v45  ;;  %v1805_v53 = vsel %vm1004_vm4, %v3351_v45, 0.0 }
 0x1a4   : > { %1769 = vst.msk [vmem:[%s3340_s9 + $0x8] sm:$0xff] %vm1004_vm4, %v3356_v3  ;;  %v1801_v7 = vsel %vm1004_vm4, %v3356_v3, 0.0 }
 0x1a5   : > { %v1802_v4 = vadd.f32 %v1801_v7, %v1800_v50 }
 0x1a6   : > { %v2323_v34 = vpop.f32.mrb[4].mxu0 }
 0x1a7   : > { %v1804_v44 = vadd.f32 %v1803_v8, %v1802_v4  ;;  %v3373_v25 = vadd.f32 %v2323_v34, %v1321_v48  ;;  %v1625_v12 = vpop.f32.mrb[5].mxu0 }
 0x1a8   : > { %v3378_v47 = vadd.f32 %v1625_v12, %v1319_v49  ;;  %v2324_v13 = vpop.f32.mrb[6].mxu0 }
 0x1a9   : > { %1774 = vst.msk [vmem:[%s3340_s9 + $0x30] sm:$0xff] %vm1004_vm4, %v3373_v25  ;;  %v1806_v16 = vadd.f32 %v1805_v53, %v1804_v44  ;;  %v3383_v30 = vadd.f32 %v2324_v13, %v1322_v9  ;;  %v1628_v18 = vpop.f32.mrb[7].mxu0  ;;  %v1811_v63 = vsel %vm1004_vm4, %v3373_v25, 0.0 }
 0x1aa   : > { %1772 = vst.msk [vmem:[%s3340_s9 + $0x20] sm:$0xff] %vm1004_vm4, %v3378_v47  ;;  %v1807_v23 = vsel %vm1004_vm4, %v3378_v47, 0.0  ;;  %v3390_v43 = vadd.f32 %v1628_v18, %v1320_v35 }
 0x1ab   : > { %v1808_v10 = vadd.f32 %v1807_v23, %v1806_v16  ;;  %1775 = vst.msk [vmem:[%s3340_s9 + $0x38] sm:$0xff] %vm1004_vm4, %v3383_v30  ;;  %v1813_v29 = vsel %vm1004_vm4, %v3383_v30, 0.0 }
 0x1ac   : > { %1773 = vst.msk [vmem:[%s3340_s9 + $0x28] sm:$0xff] %vm1004_vm4, %v3390_v43  ;;  %v1809_v17 = vsel %vm1004_vm4, %v3390_v43, 0.0 }
 0x1ad   : > { %v1810_v24 = vadd.f32 %v1809_v17, %v1808_v10 }
 0x1ae   : > { %v2327_v22 = vpop.f32.mrb[8].mxu0 }
 0x1af   : > { %v1812_v19 = vadd.f32 %v1811_v63, %v1810_v24  ;;  %v3405_v28 = vadd.f32 %v2327_v22, %v1325_v36  ;;  %v1641_v14 = vpop.f32.mrb[9].mxu0 }
 0x1b0   : > { %v3410_v15 = vadd.f32 %v1641_v14, %v1323_v56  ;;  %v2328_v42 = vpop.f32.mrb[10].mxu0 }
 0x1b1   : > { %1778 = vst.msk [vmem:[%s3340_s9 + $0x50] sm:$0xff] %vm1004_vm4, %v3405_v28  ;;  %v1814_v58 = vadd.f32 %v1813_v29, %v1812_v19  ;;  %v3415_v62 = vadd.f32 %v2328_v42, %v1326_v26  ;;  %v1644_v51 = vpop.f32.mrb[11].mxu0  ;;  %v1819_v40 = vsel %vm1004_vm4, %v3405_v28, 0.0 }
 0x1b2   : > { %1776 = vst.msk [vmem:[%s3340_s9 + $0x40] sm:$0xff] %vm1004_vm4, %v3410_v15  ;;  %v1815_v39 = vsel %vm1004_vm4, %v3410_v15, 0.0  ;;  %v3422_v31 = vadd.f32 %v1644_v51, %v1324_v21 }
 0x1b3   : > { %v1816_v20 = vadd.f32 %v1815_v39, %v1814_v58  ;;  %1779 = vst.msk [vmem:[%s3340_s9 + $0x58] sm:$0xff] %vm1004_vm4, %v3415_v62  ;;  %v1821_v32 = vsel %vm1004_vm4, %v3415_v62, 0.0 }
 0x1b4   : > { %1777 = vst.msk [vmem:[%s3340_s9 + $0x48] sm:$0xff] %vm1004_vm4, %v3422_v31  ;;  %v1817_v38 = vsel %vm1004_vm4, %v3422_v31, 0.0 }
 0x1b5   : > { %v1818_v46 = vadd.f32 %v1817_v38, %v1816_v20 }
 0x1b6   : > { %v2331_v6 = vpop.f32.mrb[12].mxu0 }
 0x1b7   : > { %v1820_v0 = vadd.f32 %v1819_v40, %v1818_v46  ;;  %v3440_v55 = vadd.f32 %v2331_v6, %v1329_v41  ;;  %v1657_v37 = vpop.f32.mrb[13].mxu0 }
 0x1b8   : > { %v3446_v59 = vadd.f32 %v1657_v37, %v1327_v60  ;;  %v2332_v1 = vpop.f32.mrb[14].mxu0 }
 0x1b9   : > { %1782 = vst.msk [vmem:[%s3340_s9 + $0x70] sm:$0xff] %vm1004_vm4, %v3440_v55  ;;  %v1822_v54 = vadd.f32 %v1821_v32, %v1820_v0  ;;  %v3451_v61 = vadd.f32 %v2332_v1, %v1330_v33  ;;  %v1660_v2 = vpop.f32.mrb[15].mxu0  ;;  %v1827_v49 = vsel %vm1004_vm4, %v3440_v55, 0.0 }
 0x1ba   : > { %1780 = vst.msk [vmem:[%s3340_s9 + $0x60] sm:$0xff] %vm1004_vm4, %v3446_v59  ;;  %v1823_v50 = vsel %vm1004_vm4, %v3446_v59, 0.0  ;;  %v3458_v5 = vadd.f32 %v1660_v2, %v1328_v11 }
 0x1bb   : > { %v1824_v7 = vadd.f32 %v1823_v50, %v1822_v54  ;;  %1783 = vst.msk [vmem:[%s3340_s9 + $0x78] sm:$0xff] %vm1004_vm4, %v3451_v61  ;;  %v1829_v44 = vsel %vm1004_vm4, %v3451_v61, 0.0 }
 0x1bc   : > { %1781 = vst.msk [vmem:[%s3340_s9 + $0x68] sm:$0xff] %vm1004_vm4, %v3458_v5  ;;  %v1825_v48 = vsel %vm1004_vm4, %v3458_v5, 0.0 }
 0x1bd   : > { %v1826_v4 = vadd.f32 %v1825_v48, %v1824_v7 }
 0x1be   : > { %v2335_v8 = vpop.f32.mrb[16].mxu0 }
 0x1bf   : > { %v1828_v34 = vadd.f32 %v1827_v49, %v1826_v4  ;;  %v1673_v9 = vpop.f32.mrb[17].mxu0 }
 0x1c0   : > { %v2336_v12 = vpop.f32.mrb[18].mxu0 }
 0x1c1   : > { %v1830_v53 = vadd.f32 %v1829_v44, %v1828_v34  ;;  %v1676_v13 = vpop.f32.mrb[19].mxu0 }
 0x1c2   : > { %v2299_v35 = vpop.f32.mrb[16].mxu1 }
 0x1c3   : > { %v2385_v16 = vadd.f32 %v2299_v35, %v3331_v52  ;;  %v1464_v18 = vpop.f32.mrb[17].mxu1 }
 0x1c4   : > { %v2387_v23 = vadd.f32 %v3331_v52, %v1464_v18  ;;  %v2300_v10 = vpop.f32.mrb[18].mxu1 }
 0x1c5   : > { %v2389_v17 = vadd.f32 %v2300_v10, %v3331_v52  ;;  %v1467_v36 = vpop.f32.mrb[19].mxu1  ;;  %v3475_v24 = vadd.f32 %v2385_v16, %v2335_v8 }
 0x1c6   : > { %v2391_v56 = vadd.f32 %v3331_v52, %v1467_v36  ;;  %v3478_v63 = vadd.f32 %v2387_v23, %v1673_v9  ;;  %v2339_v26 = vpop.f32.mrb[20].mxu0 }
 0x1c7   : > { %1786 = vst.msk [vmem:[%s3340_s9 + $0x90] sm:$0xff] %vm1004_vm4, %v3475_v24  ;;  %v3483_v22 = vadd.f32 %v2389_v17, %v2336_v12  ;;  %v1689_v21 = vpop.f32.mrb[21].mxu0  ;;  %v1835_v46 = vsel %vm1004_vm4, %v3475_v24, 0.0 }
 0x1c8   : > { %1784 = vst.msk [vmem:[%s3340_s9 + $0x80] sm:$0xff] %vm1004_vm4, %v3478_v63  ;;  %v1831_v19 = vsel %vm1004_vm4, %v3478_v63, 0.0  ;;  %v3490_v14 = vadd.f32 %v2391_v56, %v1676_v13  ;;  %v2340_v42 = vpop.f32.mrb[22].mxu0 }
 0x1c9   : > { %v1832_v29 = vadd.f32 %v1831_v19, %v1830_v53  ;;  %1787 = vst.msk [vmem:[%s3340_s9 + $0x98] sm:$0xff] %vm1004_vm4, %v3483_v22  ;;  %v1692_v39 = vpop.f32.mrb[23].mxu0  ;;  %v1837_v11 = vsel %vm1004_vm4, %v3483_v22, 0.0 }
 0x1ca   : > { %1785 = vst.msk [vmem:[%s3340_s9 + $0x88] sm:$0xff] %vm1004_vm4, %v3490_v14  ;;  %v1833_v58 = vsel %vm1004_vm4, %v3490_v14, 0.0  ;;  %v2303_v51 = vpop.f32.mrb[20].mxu1 }
 0x1cb   : > { %v1834_v20 = vadd.f32 %v1833_v58, %v1832_v29  ;;  %v2393_v38 = vadd.f32 %v2303_v51, %v3331_v52  ;;  %v1480_v41 = vpop.f32.mrb[21].mxu1 }
 0x1cc   : > { %v2395_v60 = vadd.f32 %v3331_v52, %v1480_v41  ;;  %v2304_v40 = vpop.f32.mrb[22].mxu1 }
 0x1cd   : > { %v1836_v6 = vadd.f32 %v1835_v46, %v1834_v20  ;;  %v2397_v33 = vadd.f32 %v2304_v40, %v3331_v52  ;;  %v1483_v0 = vpop.f32.mrb[23].mxu1  ;;  %v3505_v37 = vadd.f32 %v2393_v38, %v2339_v26 }
 0x1ce   : > { %v2399_v32 = vadd.f32 %v3331_v52, %v1483_v0  ;;  %v3510_v1 = vadd.f32 %v2395_v60, %v1689_v21  ;;  %v2343_v50 = vpop.f32.mrb[24].mxu0 }
 0x1cf   : > { %1790 = vst.msk [vmem:[%s3340_s9 + $0xb0] sm:$0xff] %vm1004_vm4, %v3505_v37  ;;  %v1838_v54 = vadd.f32 %v1837_v11, %v1836_v6  ;;  %v3515_v2 = vadd.f32 %v2397_v33, %v2340_v42  ;;  %v1705_v4 = vpop.f32.mrb[25].mxu0  ;;  %v1843_v13 = vsel %vm1004_vm4, %v3505_v37, 0.0 }
 0x1d0   : > { %1788 = vst.msk [vmem:[%s3340_s9 + $0xa0] sm:$0xff] %vm1004_vm4, %v3510_v1  ;;  %v1839_v7 = vsel %vm1004_vm4, %v3510_v1, 0.0  ;;  %v3522_v48 = vadd.f32 %v2399_v32, %v1692_v39  ;;  %v2344_v8 = vpop.f32.mrb[26].mxu0 }
 0x1d1   : > { %v1840_v49 = vadd.f32 %v1839_v7, %v1838_v54  ;;  %1791 = vst.msk [vmem:[%s3340_s9 + $0xb8] sm:$0xff] %vm1004_vm4, %v3515_v2  ;;  %v1708_v44 = vpop.f32.mrb[27].mxu0  ;;  %v1845_v56 = vsel %vm1004_vm4, %v3515_v2, 0.0 }
 0x1d2   : > { %1789 = vst.msk [vmem:[%s3340_s9 + $0xa8] sm:$0xff] %vm1004_vm4, %v3522_v48  ;;  %v1841_v34 = vsel %vm1004_vm4, %v3522_v48, 0.0  ;;  %v2307_v9 = vpop.f32.mrb[24].mxu1 }
 0x1d3   : > { %v1842_v12 = vadd.f32 %v1841_v34, %v1840_v49  ;;  %v2401_v35 = vadd.f32 %v2307_v9, %v3331_v52  ;;  %v1496_v53 = vpop.f32.mrb[25].mxu1 }
 0x1d4   : > { %v2403_v16 = vadd.f32 %v3331_v52, %v1496_v53  ;;  %v2308_v18 = vpop.f32.mrb[26].mxu1 }
 0x1d5   : > { %v1844_v23 = vadd.f32 %v1843_v13, %v1842_v12  ;;  %v2405_v10 = vadd.f32 %v2308_v18, %v3331_v52  ;;  %v1499_v17 = vpop.f32.mrb[27].mxu1  ;;  %v3537_v36 = vadd.f32 %v2401_v35, %v2343_v50 }
 0x1d6   : > { %v2407_v26 = vadd.f32 %v3331_v52, %v1499_v17  ;;  %v3542_v19 = vadd.f32 %v2403_v16, %v1705_v4  ;;  %v2347_v42 = vpop.f32.mrb[28].mxu0 }
 0x1d7   : > { %1794 = vst.msk [vmem:[%s3340_s9 + $0xd0] sm:$0xff] %vm1004_vm4, %v3537_v36  ;;  %v1846_v21 = vadd.f32 %v1845_v56, %v1844_v23  ;;  %v3547_v29 = vadd.f32 %v2405_v10, %v2344_v8  ;;  %v1721_v39 = vpop.f32.mrb[29].mxu0  ;;  %v1851_v0 = vsel %vm1004_vm4, %v3537_v36, 0.0 }
 0x1d8   : > { %1792 = vst.msk [vmem:[%s3340_s9 + $0xc0] sm:$0xff] %vm1004_vm4, %v3542_v19  ;;  %v1847_v58 = vsel %vm1004_vm4, %v3542_v19, 0.0  ;;  %v2408_v51 = vadd.f32 %v2407_v26, %v1708_v44  ;;  %v2348_v38 = vpop.f32.mrb[30].mxu0 }
 0x1d9   : > { %v1848_v20 = vadd.f32 %v1847_v58, %v1846_v21  ;;  %1795 = vst.msk [vmem:[%s3340_s9 + $0xd8] sm:$0xff] %vm1004_vm4, %v3547_v29  ;;  %v1724_v60 = vpop.f32.mrb[31].mxu0  ;;  %v1853_v49 = vsel %vm1004_vm4, %v3547_v29, 0.0 }
 0x1da   : > { %1793 = vst.msk [vmem:[%s3340_s9 + $0xc8] sm:$0xff] %vm1004_vm4, %v2408_v51  ;;  %v1849_v41 = vsel %vm1004_vm4, %v2408_v51, 0.0  ;;  %v2311_v46 = vpop.f32.mrb[28].mxu1 }
 0x1db   : > { %v1850_v40 = vadd.f32 %v1849_v41, %v1848_v20  ;;  %v2409_v6 = vadd.f32 %v2311_v46, %v3331_v52  ;;  %v1512_v33 = vpop.f32.mrb[29].mxu1 }
 0x1dc   : > { %v2411_v11 = vadd.f32 %v3331_v52, %v1512_v33  ;;  %v2312_v32 = vpop.f32.mrb[30].mxu1 }
 0x1dd   : > { %v1852_v54 = vadd.f32 %v1851_v0, %v1850_v40  ;;  %v2413_v50 = vadd.f32 %v2312_v32, %v3331_v52  ;;  %v1515_v7 = vpop.f32.mrb[31].mxu1  ;;  %v2410_v4 = vadd.f32 %v2409_v6, %v2347_v42 }
 0x1de   : > { %v2415_v8 = vadd.f32 %v3331_v52, %v1515_v7  ;;  %v2412_v34 = vadd.f32 %v2411_v11, %v1721_v39 }
 0x1df   : > { %1798 = vst.msk [vmem:[%s3340_s9 + $0xf0] sm:$0xff] %vm1004_vm4, %v2410_v4  ;;  %v1854_v9 = vadd.f32 %v1853_v49, %v1852_v54  ;;  %v2414_v44 = vadd.f32 %v2413_v50, %v2348_v38  ;;  %v1859_v52 = vsel %vm1004_vm4, %v2410_v4, 0.0 }
 0x1e0   : > { %1796 = vst.msk [vmem:[%s3340_s9 + $0xe0] sm:$0xff] %vm1004_vm4, %v2412_v34  ;;  %v1855_v12 = vsel %vm1004_vm4, %v2412_v34, 0.0  ;;  %v2416_v35 = vadd.f32 %v2415_v8, %v1724_v60 }
 0x1e1   : > { %v1856_v53 = vadd.f32 %v1855_v12, %v1854_v9  ;;  %1799 = vst.msk [vmem:[%s3340_s9 + $0xf8] sm:$0xff] %vm1004_vm4, %v2414_v44  ;;  %v1861_v23 = vsel %vm1004_vm4, %v2414_v44, 0.0 }
 0x1e2   : > { %1797 = vst.msk [vmem:[%s3340_s9 + $0xe8] sm:$0xff] %vm1004_vm4, %v2416_v35  ;;  %v1857_v13 = vsel %vm1004_vm4, %v2416_v35, 0.0 }
 0x1e3   : > { %v1858_v16 = vadd.f32 %v1857_v13, %v1856_v53 }
 0x1e5   : > { %v1860_v18 = vadd.f32 %v1859_v52, %v1858_v16 }
 0x1e7   : > { %v1862_v10 = vadd.f32 %v1861_v23, %v1860_v18 }
 0x1e9   : > { %v1863_v17 = vrot.slane %v1862_v10, 4 }
 0x1eb   : > { %v1864_v56 = vadd.f32 %v1863_v17, %v1862_v10 }
 0x1ed   : > { %v1865_v26 = vrot.slane %v1864_v56, 2 }
 0x1ef   : > { %v1866_v21 = vadd.f32 %v1865_v26, %v1864_v56 }
 0x1f1   : > { %v1867_v42 = vrot.slane %v1866_v21, 1 }
 0x1f3   : > { %v1868_v58 = vadd.f32 %v1867_v42, %v1866_v21 }
 0x1f5   : > { %1870 = vst.msk [vmem:[%s292_s11] sm:$0x1] %vm1869_vm7, %v1868_v58  ;;  %v1871_v39 = vmul.f32 0.00390625, %v1868_v58 }
 0x1f7   : > { %v3586_v20 = vsub.f32 %v3446_v59, %v1871_v39  ;;  %v3589_v38 = vsub.f32 %v3458_v5, %v1871_v39  ;;  %v3592_v41 = vsub.f32 %v3440_v55, %v1871_v39  ;;  %v3595_v46 = vsub.f32 %v3451_v61, %v1871_v39 }
 0x1f8   : > { %v3598_v60 = vsub.f32 %v3478_v63, %v1871_v39  ;;  %v3601_v40 = vsub.f32 %v3490_v14, %v1871_v39  ;;  %v3604_v6 = vsub.f32 %v3475_v24, %v1871_v39  ;;  %v3607_v59 = vsub.f32 %v3483_v22, %v1871_v39 }
 0x1f9   : > { %v3610_v5 = vsub.f32 %v3510_v1, %v1871_v39  ;;  %v3613_v55 = vsub.f32 %v3522_v48, %v1871_v39  ;;  %v3616_v61 = vsub.f32 %v3505_v37, %v1871_v39  ;;  %v3619_v63 = vsub.f32 %v3515_v2, %v1871_v39 }
 0x1fa   : > { %v3622_v14 = vsub.f32 %v3542_v19, %v1871_v39  ;;  %v3624_v24 = vsub.f32 %v2408_v51, %v1871_v39  ;;  %v3627_v22 = vsub.f32 %v3537_v36, %v1871_v39  ;;  %v3630_v1 = vsub.f32 %v3547_v29, %v1871_v39 }
 0x1fb   : > { %v3632_v33 = vsub.f32 %v2412_v34, %v1871_v39  ;;  %v3634_v48 = vsub.f32 %v2416_v35, %v1871_v39  ;;  %v3636_v37 = vsub.f32 %v2410_v4, %v1871_v39  ;;  %v3638_v0 = vsub.f32 %v2414_v44, %v1871_v39 }
 0x1fc   : > { %v1872_v2 = vsub.f32 %v3346_v57, %v1871_v39  ;;  %v1873_v19 = vsub.f32 %v3356_v3, %v1871_v39  ;;  %v1874_v51 = vsub.f32 %v3343_v27, %v1871_v39  ;;  %v1875_v36 = vsub.f32 %v3351_v45, %v1871_v39 }
 0x1fd   : > { %v1876_v29 = vsub.f32 %v3378_v47, %v1871_v39  ;;  %v1877_v50 = vsub.f32 %v3390_v43, %v1871_v39  ;;  %v1878_v57 = vsub.f32 %v3373_v25, %v1871_v39  ;;  %v1879_v45 = vsub.f32 %v3383_v30, %v1871_v39 }
 0x1fe   : > { %v1904_v11 = vmul.f32 %v1872_v2, %v1872_v2  ;;  %v1905_v32 = vmul.f32 %v1873_v19, %v1873_v19  ;;  %v1906_v54 = vmul.f32 %v1874_v51, %v1874_v51  ;;  %v1907_v7 = vmul.f32 %v1875_v36, %v1875_v36 }
 0x1ff   : > { %v1908_v3 = vmul.f32 %v1876_v29, %v1876_v29  ;;  %v1909_v9 = vmul.f32 %v1877_v50, %v1877_v50  ;;  %v1880_v43 = vsub.f32 %v3410_v15, %v1871_v39  ;;  %v1910_v12 = vmul.f32 %v1878_v57, %v1878_v57 }
 0x200   : > { %v1936_v4 = vsel %vm1004_vm4, %v1904_v11, 0.0  ;;  %v1937_v49 = vsel %vm1004_vm4, %v1905_v32, 0.0  ;;  %v1939_v27 = vsel %vm1004_vm4, %v1906_v54, 0.0  ;;  %v1941_v47 = vsel %vm1004_vm4, %v1907_v7, 0.0 }
 0x201   : > { %v1938_v8 = vadd.f32 %v1937_v49, %v1936_v4  ;;  %v1943_v35 = vsel %vm1004_vm4, %v1908_v3, 0.0  ;;  %v1881_v13 = vsub.f32 %v3422_v31, %v1871_v39  ;;  %v1911_v16 = vmul.f32 %v1879_v45, %v1879_v45 }
 0x202   : > { %v1945_v25 = vsel %vm1004_vm4, %v1909_v9, 0.0  ;;  %v1882_v18 = vsub.f32 %v3405_v28, %v1871_v39  ;;  %v1912_v23 = vmul.f32 %v1880_v43, %v1880_v43  ;;  %v1947_v30 = vsel %vm1004_vm4, %v1910_v12, 0.0 }
 0x203   : > { %v1940_v34 = vadd.f32 %v1939_v27, %v1938_v8  ;;  %v1883_v17 = vsub.f32 %v3415_v62, %v1871_v39  ;;  %v1913_v56 = vmul.f32 %v1881_v13, %v1881_v13  ;;  %v1949_v15 = vsel %vm1004_vm4, %v1911_v16, 0.0 }
 0x204   : > { %v1914_v21 = vmul.f32 %v1882_v18, %v1882_v18  ;;  %v1951_v42 = vsel %vm1004_vm4, %v1912_v23, 0.0  ;;  %v1916_v28 = vmul.f32 %v3586_v20, %v3586_v20  ;;  %v1917_v62 = vmul.f32 %v3589_v38, %v3589_v38 }
 0x205   : > { %v1942_v44 = vadd.f32 %v1941_v47, %v1940_v34  ;;  %v1915_v58 = vmul.f32 %v1883_v17, %v1883_v17  ;;  %v1953_v2 = vsel %vm1004_vm4, %v1913_v56, 0.0  ;;  %v1918_v32 = vmul.f32 %v3592_v41, %v3592_v41 }
 0x206   : > { %v1955_v51 = vsel %vm1004_vm4, %v1914_v21, 0.0  ;;  %v1959_v29 = vsel %vm1004_vm4, %v1916_v28, 0.0  ;;  %v1919_v50 = vmul.f32 %v3595_v46, %v3595_v46  ;;  %v1961_v20 = vsel %vm1004_vm4, %v1917_v62, 0.0 }
 0x207   : > { %v1944_v53 = vadd.f32 %v1943_v35, %v1942_v44  ;;  %v1957_v39 = vsel %vm1004_vm4, %v1915_v58, 0.0  ;;  %v1920_v4 = vmul.f32 %v3598_v60, %v3598_v60  ;;  %v1963_v38 = vsel %vm1004_vm4, %v1918_v32, 0.0 }
 0x208   : > { %v1921_v8 = vmul.f32 %v3601_v40, %v3601_v40  ;;  %v1965_v41 = vsel %vm1004_vm4, %v1919_v50, 0.0  ;;  %v1922_v3 = vmul.f32 %v3604_v6, %v3604_v6  ;;  %v1923_v34 = vmul.f32 %v3607_v59, %v3607_v59 }
 0x209   : > { %v1946_v52 = vadd.f32 %v1945_v25, %v1944_v53  ;;  %v1967_v46 = vsel %vm1004_vm4, %v1920_v4, 0.0  ;;  %v1924_v9 = vmul.f32 %v3610_v5, %v3610_v5  ;;  %v1925_v44 = vmul.f32 %v3613_v55, %v3613_v55 }
 0x20a   : > { %v1969_v60 = vsel %vm1004_vm4, %v1921_v8, 0.0  ;;  %v1971_v40 = vsel %vm1004_vm4, %v1922_v3, 0.0  ;;  %v1973_v6 = vsel %vm1004_vm4, %v1923_v34, 0.0  ;;  %v1926_v12 = vmul.f32 %v3616_v61, %v3616_v61 }
 0x20b   : > { %v1948_v10 = vadd.f32 %v1947_v30, %v1946_v52  ;;  %v1975_v59 = vsel %vm1004_vm4, %v1924_v9, 0.0  ;;  %v1927_v53 = vmul.f32 %v3619_v63, %v3619_v63  ;;  %v1977_v5 = vsel %vm1004_vm4, %v1925_v44, 0.0 }
 0x20c   : > { %v1928_v16 = vmul.f32 %v3622_v14, %v3622_v14  ;;  %v1979_v55 = vsel %vm1004_vm4, %v1926_v12, 0.0  ;;  %v1929_v52 = vmul.f32 %v3624_v24, %v3624_v24  ;;  %v1930_v23 = vmul.f32 %v3627_v22, %v3627_v22 }
 0x20d   : > { %v1950_v26 = vadd.f32 %v1949_v15, %v1948_v10  ;;  %v1981_v61 = vsel %vm1004_vm4, %v1927_v53, 0.0  ;;  %v1931_v10 = vmul.f32 %v3630_v1, %v3630_v1  ;;  %v1932_v56 = vmul.f32 %v3632_v33, %v3632_v33 }
 0x20e   : > { %v1983_v63 = vsel %vm1004_vm4, %v1928_v16, 0.0  ;;  %v1985_v14 = vsel %vm1004_vm4, %v1929_v52, 0.0  ;;  %v1987_v24 = vsel %vm1004_vm4, %v1930_v23, 0.0  ;;  %v1935_v58 = vmul.f32 %v3638_v0, %v3638_v0 }
 0x20f   : > { %v1952_v31 = vadd.f32 %v1951_v42, %v1950_v26  ;;  %v1933_v26 = vmul.f32 %v3634_v48, %v3634_v48  ;;  %v1989_v22 = vsel %vm1004_vm4, %v1931_v10, 0.0  ;;  %v1934_v42 = vmul.f32 %v3636_v37, %v3636_v37 }
 0x210   : > { %v1991_v1 = vsel %vm1004_vm4, %v1932_v56, 0.0  ;;  %v1997_v48 = vsel %vm1004_vm4, %v1935_v58, 0.0 }
 0x211   : > { %v1954_v19 = vadd.f32 %v1953_v2, %v1952_v31  ;;  %v1993_v33 = vsel %vm1004_vm4, %v1933_v26, 0.0 }
 0x213   : > { %v1956_v36 = vadd.f32 %v1955_v51, %v1954_v19  ;;  %v1995_v19 = vsel %vm1004_vm4, %v1934_v42, 0.0 }
 0x215   : > { %v1958_v11 = vadd.f32 %v1957_v39, %v1956_v36 }
 0x217   : > { %v1960_v54 = vadd.f32 %v1959_v29, %v1958_v11 }
 0x219   : > { %v1962_v7 = vadd.f32 %v1961_v20, %v1960_v54 }
 0x21b   : > { %v1964_v49 = vadd.f32 %v1963_v38, %v1962_v7 }
 0x21d   : > { %v1966_v57 = vadd.f32 %v1965_v41, %v1964_v49 }
 0x21f   : > { %v1968_v27 = vadd.f32 %v1967_v46, %v1966_v57 }
 0x221   : > { %v1970_v45 = vadd.f32 %v1969_v60, %v1968_v27 }
 0x223   : > { %v1972_v47 = vadd.f32 %v1971_v40, %v1970_v45 }
 0x225   : > { %v1974_v43 = vadd.f32 %v1973_v6, %v1972_v47 }
 0x227   : > { %v1976_v35 = vadd.f32 %v1975_v59, %v1974_v43 }
 0x229   : > { %v1978_v13 = vadd.f32 %v1977_v5, %v1976_v35 }
 0x22b   : > { %v1980_v25 = vadd.f32 %v1979_v55, %v1978_v13 }
 0x22d   : > { %v1982_v18 = vadd.f32 %v1981_v61, %v1980_v25 }
 0x22f   : > { %v1984_v30 = vadd.f32 %v1983_v63, %v1982_v18 }
 0x231   : > { %v1986_v17 = vadd.f32 %v1985_v14, %v1984_v30 }
 0x233   : > { %v1988_v15 = vadd.f32 %v1987_v24, %v1986_v17 }
 0x235   : > { %v1990_v21 = vadd.f32 %v1989_v22, %v1988_v15 }
 0x237   : > { %v1992_v31 = vadd.f32 %v1991_v1, %v1990_v21 }
 0x239   : > { %v1994_v2 = vadd.f32 %v1993_v33, %v1992_v31 }
 0x23b   : > { %v1996_v28 = vadd.f32 %v1995_v19, %v1994_v2 }
 0x23d   : > { %v1998_v51 = vadd.f32 %v1997_v48, %v1996_v28 }
 0x23f   : > { %v1999_v36 = vrot.slane %v1998_v51, 4 }
 0x241   : > { %v2000_v62 = vadd.f32 %v1999_v36, %v1998_v51 }
 0x243   : > { %v2001_v39 = vrot.slane %v2000_v62, 2 }
 0x245   : > { %v2002_v11 = vadd.f32 %v2001_v39, %v2000_v62 }
 0x247   : > { %v2003_v37 = vrot.slane %v2002_v11, 1 }
 0x249   : > { %v2004_v32 = vadd.f32 %v2003_v37, %v2002_v11 }
 0x24b   : > { %2005 = vst.msk [vmem:[%s295_s14] sm:$0x1] %vm1869_vm7, %v2004_v32 }
 0x24c PF: > { %s18_s24 = sadd.s32 1, %s2636_s24  }
 0x24d   : > { %p15_p4 = scmp.ge.s32.totalorder %s18_s24, 4  }
 0x24f   :  { %17 = sbr.rel (!%p15_p4) target bundleno = 1 (0x1), region = 96 }

</bundles_post_ra>
